<compile_context>
chip_gen: v5e
topology: v5e:2x2
jax: 0.10.0
libtpu: 0.0.40
codegen_flags: <defaults>
</compile_context>

<pallas_src>
import math
import functools

import jax
import jax.numpy as jnp
from jax import lax
from jax.experimental import pallas as pl
from jax.experimental.pallas import tpu as pltpu


def _layernorm_channels(x, w, b, eps=1e-5):
    # x: (C, L) channels-major; normalize each token (column) over the channel axis.
    mu = jnp.mean(x, axis=0, keepdims=True)
    var = jnp.mean(jnp.square(x - mu), axis=0, keepdims=True)
    return (x - mu) * lax.rsqrt(var + eps) * w + b


def _erf(x):
    # Abramowitz & Stegun 7.1.26 (|abs err| <= 1.5e-7): only mul/add/div/exp/select,
    # so it lowers on every TPU generation (no reliance on a native erf lowering).
    a1, a2, a3, a4, a5 = 0.254829592, -0.284496736, 1.421413741, -1.453152027, 1.061405429
    p = 0.3275911
    sgn = jnp.where(x >= 0.0, 1.0, -1.0)
    z = jnp.abs(x)
    t = 1.0 / (1.0 + p * z)
    poly = ((((a5 * t + a4) * t + a3) * t + a2) * t + a1) * t
    return sgn * (1.0 - poly * jnp.exp(-z * z))


def _gelu_exact(x):
    # PyTorch nn.GELU() default (erf form).
    return 0.5 * x * (1.0 + _erf(x * 0.7071067811865476))


def transblock_kernel(x_ref, bias_ref, ln1w_ref, ln1b_ref, wqkv_ref,
                      wproj_ref, bproj_ref, ln2w_ref, ln2b_ref,
                      wfc1_ref, bfc1_ref, wfc2_ref, bfc2_ref,
                      o_ref, *, num_heads, scale):
    f32, bf16 = jnp.float32, jnp.bfloat16

    x = x_ref[0]                                   # (C, L) f32, channels-major
    C, L = x.shape
    hd = C // num_heads

    # ---------------- attention branch ----------------
    xn = _layernorm_channels(x, ln1w_ref[...], ln1b_ref[...])                   # (C, L)
    # qkv^T = Wqkv @ xn ; rows ordered [q | k | v], head-major within each
    # (same ordering as torch's reshape(B,N,3,H,hd).permute(2,0,3,1,4)).
    qkv = jnp.dot(wqkv_ref[...], xn.astype(bf16), preferred_element_type=f32)   # (3C, L)
    # Sublane-aligned static slices, then free leading-dim reshapes; cast once.
    q = qkv[0 * C:1 * C].reshape(num_heads, hd, L).astype(bf16)                 # (H, hd, L)
    k = qkv[1 * C:2 * C].reshape(num_heads, hd, L).astype(bf16)
    v = qkv[2 * C:3 * C].reshape(num_heads, hd, L).astype(bf16)

    # scores[h, n, m] = sum_d q[h, d, n] * k[h, d, m]
    # One small batched bf16 swapaxes on q puts both operands in the canonical
    # batched-matmul form (lhs contracts last dim, rhs contracts dim 1).
    q_t = jnp.swapaxes(q, 1, 2)                                                 # (H, L, hd)
    s = lax.dot_general(q_t, k, (((2,), (1,)), ((0,), (0,))),
                        preferred_element_type=f32) * scale                     # (H, L, L)
    s = s + bias_ref[...]            # block-diagonal bias: no cross-batch attention
    s = s - jnp.max(s, axis=-1, keepdims=True)
    p = jnp.exp(s)
    p = p * pl.reciprocal(jnp.sum(p, axis=-1, keepdims=True), approx=True)

    # ctx[h, d, n] = sum_m v[h, d, m] * p[h, n, m]   (A @ B^T: contract last dims,
    # same pattern the flash kernel uses; MXU handles the transposed rhs feed).
    ctx = lax.dot_general(v, p.astype(bf16), (((2,), (2,)), ((0,), (0,))),
                          preferred_element_type=f32)                           # (H, hd, L)
    ctx = ctx.reshape(C, L)                                 # leading-dim merge: free

    attn_out = jnp.dot(wproj_ref[...], ctx.astype(bf16),
                       preferred_element_type=f32) + bproj_ref[...]             # (C, L)
    x = x + attn_out

    # ---------------- MLP branch ----------------
    xn2 = _layernorm_channels(x, ln2w_ref[...], ln2b_ref[...])
    h1 = jnp.dot(wfc1_ref[...], xn2.astype(bf16),
                 preferred_element_type=f32) + bfc1_ref[...]                    # (hidden, L)
    h1 = _gelu_exact(h1)
    h2 = jnp.dot(wfc2_ref[...], h1.astype(bf16),
                 preferred_element_type=f32) + bfc2_ref[...]                    # (C, L)

    o_ref[0] = x + h2


def transblock_pallas(x_gcl, attn_bias, params, num_heads):
    """x_gcl: (G, C, L) f32 channels-major packed slabs -> (G, C, L) f32."""
    G, C, L = x_gcl.shape
    hidden = params["wfc1"].shape[0]
    scale = (C // num_heads) ** (-0.5)

    kernel = functools.partial(transblock_kernel, num_heads=num_heads, scale=scale)

    def fixed(shape):   # full-array block, constant index map (broadcast weights)
        return pl.BlockSpec(shape, lambda g, _s=len(shape): (0,) * _s)

    grid_spec = pltpu.PrefetchScalarGridSpec(
        num_scalar_prefetch=0,
        grid=(G,),
        in_specs=[
            pl.BlockSpec((1, C, L), lambda g: (g, 0, 0)),   # x slab, channels-major
            fixed((L, L)),            # block-diagonal attention bias
            fixed((C, 1)),            # ln1 weight
            fixed((C, 1)),            # ln1 bias
            fixed((3 * C, C)),        # qkv weight, PyTorch (out, in) layout, bf16
            fixed((C, C)),            # proj weight, bf16
            fixed((C, 1)),            # proj bias
            fixed((C, 1)),            # ln2 weight
            fixed((C, 1)),            # ln2 bias
            fixed((hidden, C)),       # fc1 weight, bf16
            fixed((hidden, 1)),       # fc1 bias
            fixed((C, hidden)),       # fc2 weight, bf16
            fixed((C, 1)),            # fc2 bias
        ],
        out_specs=pl.BlockSpec((1, C, L), lambda g: (g, 0, 0)),
    )

    return pl.pallas_call(
        kernel,
        out_shape=jax.ShapeDtypeStruct((G, C, L), jnp.float32),
        grid_spec=grid_spec,
        compiler_params=pltpu.CompilerParams(
            dimension_semantics=("parallel",)),
    )(x_gcl, attn_bias,
      params["ln1_w"], params["ln1_b"], params["wqkv"],
      params["wproj"], params["bproj"], params["ln2_w"], params["ln2_b"],
      params["wfc1"], params["bfc1"], params["wfc2"], params["bfc2"])


def _choose_lane_batch(B, N):
    # Pack enough batch elements along lanes to reach >=128 lanes per kernel step
    # (largest divisor of B not exceeding ceil(128 / N)).
    want = max(1, -(-128 // N))
    best = 1
    for bt in range(1, min(B, want) + 1):
        if B % bt == 0:
            best = bt
    return best


def _make_attn_bias(lane_batch, tokens):
    # Additive block-diagonal bias over the packed lane axis: 0 within a batch
    # element's tokens, -1e30 across batch elements (softmax -> exactly 0 weight).
    L = lane_batch * tokens
    if lane_batch == 1:
        return jnp.zeros((L, L), jnp.float32)
    blk = jnp.arange(L, dtype=jnp.int32) // tokens
    return jnp.where(blk[:, None] == blk[None, :], 0.0, -1e30).astype(jnp.float32)


def self_attention_forward(x_nchw, params, *, num_heads, lane_batch=None):
    """NCHW feature map -> TransBlock over tokens (N=H*W, dim=C) -> NCHW.

    Mathematically identical to flattening to (B, N, C), running TransBlock, and
    transposing back.  Computed channels-major with `lane_batch` batch elements
    packed along lanes per grid step (cross-batch attention masked out).
    """
    B, C, H, W = x_nchw.shape
    N = H * W
    assert C % num_heads == 0
    # NOTE: head_dim (= C // num_heads) that is a multiple of 8 keeps per-head
    # slices sublane-aligned (best layout); other values are correct but slower.

    if lane_batch is None:
        lane_batch = _choose_lane_batch(B, N)
    assert B % lane_batch == 0
    G = B // lane_batch
    L = lane_batch * N

    # One-time HBM layout plumbing (outside the kernel): (B,C,N) -> (G, C, lane_batch*N)
    x_gcl = (x_nchw.reshape(G, lane_batch, C, N)
             .transpose(0, 2, 1, 3)
             .reshape(G, C, L))
    attn_bias = _make_attn_bias(lane_batch, N)

    out = transblock_pallas(x_gcl, attn_bias, params, num_heads)   # (G, C, L)

    return (out.reshape(G, C, lane_batch, N)
            .transpose(0, 2, 1, 3)
            .reshape(B, C, H, W))


def xavier_uniform(key, out_dim, in_dim):
    a = math.sqrt(6.0 / (in_dim + out_dim))
    return jax.random.uniform(key, (out_dim, in_dim), jnp.float32, -a, a)


def make_params(key, dim, mlp_ratio=4.0):
    hidden = int(dim * mlp_ratio)
    k1, k2, k3, k4 = jax.random.split(key, 4)
    f32, bf16 = jnp.float32, jnp.bfloat16
    # PyTorch Linear weights are (out, in); the channels-major kernel uses them as-is.
    # Matmul operands are stored bf16 (f32 accumulation inside the kernel).
    wqkv = xavier_uniform(k1, 3 * dim, dim).astype(bf16)   # qkv_bias=False
    wproj = xavier_uniform(k2, dim, dim).astype(bf16)
    wfc1 = xavier_uniform(k3, hidden, dim).astype(bf16)
    wfc2 = xavier_uniform(k4, dim, hidden).astype(bf16)
    return {
        "ln1_w": jnp.ones((dim, 1), f32), "ln1_b": jnp.zeros((dim, 1), f32),
        "wqkv": wqkv,
        "wproj": wproj, "bproj": jnp.zeros((dim, 1), f32),
        "ln2_w": jnp.ones((dim, 1), f32), "ln2_b": jnp.zeros((dim, 1), f32),
        "wfc1": wfc1, "bfc1": jnp.zeros((hidden, 1), f32),
        "wfc2": wfc2, "bfc2": jnp.zeros((dim, 1), f32),
    }


if __name__ == "__main__":
    key = jax.random.PRNGKey(0)
    kx, kp = jax.random.split(key)

    # Small shapes consistent with the module: embed_dim=C=32, num_heads=4 (head_dim=8),
    # 8x8 feature map (N=64 tokens), B=4 so lane packing (2 per step) still leaves
    # 2 parallel grid steps for v7x's two TensorCores.
    B, C, H, W = 4, 32, 8, 8
    num_heads = 4

    x = jax.random.normal(kx, (B, C, H, W), jnp.float32)
    params = make_params(kp, C, mlp_ratio=4.0)

    fwd = jax.jit(functools.partial(self_attention_forward, num_heads=num_heads))
    out = jax.block_until_ready(fwd(x, params))

    assert out.shape == (B, C, H, W)
    assert bool(jnp.all(jnp.isfinite(out)))
    print("KERNEL_OK")
</pallas_src>

<mosaic_0001>
module attributes {stable_mosaic.version = 11 : i64} {
  func.func @transblock_kernel(%arg0: i32, %arg1: memref<1x32x128xf32, #tpu.memory_space<vmem>>, %arg2: memref<128x128xf32, #tpu.memory_space<vmem>>, %arg3: memref<32x1xf32, #tpu.memory_space<vmem>>, %arg4: memref<32x1xf32, #tpu.memory_space<vmem>>, %arg5: memref<96x32xbf16, #tpu.memory_space<vmem>>, %arg6: memref<32x32xbf16, #tpu.memory_space<vmem>>, %arg7: memref<32x1xf32, #tpu.memory_space<vmem>>, %arg8: memref<32x1xf32, #tpu.memory_space<vmem>>, %arg9: memref<32x1xf32, #tpu.memory_space<vmem>>, %arg10: memref<128x32xbf16, #tpu.memory_space<vmem>>, %arg11: memref<128x1xf32, #tpu.memory_space<vmem>>, %arg12: memref<32x128xbf16, #tpu.memory_space<vmem>>, %arg13: memref<32x1xf32, #tpu.memory_space<vmem>>, %arg14: memref<1x32x128xf32, #tpu.memory_space<vmem>>) attributes {dimension_semantics = [#tpu.dimension_semantics<parallel>], iteration_bounds = array<i64: 2>, scalar_prefetch = 0 : i64, scratch_operands = 0 : i64, tpu.core_type = #tpu.core_type<tc>, window_params = [{transform_indices = @transform_0, window_bounds = array<i64: 1, 32, 128>}, {pipeline_mode = #tpu.pipeline_mode<synchronous>, transform_indices = @transform_1, window_bounds = array<i64: 128, 128>}, {pipeline_mode = #tpu.pipeline_mode<synchronous>, transform_indices = @transform_2, window_bounds = array<i64: 32, 1>}, {pipeline_mode = #tpu.pipeline_mode<synchronous>, transform_indices = @transform_3, window_bounds = array<i64: 32, 1>}, {pipeline_mode = #tpu.pipeline_mode<synchronous>, transform_indices = @transform_4, window_bounds = array<i64: 96, 32>}, {pipeline_mode = #tpu.pipeline_mode<synchronous>, transform_indices = @transform_5, window_bounds = array<i64: 32, 32>}, {pipeline_mode = #tpu.pipeline_mode<synchronous>, transform_indices = @transform_6, window_bounds = array<i64: 32, 1>}, {pipeline_mode = #tpu.pipeline_mode<synchronous>, transform_indices = @transform_7, window_bounds = array<i64: 32, 1>}, {pipeline_mode = #tpu.pipeline_mode<synchronous>, transform_indices = @transform_8, window_bounds = array<i64: 32, 1>}, {pipeline_mode = #tpu.pipeline_mode<synchronous>, transform_indices = @transform_9, window_bounds = array<i64: 128, 32>}, {pipeline_mode = #tpu.pipeline_mode<synchronous>, transform_indices = @transform_10, window_bounds = array<i64: 128, 1>}, {pipeline_mode = #tpu.pipeline_mode<synchronous>, transform_indices = @transform_11, window_bounds = array<i64: 32, 128>}, {pipeline_mode = #tpu.pipeline_mode<synchronous>, transform_indices = @transform_12, window_bounds = array<i64: 32, 1>}, {transform_indices = @transform_13, window_bounds = array<i64: 1, 32, 128>}]} {
    %c0 = arith.constant 0 : index
    %c0_0 = arith.constant 0 : index
    %c0_1 = arith.constant 0 : index
    %0 = vector.load %arg1[%c0, %c0_0, %c0_1] : memref<1x32x128xf32, #tpu.memory_space<vmem>>, vector<1x32x128xf32>
    %1 = vector.shape_cast %0 : vector<1x32x128xf32> to vector<32x128xf32>
    %c0_2 = arith.constant 0 : index
    %c0_3 = arith.constant 0 : index
    %2 = vector.load %arg3[%c0_2, %c0_3] : memref<32x1xf32, #tpu.memory_space<vmem>>, vector<32x1xf32>
    %c0_4 = arith.constant 0 : index
    %c0_5 = arith.constant 0 : index
    %3 = vector.load %arg4[%c0_4, %c0_5] : memref<32x1xf32, #tpu.memory_space<vmem>>, vector<32x1xf32>
    %cst = arith.constant dense<0.000000e+00> : vector<128xf32>
    %4 = vector.multi_reduction <add>, %1, %cst [0] : vector<32x128xf32> to vector<128xf32>
    %5 = vector.shape_cast %4 : vector<128xf32> to vector<1x128xf32>
    %cst_6 = arith.constant 3.200000e+01 : f32
    %6 = vector.broadcast %cst_6 : f32 to vector<1x128xf32>
    %7 = arith.divf %5, %6 : vector<1x128xf32>
    %8 = vector.broadcast %7 : vector<1x128xf32> to vector<32x128xf32>
    %9 = arith.subf %1, %8 : vector<32x128xf32>
    %10 = arith.mulf %9, %9 : vector<32x128xf32>
    %cst_7 = arith.constant dense<0.000000e+00> : vector<128xf32>
    %11 = vector.multi_reduction <add>, %10, %cst_7 [0] : vector<32x128xf32> to vector<128xf32>
    %12 = vector.shape_cast %11 : vector<128xf32> to vector<1x128xf32>
    %cst_8 = arith.constant 3.200000e+01 : f32
    %13 = vector.broadcast %cst_8 : f32 to vector<1x128xf32>
    %14 = arith.divf %12, %13 : vector<1x128xf32>
    %15 = vector.broadcast %7 : vector<1x128xf32> to vector<32x128xf32>
    %16 = arith.subf %1, %15 : vector<32x128xf32>
    %cst_9 = arith.constant 9.99999974E-6 : f32
    %17 = vector.broadcast %cst_9 : f32 to vector<1x128xf32>
    %18 = arith.addf %14, %17 : vector<1x128xf32>
    %19 = math.rsqrt %18 : vector<1x128xf32>
    %20 = vector.broadcast %19 : vector<1x128xf32> to vector<32x128xf32>
    %21 = arith.mulf %16, %20 : vector<32x128xf32>
    %22 = vector.broadcast %2 : vector<32x1xf32> to vector<32x128xf32>
    %23 = arith.mulf %21, %22 : vector<32x128xf32>
    %24 = vector.broadcast %3 : vector<32x1xf32> to vector<32x128xf32>
    %25 = arith.addf %23, %24 : vector<32x128xf32>
    %c0_10 = arith.constant 0 : index
    %c0_11 = arith.constant 0 : index
    %26 = vector.load %arg5[%c0_10, %c0_11] : memref<96x32xbf16, #tpu.memory_space<vmem>>, vector<96x32xbf16>
    %27 = arith.truncf %25 : vector<32x128xf32> to vector<32x128xbf16>
    %cst_12 = arith.constant dense<0.000000e+00> : vector<96x128xf32>
    %28 = tpu.matmul %26, %27, %cst_12 {dimension_numbers = #tpu.dot_dimension_numbers<[1], [0], [0], [1], [0, 0, 1, 1], [], []>} : vector<96x32xbf16>, vector<32x128xbf16>, vector<96x128xf32> -> vector<96x128xf32>
    %29 = vector.extract_strided_slice %28 {offsets = [0, 0], sizes = [32, 128], strides = [1, 1]} : vector<96x128xf32> to vector<32x128xf32>
    %30 = vector.shape_cast %29 : vector<32x128xf32> to vector<4x8x128xf32>
    %31 = arith.truncf %30 : vector<4x8x128xf32> to vector<4x8x128xbf16>
    %32 = vector.extract_strided_slice %28 {offsets = [32, 0], sizes = [32, 128], strides = [1, 1]} : vector<96x128xf32> to vector<32x128xf32>
    %33 = vector.shape_cast %32 : vector<32x128xf32> to vector<4x8x128xf32>
    %34 = arith.truncf %33 : vector<4x8x128xf32> to vector<4x8x128xbf16>
    %35 = vector.extract_strided_slice %28 {offsets = [64, 0], sizes = [32, 128], strides = [1, 1]} : vector<96x128xf32> to vector<32x128xf32>
    %36 = vector.shape_cast %35 : vector<32x128xf32> to vector<4x8x128xf32>
    %37 = arith.truncf %36 : vector<4x8x128xf32> to vector<4x8x128xbf16>
    %38 = tpu.transpose %31, [0, 2, 1] : vector<4x8x128xbf16> -> vector<4x128x8xbf16>
    %cst_13 = arith.constant dense<0.000000e+00> : vector<4x128x128xf32>
    %39 = tpu.matmul %38, %34, %cst_13 {dimension_numbers = #tpu.dot_dimension_numbers<[2], [1], [1], [2], [0, 0, 0, 1, 1, 2], [0], [0]>} : vector<4x128x8xbf16>, vector<4x8x128xbf16>, vector<4x128x128xf32> -> vector<4x128x128xf32>
    %cst_14 = arith.constant 0.353553385 : f32
    %40 = vector.broadcast %cst_14 : f32 to vector<4x128x128xf32>
    %41 = arith.mulf %39, %40 : vector<4x128x128xf32>
    %c0_15 = arith.constant 0 : index
    %c0_16 = arith.constant 0 : index
    %42 = vector.load %arg2[%c0_15, %c0_16] : memref<128x128xf32, #tpu.memory_space<vmem>>, vector<128x128xf32>
    %43 = vector.shape_cast %42 : vector<128x128xf32> to vector<1x128x128xf32>
    %44 = vector.broadcast %43 : vector<1x128x128xf32> to vector<4x128x128xf32>
    %45 = arith.addf %41, %44 : vector<4x128x128xf32>
    %cst_17 = arith.constant dense<0xFF800000> : vector<4x128xf32>
    %46 = vector.multi_reduction <maximumf>, %45, %cst_17 [2] : vector<4x128x128xf32> to vector<4x128xf32>
    %47 = vector.shape_cast %46 : vector<4x128xf32> to vector<4x128x1xf32>
    %48 = vector.broadcast %47 : vector<4x128x1xf32> to vector<4x128x128xf32>
    %49 = arith.subf %45, %48 : vector<4x128x128xf32>
    %50 = math.exp %49 : vector<4x128x128xf32>
    %cst_18 = arith.constant dense<0.000000e+00> : vector<4x128xf32>
    %51 = vector.multi_reduction <add>, %50, %cst_18 [2] : vector<4x128x128xf32> to vector<4x128xf32>
    %52 = vector.shape_cast %51 : vector<4x128xf32> to vector<4x128x1xf32>
    %53 = tpu.reciprocal %52 {approx = true} : vector<4x128x1xf32> -> vector<4x128x1xf32>
    %54 = vector.broadcast %53 : vector<4x128x1xf32> to vector<4x128x128xf32>
    %55 = arith.mulf %50, %54 : vector<4x128x128xf32>
    %56 = arith.truncf %55 : vector<4x128x128xf32> to vector<4x128x128xbf16>
    %cst_19 = arith.constant dense<0.000000e+00> : vector<4x8x128xf32>
    %57 = tpu.matmul %37, %56, %cst_19 {dimension_numbers = #tpu.dot_dimension_numbers<[2], [2], [1], [1], [0, 0, 0, 1, 1, 1], [0], [0]>} : vector<4x8x128xbf16>, vector<4x128x128xbf16>, vector<4x8x128xf32> -> vector<4x8x128xf32>
    %58 = vector.shape_cast %57 : vector<4x8x128xf32> to vector<32x128xf32>
    %c0_20 = arith.constant 0 : index
    %c0_21 = arith.constant 0 : index
    %59 = vector.load %arg6[%c0_20, %c0_21] : memref<32x32xbf16, #tpu.memory_space<vmem>>, vector<32x32xbf16>
    %60 = arith.truncf %58 : vector<32x128xf32> to vector<32x128xbf16>
    %cst_22 = arith.constant dense<0.000000e+00> : vector<32x128xf32>
    %61 = tpu.matmul %59, %60, %cst_22 {dimension_numbers = #tpu.dot_dimension_numbers<[1], [0], [0], [1], [0, 0, 1, 1], [], []>} : vector<32x32xbf16>, vector<32x128xbf16>, vector<32x128xf32> -> vector<32x128xf32>
    %c0_23 = arith.constant 0 : index
    %c0_24 = arith.constant 0 : index
    %62 = vector.load %arg7[%c0_23, %c0_24] : memref<32x1xf32, #tpu.memory_space<vmem>>, vector<32x1xf32>
    %63 = vector.broadcast %62 : vector<32x1xf32> to vector<32x128xf32>
    %64 = arith.addf %61, %63 : vector<32x128xf32>
    %65 = arith.addf %1, %64 : vector<32x128xf32>
    %c0_25 = arith.constant 0 : index
    %c0_26 = arith.constant 0 : index
    %66 = vector.load %arg8[%c0_25, %c0_26] : memref<32x1xf32, #tpu.memory_space<vmem>>, vector<32x1xf32>
    %c0_27 = arith.constant 0 : index
    %c0_28 = arith.constant 0 : index
    %67 = vector.load %arg9[%c0_27, %c0_28] : memref<32x1xf32, #tpu.memory_space<vmem>>, vector<32x1xf32>
    %cst_29 = arith.constant dense<0.000000e+00> : vector<128xf32>
    %68 = vector.multi_reduction <add>, %65, %cst_29 [0] : vector<32x128xf32> to vector<128xf32>
    %69 = vector.shape_cast %68 : vector<128xf32> to vector<1x128xf32>
    %cst_30 = arith.constant 3.200000e+01 : f32
    %70 = vector.broadcast %cst_30 : f32 to vector<1x128xf32>
    %71 = arith.divf %69, %70 : vector<1x128xf32>
    %72 = vector.broadcast %71 : vector<1x128xf32> to vector<32x128xf32>
    %73 = arith.subf %65, %72 : vector<32x128xf32>
    %74 = arith.mulf %73, %73 : vector<32x128xf32>
    %cst_31 = arith.constant dense<0.000000e+00> : vector<128xf32>
    %75 = vector.multi_reduction <add>, %74, %cst_31 [0] : vector<32x128xf32> to vector<128xf32>
    %76 = vector.shape_cast %75 : vector<128xf32> to vector<1x128xf32>
    %cst_32 = arith.constant 3.200000e+01 : f32
    %77 = vector.broadcast %cst_32 : f32 to vector<1x128xf32>
    %78 = arith.divf %76, %77 : vector<1x128xf32>
    %79 = vector.broadcast %71 : vector<1x128xf32> to vector<32x128xf32>
    %80 = arith.subf %65, %79 : vector<32x128xf32>
    %cst_33 = arith.constant 9.99999974E-6 : f32
    %81 = vector.broadcast %cst_33 : f32 to vector<1x128xf32>
    %82 = arith.addf %78, %81 : vector<1x128xf32>
    %83 = math.rsqrt %82 : vector<1x128xf32>
    %84 = vector.broadcast %83 : vector<1x128xf32> to vector<32x128xf32>
    %85 = arith.mulf %80, %84 : vector<32x128xf32>
    %86 = vector.broadcast %66 : vector<32x1xf32> to vector<32x128xf32>
    %87 = arith.mulf %85, %86 : vector<32x128xf32>
    %88 = vector.broadcast %67 : vector<32x1xf32> to vector<32x128xf32>
    %89 = arith.addf %87, %88 : vector<32x128xf32>
    %c0_34 = arith.constant 0 : index
    %c0_35 = arith.constant 0 : index
    %90 = vector.load %arg10[%c0_34, %c0_35] : memref<128x32xbf16, #tpu.memory_space<vmem>>, vector<128x32xbf16>
    %91 = arith.truncf %89 : vector<32x128xf32> to vector<32x128xbf16>
    %cst_36 = arith.constant dense<0.000000e+00> : vector<128x128xf32>
    %92 = tpu.matmul %90, %91, %cst_36 {dimension_numbers = #tpu.dot_dimension_numbers<[1], [0], [0], [1], [0, 0, 1, 1], [], []>} : vector<128x32xbf16>, vector<32x128xbf16>, vector<128x128xf32> -> vector<128x128xf32>
    %c0_37 = arith.constant 0 : index
    %c0_38 = arith.constant 0 : index
    %93 = vector.load %arg11[%c0_37, %c0_38] : memref<128x1xf32, #tpu.memory_space<vmem>>, vector<128x1xf32>
    %94 = vector.broadcast %93 : vector<128x1xf32> to vector<128x128xf32>
    %95 = arith.addf %92, %94 : vector<128x128xf32>
    %cst_39 = arith.constant 5.000000e-01 : f32
    %96 = vector.broadcast %cst_39 : f32 to vector<128x128xf32>
    %97 = arith.mulf %96, %95 : vector<128x128xf32>
    %cst_40 = arith.constant 0.707106769 : f32
    %98 = vector.broadcast %cst_40 : f32 to vector<128x128xf32>
    %99 = arith.mulf %95, %98 : vector<128x128xf32>
    %cst_41 = arith.constant 0.000000e+00 : f32
    %100 = vector.broadcast %cst_41 : f32 to vector<128x128xf32>
    %101 = arith.cmpf oge, %99, %100 : vector<128x128xf32>
    %cst_42 = arith.constant 1.000000e+00 : f32
    %cst_43 = arith.constant -1.000000e+00 : f32
    %102 = vector.broadcast %cst_42 : f32 to vector<128x128xf32>
    %103 = vector.broadcast %cst_43 : f32 to vector<128x128xf32>
    %104 = arith.select %101, %102, %103 : vector<128x128xi1>, vector<128x128xf32>
    %105 = math.absf %99 : vector<128x128xf32>
    %cst_44 = arith.constant 0.327591091 : f32
    %106 = vector.broadcast %cst_44 : f32 to vector<128x128xf32>
    %107 = arith.mulf %106, %105 : vector<128x128xf32>
    %cst_45 = arith.constant 1.000000e+00 : f32
    %108 = vector.broadcast %cst_45 : f32 to vector<128x128xf32>
    %109 = arith.addf %108, %107 : vector<128x128xf32>
    %cst_46 = arith.constant 1.000000e+00 : f32
    %110 = vector.broadcast %cst_46 : f32 to vector<128x128xf32>
    %111 = arith.divf %110, %109 : vector<128x128xf32>
    %cst_47 = arith.constant 1.06140542 : f32
    %112 = vector.broadcast %cst_47 : f32 to vector<128x128xf32>
    %113 = arith.mulf %112, %111 : vector<128x128xf32>
    %cst_48 = arith.constant -1.45315206 : f32
    %114 = vector.broadcast %cst_48 : f32 to vector<128x128xf32>
    %115 = arith.addf %113, %114 : vector<128x128xf32>
    %116 = arith.mulf %115, %111 : vector<128x128xf32>
    %cst_49 = arith.constant 1.42141378 : f32
    %117 = vector.broadcast %cst_49 : f32 to vector<128x128xf32>
    %118 = arith.addf %116, %117 : vector<128x128xf32>
    %119 = arith.mulf %118, %111 : vector<128x128xf32>
    %cst_50 = arith.constant -0.284496725 : f32
    %120 = vector.broadcast %cst_50 : f32 to vector<128x128xf32>
    %121 = arith.addf %119, %120 : vector<128x128xf32>
    %122 = arith.mulf %121, %111 : vector<128x128xf32>
    %cst_51 = arith.constant 0.254829586 : f32
    %123 = vector.broadcast %cst_51 : f32 to vector<128x128xf32>
    %124 = arith.addf %122, %123 : vector<128x128xf32>
    %125 = arith.mulf %124, %111 : vector<128x128xf32>
    %cst_52 = arith.constant 0.000000e+00 : f32
    %126 = vector.broadcast %cst_52 : f32 to vector<128x128xf32>
    %127 = arith.subf %126, %105 : vector<128x128xf32>
    %128 = arith.mulf %127, %105 : vector<128x128xf32>
    %129 = math.exp %128 : vector<128x128xf32>
    %130 = arith.mulf %125, %129 : vector<128x128xf32>
    %cst_53 = arith.constant 1.000000e+00 : f32
    %131 = vector.broadcast %cst_53 : f32 to vector<128x128xf32>
    %132 = arith.subf %131, %130 : vector<128x128xf32>
    %133 = arith.mulf %104, %132 : vector<128x128xf32>
    %cst_54 = arith.constant 1.000000e+00 : f32
    %134 = vector.broadcast %cst_54 : f32 to vector<128x128xf32>
    %135 = arith.addf %134, %133 : vector<128x128xf32>
    %136 = arith.mulf %97, %135 : vector<128x128xf32>
    %c0_55 = arith.constant 0 : index
    %c0_56 = arith.constant 0 : index
    %137 = vector.load %arg12[%c0_55, %c0_56] : memref<32x128xbf16, #tpu.memory_space<vmem>>, vector<32x128xbf16>
    %138 = arith.truncf %136 : vector<128x128xf32> to vector<128x128xbf16>
    %cst_57 = arith.constant dense<0.000000e+00> : vector<32x128xf32>
    %139 = tpu.matmul %137, %138, %cst_57 {dimension_numbers = #tpu.dot_dimension_numbers<[1], [0], [0], [1], [0, 0, 1, 1], [], []>} : vector<32x128xbf16>, vector<128x128xbf16>, vector<32x128xf32> -> vector<32x128xf32>
    %c0_58 = arith.constant 0 : index
    %c0_59 = arith.constant 0 : index
    %140 = vector.load %arg13[%c0_58, %c0_59] : memref<32x1xf32, #tpu.memory_space<vmem>>, vector<32x1xf32>
    %141 = vector.broadcast %140 : vector<32x1xf32> to vector<32x128xf32>
    %142 = arith.addf %139, %141 : vector<32x128xf32>
    %143 = arith.addf %65, %142 : vector<32x128xf32>
    %c0_60 = arith.constant 0 : index
    %c0_61 = arith.constant 0 : index
    %c0_62 = arith.constant 0 : index
    %144 = vector.load %arg14[%c0_60, %c0_61, %c0_62] : memref<1x32x128xf32, #tpu.memory_space<vmem>>, vector<1x32x128xf32>
    %145 = vector.shape_cast %144 : vector<1x32x128xf32> to vector<32x128xf32>
    %146 = vector.shape_cast %143 : vector<32x128xf32> to vector<1x32x128xf32>
    tpu.vector_store %arg14[%c0_60, %c0_61, %c0_62], %146 {strides = array<i32>} : memref<1x32x128xf32, #tpu.memory_space<vmem>>, vector<1x32x128xf32>,
    return
  }
  func.func @transform_0(%arg0: i32) -> (i32, i32, i32) {
    %c0_i32 = arith.constant 0 : i32
    %c0_i32_0 = arith.constant 0 : i32
    %c0_i32_1 = arith.constant 0 : i32
    return %arg0, %c0_i32, %c0_i32_0 : i32, i32, i32
  }
  func.func @transform_1(%arg0: i32) -> (i32, i32) {
    %c0_i32 = arith.constant 0 : i32
    %c0_i32_0 = arith.constant 0 : i32
    %c0_i32_1 = arith.constant 0 : i32
    return %c0_i32, %c0_i32_0 : i32, i32
  }
  func.func @transform_2(%arg0: i32) -> (i32, i32) {
    %c0_i32 = arith.constant 0 : i32
    %c0_i32_0 = arith.constant 0 : i32
    %c0_i32_1 = arith.constant 0 : i32
    return %c0_i32, %c0_i32_0 : i32, i32
  }
  func.func @transform_3(%arg0: i32) -> (i32, i32) {
    %c0_i32 = arith.constant 0 : i32
    %c0_i32_0 = arith.constant 0 : i32
    %c0_i32_1 = arith.constant 0 : i32
    return %c0_i32, %c0_i32_0 : i32, i32
  }
  func.func @transform_4(%arg0: i32) -> (i32, i32) {
    %c0_i32 = arith.constant 0 : i32
    %c0_i32_0 = arith.constant 0 : i32
    %c0_i32_1 = arith.constant 0 : i32
    return %c0_i32, %c0_i32_0 : i32, i32
  }
  func.func @transform_5(%arg0: i32) -> (i32, i32) {
    %c0_i32 = arith.constant 0 : i32
    %c0_i32_0 = arith.constant 0 : i32
    %c0_i32_1 = arith.constant 0 : i32
    return %c0_i32, %c0_i32_0 : i32, i32
  }
  func.func @transform_6(%arg0: i32) -> (i32, i32) {
    %c0_i32 = arith.constant 0 : i32
    %c0_i32_0 = arith.constant 0 : i32
    %c0_i32_1 = arith.constant 0 : i32
    return %c0_i32, %c0_i32_0 : i32, i32
  }
  func.func @transform_7(%arg0: i32) -> (i32, i32) {
    %c0_i32 = arith.constant 0 : i32
    %c0_i32_0 = arith.constant 0 : i32
    %c0_i32_1 = arith.constant 0 : i32
    return %c0_i32, %c0_i32_0 : i32, i32
  }
  func.func @transform_8(%arg0: i32) -> (i32, i32) {
    %c0_i32 = arith.constant 0 : i32
    %c0_i32_0 = arith.constant 0 : i32
    %c0_i32_1 = arith.constant 0 : i32
    return %c0_i32, %c0_i32_0 : i32, i32
  }
  func.func @transform_9(%arg0: i32) -> (i32, i32) {
    %c0_i32 = arith.constant 0 : i32
    %c0_i32_0 = arith.constant 0 : i32
    %c0_i32_1 = arith.constant 0 : i32
    return %c0_i32, %c0_i32_0 : i32, i32
  }
  func.func @transform_10(%arg0: i32) -> (i32, i32) {
    %c0_i32 = arith.constant 0 : i32
    %c0_i32_0 = arith.constant 0 : i32
    %c0_i32_1 = arith.constant 0 : i32
    return %c0_i32, %c0_i32_0 : i32, i32
  }
  func.func @transform_11(%arg0: i32) -> (i32, i32) {
    %c0_i32 = arith.constant 0 : i32
    %c0_i32_0 = arith.constant 0 : i32
    %c0_i32_1 = arith.constant 0 : i32
    return %c0_i32, %c0_i32_0 : i32, i32
  }
  func.func @transform_12(%arg0: i32) -> (i32, i32) {
    %c0_i32 = arith.constant 0 : i32
    %c0_i32_0 = arith.constant 0 : i32
    %c0_i32_1 = arith.constant 0 : i32
    return %c0_i32, %c0_i32_0 : i32, i32
  }
  func.func @transform_13(%arg0: i32) -> (i32, i32, i32) {
    %c0_i32 = arith.constant 0 : i32
    %c0_i32_0 = arith.constant 0 : i32
    %c0_i32_1 = arith.constant 0 : i32
    return %arg0, %c0_i32, %c0_i32_0 : i32, i32, i32
  }
}

</mosaic_0001>

<bundles_post_ra>
// kernel: self_attention_forward.1
= control target key start
LH: loop header
LB: loop body
LE: loop exit
PB: predicated region body
PF: predicated region fallthrough
CT: control target
= control target key end

     0   :  { %s3841_s25 = smov 0   ;;  %s5761_s0 = inlined_call_operand.vmem [shape: f32[2,32,128], index: 0, kind: input, shape index: {}]   ;;  %s5762_s1 = inlined_call_operand.vmem [shape: f32[128,128], index: 1, kind: input, shape index: {}]   ;;  %s5763_s2 = inlined_call_operand.vmem [shape: f32[32,1], index: 2, kind: input, shape index: {}]   ;;  %s5764_s3 = inlined_call_operand.vmem [shape: f32[32,1], index: 3, kind: input, shape index: {}]   ;;  %s5765_s4 = inlined_call_operand.vmem [shape: bf16[96,32], index: 4, kind: input, shape index: {}]   ;;  %s5766_s5 = inlined_call_operand.vmem [shape: bf16[32,32], index: 5, kind: input, shape index: {}]   ;;  %s5767_s6 = inlined_call_operand.vmem [shape: f32[32,1], index: 6, kind: input, shape index: {}]   ;;  %s5768_s7 = inlined_call_operand.vmem [shape: f32[32,1], index: 7, kind: input, shape index: {}]   ;;  %s5769_s8 = inlined_call_operand.vmem [shape: f32[32,1], index: 8, kind: input, shape index: {}]   ;;  %s5770_s9 = inlined_call_operand.vmem [shape: bf16[128,32], index: 9, kind: input, shape index: {}]   ;;  %s5771_s10 = inlined_call_operand.vmem [shape: f32[128,1], index: 10, kind: input, shape index: {}]   ;;  %s5772_s11 = inlined_call_operand.vmem [shape: bf16[32,128], index: 11, kind: input, shape index: {}]   ;;  %s5773_s12 = inlined_call_operand.vmem [shape: f32[32,1], index: 12, kind: input, shape index: {}]   ;;  %s5774_s13 = inlined_call_operand.vmem [shape: f32[2,32,128], index: 13, kind: output, shape index: {}]  }
   0x1 LB: > { %s3229_s26 = sadd.s32 4294967295, %s3766_s25   ;;  %p3233_p0 = scmp.ge.s32.totalorder %s3766_s25, 1  ;;  %s3766_s25 = sphi %s3841_s25, %s23_s25  }
   0x2   : > { %p387_p1 = scmp.lt.s32.totalorder %s3766_s25, 3 }
   0x4   : > { %p388_p2 = pnand %p3233_p0, %p387_p1 }
   0x6   : > { %391 = sbr.rel (%p388_p2) target bundleno = 2122 (0x84a), region = 72 }
   0xb   : > { %v452_v0 = vld [vmem:[%s5764_s3 + $0x10] sm:$0xff]  ;;  %v3768_v2 = vmov 0   ;;  %v446_v3 = vld [vmem:[%s5763_s2] sm:$0xff]  ;;  %p431_p3 = scmp.lt.s32.totalorder %s3229_s26, 1  ;;  %v453_v4 = vld [vmem:[%s5764_s3 + $0x18] sm:$0xff]  ;;  %v3769_v7 = vmov 32.0  }
   0xc   : > { %v448_v1 = vld [vmem:[%s5763_s2 + $0x10] sm:$0xff]  ;;  %3394 = vset.pattern.permute.xlu1 %v3768_v2  ;;  %3393 = vset.pattern.permute.xlu0 %v3768_v2  ;;  %v449_v5 = vld [vmem:[%s5763_s2 + $0x18] sm:$0xff]  ;;  %v447_v6 = vld [vmem:[%s5763_s2 + $0x8] sm:$0xff]  ;;  %3430 = vrcp.f32 %v3769_v7  ;;  %vm596_vm4 = vcmask 261120   ;;  %vm755_vm5 = vcmask 1043456   ;;  %vm730_vm6 = vcmask 64512  }
   0xd   : > { %540 = vperm.xlu1 %3394, %v452_v0   ;;  %516 = vperm.xlu0 %3393, %v448_v1   ;;  %s6065_s26 = smov (!%p431_p3, %s3229_s26), 1  ;;  %v451_v9 = vld [vmem:[%s5764_s3 + $0x8] sm:$0xff]  ;;  %v450_v10 = vld [vmem:[%s5764_s3] sm:$0xff] }
   0xe   : > { %3395 = vset.pattern.permute.xlu2 %v3768_v2  ;;  %s3360_s22 = sshll.u32 %s6065_s26, 5 }
   0xf   : > { %506 = vperm.xlu2 %3395, %v446_v3   ;;  %s3881_s14 = scalar_lea.vmem %s5761_s0, %s3360_s22  ;;  %s440_s17 = scalar_lea.vmem %s5774_s13, %s3360_s22 }
  0x10   : > { %v442_v12 = vld [vmem:[%s3881_s14] sm:$0xff]  ;;  %v443_v13 = vld [vmem:[%s3881_s14 + $0x8] sm:$0xff]  ;;  %v444_v15 = vld [vmem:[%s3881_s14 + $0x10] sm:$0xff] }
  0x11   : > { %v454_v14 = vadd.f32 %v443_v13, %v442_v12  ;;  %v445_v18 = vld [vmem:[%s3881_s14 + $0x18] sm:$0xff] }
  0x12   : > { %v3431_v8 = vpop.eup %3430 }
  0x13   : > { %v464_v11 = vmul.f32 32.0, %v3431_v8  ;;  %v455_v16 = vadd.f32 %v454_v14, %v444_v15  ;;  %vm468_vm0 = vweird.f32 %v3431_v8  ;;  %v3362_v14 = vld [vmem:[%s5765_s4] sm:$0xff] }
  0x15   : > { %545 = vperm.xlu1 %3394, %v453_v4   ;;  %521 = vperm.xlu0 %3393, %v449_v5   ;;  %v465_v17 = vsub.f32 1.0, %v464_v11  ;;  %v456_v19 = vadd.f32 %v455_v16, %v445_v18  ;;  %v3364_v16 = vld [vmem:[%s5765_s4 + $0x10] sm:$0xff] }
  0x17   : > { %511 = vperm.xlu2 %3395, %v447_v6   ;;  %v457_v20 = vrot.slane %v456_v19, 4  ;;  %v466_v21 = vmul.f32 %v3431_v8, %v465_v17  ;;  %v3365_v17 = vld [vmem:[%s5765_s4 + $0x18] sm:$0xff] }
  0x19   : > { %v458_v22 = vadd.f32 %v457_v20, %v456_v19  ;;  %v467_v24 = vadd.f32 %v3431_v8, %v466_v21 }
  0x1b   : > { %v459_v23 = vrot.slane %v458_v22, 2  ;;  %v3887_v27 = vsel %vm468_vm0, %v3431_v8, %v467_v24 }
  0x1c   : > { %5843 = vst [vmem:[#allocation2_spill] sm:$0xff] %v3887_v27 }
  0x1d   : > { %535 = vperm.xlu1 %3394, %v451_v9   ;;  %530 = vperm.xlu0 %3393, %v450_v10   ;;  %v460_v25 = vadd.f32 %v459_v23, %v458_v22 }
  0x1f   : > { %v461_v26 = vrot.slane %v460_v25, 1 }
  0x21   : > { %v462_v28 = vadd.f32 %v461_v26, %v460_v25  ;;  %v3366_v26 = vld [vmem:[%s5765_s4 + $0x20] sm:$0xff] }
  0x23   : > { %v470_v29 = vmul.f32 %v3887_v27, %v462_v28 }
  0x25   : > { %v471_v30 = vsub.f32 %v442_v12, %v470_v29  ;;  %v472_v31 = vsub.f32 %v443_v13, %v470_v29  ;;  %v473_v32 = vsub.f32 %v444_v15, %v470_v29  ;;  %v474_v35 = vsub.f32 %v445_v18, %v470_v29  ;;  %v3363_v15 = vld [vmem:[%s5765_s4 + $0x8] sm:$0xff] }
  0x27   : > { %v475_v33 = vmul.f32 %v471_v30, %v471_v30  ;;  %v476_v34 = vmul.f32 %v472_v31, %v472_v31  ;;  %v477_v36 = vmul.f32 %v473_v32, %v473_v32  ;;  %v478_v38 = vmul.f32 %v474_v35, %v474_v35 }
  0x29   : > { %v479_v37 = vadd.f32 %v476_v34, %v475_v33 }
  0x2b   : > { %v480_v39 = vadd.f32 %v479_v37, %v477_v36 }
  0x2d   : > { %v481_v40 = vadd.f32 %v480_v39, %v478_v38 }
  0x2f   : > { %v482_v41 = vrot.slane %v481_v40, 4 }
  0x31   : > { %v483_v42 = vadd.f32 %v482_v41, %v481_v40  ;;  %v3367_v40 = vld [vmem:[%s5765_s4 + $0x28] sm:$0xff] }
  0x33   : > { %v484_v43 = vrot.slane %v483_v42, 2 }
  0x35   : > { %v485_v44 = vadd.f32 %v484_v43, %v483_v42 }
  0x37   : > { %v486_v45 = vrot.slane %v485_v44, 1 }
  0x39   : > { %v487_v46 = vadd.f32 %v486_v45, %v485_v44 }
  0x3b   : > { %v488_v47 = vmul.f32 %v487_v46, %v3887_v27 }
  0x3d   : > { %v489_v48 = vadd.f32 1e-05, %v488_v47 }
  0x3f   : > { %3432 = vrsqrt.f32 %v489_v48  ;;  %vm496_vm1 = vweird.f32 %v489_v48 }
  0x45   : > { %v3433_v49 = vpop.eup %3432 }
  0x46   : > { %v491_v50 = vmul.f32 %v3433_v49, %v489_v48  ;;  %vm497_vm2 = vweird.f32 %v3433_v49 }
  0x47   : > { %vm498_vm3 = vmor %vm496_vm1, %vm497_vm2 }
  0x48   : > { %v492_v51 = vmul.f32 %v3433_v49, %v491_v50 }
  0x4a   : > { %v493_v52 = vmul.f32 0.5, %v492_v51 }
  0x4c   : > { %v494_v53 = vsub.f32 1.5, %v493_v52 }
  0x4e   : > { %v495_v54 = vmul.f32 %v3433_v49, %v494_v53 }
  0x50   : > { %v499_v55 = vsel %vm498_vm3, %v3433_v49, %v495_v54 }
  0x51   : > { %v502_v59 = vmul.f32 %v499_v55, %v473_v32  ;;  %v503_v60 = vmul.f32 %v499_v55, %v474_v35  ;;  %v500_v1 = vmul.f32 %v499_v55, %v471_v30  ;;  %v501_v2 = vmul.f32 %v499_v55, %v472_v31 }
  0x69   : > { %v507_v58 = vpop.permute.xlu2 %506 }
  0x6a   : > { %v524_v7 = vmul.f32 %v507_v58, %v500_v1 }
  0x71   : > { %v512_v5 = vpop.permute.xlu2 %511 }
  0x72   : > { %v525_v8 = vmul.f32 %v512_v5, %v501_v2 }
  0x7f   : > { %v541_v56 = vpop.permute.xlu1 %540  ;;  %v517_v57 = vpop.permute.xlu0 %516 }
  0x80   : > { %v526_v61 = vmul.f32 %v517_v57, %v502_v59 }
  0x82   : > { %v550_v3 = vadd.f32 %v541_v56, %v526_v61 }
  0x87   : > { %v546_v62 = vpop.permute.xlu1 %545  ;;  %v522_v63 = vpop.permute.xlu0 %521 }
  0x88   : > { %v527_v0 = vmul.f32 %v522_v63, %v503_v60 }
  0x8a   : > { %v551_v4 = vadd.f32 %v546_v62, %v527_v0 }
  0x8c   : > { %v565_v6 = vpack.c.bf16 %v551_v4, %v550_v3 }
  0x8e   : > { %621 = vmatpush.bf16.msra.mxu0 %v565_v6  ;;  %v1100_v6 = vld [vmem:[%s5762_s1] sm:$0xff] }
  0x8f   : > { %v536_v9 = vpop.permute.xlu1 %535  ;;  %v531_v10 = vpop.permute.xlu0 %530 }
  0x90   : > { %v549_v11 = vadd.f32 %v536_v9, %v525_v8  ;;  %v548_v12 = vadd.f32 %v531_v10, %v524_v7  ;;  %v1101_v10 = vld [vmem:[%s5762_s1 + $0x8] sm:$0xff] }
  0x92   : > { %v564_v13 = vpack.c.bf16 %v549_v11, %v548_v12 }
  0x94   : > { %622 = vmatpush.bf16.msra.mxu0 %v564_v13 }
  0x97   : > { %3262 = vmatmul.msk.bf16.vlgmr.msra.gmra.mxu0 %vm596_vm4, %v3362_v14 }
  0xa7   : > { %3263 = vmatmul.msk.bf16.gmra.mxu0 %vm596_vm4, %v3363_v15 }
  0xb7   : > { %3264 = vmatmul.msk.bf16.gmra.mxu0 %vm596_vm4, %v3364_v16 }
  0xc7   : > { %3265 = vmatmul.msk.bf16.gmra.mxu0 %vm596_vm4, %v3365_v17  ;;  %v3962_v17 = vld [vmem:[%s5762_s1 + $0x10] sm:$0xff] }
  0xd7   : > { %3266 = vmatmul.msk.bf16.gmra.mxu0 %vm596_vm4, %v3366_v26 }
  0xe7   : > { %3267 = vmatmul.msk.bf16.gmra.mxu0 %vm596_vm4, %v3367_v40 }
 0x114   : > { %v624_v18 = vpop.f32.mrf.mxu0 }
 0x115   : > { %v654_v21 = vpack.c.bf16 %v624_v18, %v624_v18 }
 0x11c   : > { %v626_v19 = vpop.f32.mrf.mxu0 }
 0x11d   : > { %v655_v24 = vpack.c.bf16 %v626_v19, %v626_v19 }
 0x124   : > { %v629_v20 = vpop.f32.mrf.mxu0 }
 0x125   : > { %v656_v22 = vpack.c.bf16 %v629_v20, %v629_v20 }
 0x127   : > { %3396 = vxpose.binary.xlu2.c.b16.start.end [1/2] (short) %v656_v22, %v654_v21, 128 }
 0x12c   : > { %v631_v23 = vpop.f32.mrf.mxu0 }
 0x12d   : > { %v657_v25 = vpack.c.bf16 %v631_v23, %v631_v23 }
 0x12f   : > { %3413 = vxpose.binary.xlu0.c.b16.start.end [1/2] (short) %v657_v25, %v655_v24, 128 }
 0x134   : > { %v634_v28 = vpop.f32.mrf.mxu0 }
 0x135   : > { %v658_v29 = vpack.c.bf16 %v634_v28, %v634_v28 }
 0x137   : > { %v757_v30 = vsel %vm755_vm5, %v658_v29, 0 }
 0x138   : > { %766 = vmatpush.bf16.msra.mxu1 %v757_v30 }
 0x13c   : > { %v636_v31 = vpop.f32.mrf.mxu0 }
 0x13d   : > { %v659_v32 = vpack.c.bf16 %v636_v31, %v636_v31 }
 0x13f   : > { %v833_v33 = vsel %vm755_vm5, %v659_v32, 0 }
 0x140   : > { %842 = vmatpush.bf16.msra.mxu2 %v833_v33 }
 0x144   : > { %v639_v34 = vpop.f32.mrf.mxu0 }
 0x145   : > { %v660_v35 = vpack.c.bf16 %v639_v34, %v639_v34  ;;  %v3982_v34 = vld [vmem:[%s5762_s1 + $0x18] sm:$0xff] }
 0x147   : > { %v909_v36 = vsel %vm755_vm5, %v660_v35, 0 }
 0x148   : > { %918 = vmatpush.bf16.msra.mxu3 %v909_v36 }
 0x14c   : > { %v641_v37 = vpop.f32.mrf.mxu0 }
 0x14d   : > { %v661_v38 = vpack.c.bf16 %v641_v37, %v641_v37 }
 0x14f   : > { %v985_v39 = vsel %vm755_vm5, %v661_v38, 0 }
 0x150   : > { %994 = vmatpush.bf16.msrb.mxu0 %v985_v39 }
 0x154   : > { %v3940_v2 = vpop.f32.mrf.mxu0 }
 0x155   : > { %5844 = vst [vmem:[#allocation3_spill] sm:$0xff] %v3940_v2 }
 0x15c   : > { %v3943_v4 = vpop.f32.mrf.mxu0 }
 0x15d   : > { %5845 = vst [vmem:[#allocation4_spill] sm:$0xff] %v3943_v4 }
 0x164   : > { %v3954_v12 = vpop.f32.mrf.mxu0 }
 0x165   : > { %5847 = vst [vmem:[#allocation6_spill] sm:$0xff] %v3954_v12 }
 0x16c   : > { %v3966_v20 = vpop.f32.mrf.mxu0 }
 0x16d   : > { %5850 = vst [vmem:[#allocation9_spill] sm:$0xff] %v3966_v20 }
 0x1c8   : > { %v3397_v41 = vpop.trf.xlu2 }
 0x1c9   : > { %3268 = vmatmul.msk.bf16.vlgmr.msra.gmra.mxu1 %vm730_vm6, %v3397_v41 }
 0x1d0   : > { %v3398_v42 = vpop.trf.xlu2 }
 0x1d1   : > { %3284 = vmatmul.msk.bf16.vlgmr.msra.gmra.mxu3 %vm730_vm6, %v3398_v42 }
 0x1d8   : > { %v3399_v43 = vpop.trf.xlu2 }
 0x1d9   : > { %3269 = vmatmul.msk.bf16.gmra.mxu1 %vm730_vm6, %v3399_v43  ;;  %v3997_v43 = vld [vmem:[%s5762_s1 + $0x20] sm:$0xff] }
 0x1db   : > { %v3414_v44 = vpop.trf.xlu0 }
 0x1dc   : > { %3276 = vmatmul.msk.bf16.vlgmr.msra.gmra.mxu2 %vm730_vm6, %v3414_v44 }
 0x1e0   : > { %v3400_v45 = vpop.trf.xlu2 }
 0x1e1   : > { %3285 = vmatmul.msk.bf16.gmra.mxu3 %vm730_vm6, %v3400_v45 }
 0x1e3   : > { %v3415_v46 = vpop.trf.xlu0 }
 0x1e4   : > { %3292 = vmatmul.msk.bf16.vlgmr.msrb.gmra.mxu0 %vm730_vm6, %v3415_v46 }
 0x1e8   : > { %v3401_v47 = vpop.trf.xlu2 }
 0x1e9   : > { %3270 = vmatmul.msk.bf16.gmra.mxu1 %vm730_vm6, %v3401_v47 }
 0x1eb   : > { %v3416_v48 = vpop.trf.xlu0 }
 0x1ec   : > { %3277 = vmatmul.msk.bf16.gmra.mxu2 %vm730_vm6, %v3416_v48 }
 0x1f0   : > { %v3402_v49 = vpop.trf.xlu2 }
 0x1f1   : > { %3286 = vmatmul.msk.bf16.gmra.mxu3 %vm730_vm6, %v3402_v49 }
 0x1f3   : > { %v3417_v50 = vpop.trf.xlu0 }
 0x1f4   : > { %3293 = vmatmul.msk.bf16.gmra.mxu0 %vm730_vm6, %v3417_v50 }
 0x1f8   : > { %v3403_v51 = vpop.trf.xlu2 }
 0x1f9   : > { %3271 = vmatmul.msk.bf16.gmra.mxu1 %vm730_vm6, %v3403_v51 }
 0x1fb   : > { %v3418_v52 = vpop.trf.xlu0 }
 0x1fc   : > { %3278 = vmatmul.msk.bf16.gmra.mxu2 %vm730_vm6, %v3418_v52 }
 0x200   : > { %v3404_v53 = vpop.trf.xlu2 }
 0x201   : > { %3287 = vmatmul.msk.bf16.gmra.mxu3 %vm730_vm6, %v3404_v53 }
 0x203   : > { %v3419_v54 = vpop.trf.xlu0 }
 0x204   : > { %3294 = vmatmul.msk.bf16.gmra.mxu0 %vm730_vm6, %v3419_v54 }
 0x208   : > { %v3405_v55 = vpop.trf.xlu2 }
 0x209   : > { %3272 = vmatmul.msk.bf16.gmra.mxu1 %vm730_vm6, %v3405_v55 }
 0x20b   : > { %v3420_v56 = vpop.trf.xlu0 }
 0x20c   : > { %3279 = vmatmul.msk.bf16.gmra.mxu2 %vm730_vm6, %v3420_v56 }
 0x210   : > { %v3406_v57 = vpop.trf.xlu2 }
 0x211   : > { %3288 = vmatmul.msk.bf16.gmra.mxu3 %vm730_vm6, %v3406_v57 }
 0x213   : > { %v3421_v58 = vpop.trf.xlu0 }
 0x214   : > { %3295 = vmatmul.msk.bf16.gmra.mxu0 %vm730_vm6, %v3421_v58 }
 0x218   : > { %v3407_v59 = vpop.trf.xlu2 }
 0x219   : > { %3273 = vmatmul.msk.bf16.gmra.mxu1 %vm730_vm6, %v3407_v59 }
 0x21b   : > { %v3422_v60 = vpop.trf.xlu0 }
 0x21c   : > { %3280 = vmatmul.msk.bf16.gmra.mxu2 %vm730_vm6, %v3422_v60 }
 0x220   : > { %v3408_v61 = vpop.trf.xlu2 }
 0x221   : > { %3289 = vmatmul.msk.bf16.gmra.mxu3 %vm730_vm6, %v3408_v61 }
 0x223   : > { %v3423_v62 = vpop.trf.xlu0 }
 0x224   : > { %3296 = vmatmul.msk.bf16.gmra.mxu0 %vm730_vm6, %v3423_v62 }
 0x228   : > { %v3409_v63 = vpop.trf.xlu2 }
 0x229   : > { %3274 = vmatmul.msk.bf16.gmra.mxu1 %vm730_vm6, %v3409_v63 }
 0x22b   : > { %v3424_v3 = vpop.trf.xlu0 }
 0x22c   : > { %3281 = vmatmul.msk.bf16.gmra.mxu2 %vm730_vm6, %v3424_v3 }
 0x230   : > { %v3410_v0 = vpop.trf.xlu2 }
 0x231   : > { %3290 = vmatmul.msk.bf16.gmra.mxu3 %vm730_vm6, %v3410_v0 }
 0x233   : > { %v3425_v37 = vpop.trf.xlu0 }
 0x234   : > { %3297 = vmatmul.msk.bf16.gmra.mxu0 %vm730_vm6, %v3425_v37 }
 0x238   : > { %v3411_v1 = vpop.trf.xlu2 }
 0x239   : > { %3275 = vmatmul.msk.bf16.gmra.mxu1 %vm730_vm6, %v3411_v1 }
 0x23b   : > { %v3426_v48 = vpop.trf.xlu0 }
 0x23c   : > { %3282 = vmatmul.msk.bf16.gmra.mxu2 %vm730_vm6, %v3426_v48 }
 0x246   : > { %v768_v5 = vpop.f32.mrf.mxu1 }
 0x247   : > { %v1036_v7 = vmul.f32 0.35355338, %v768_v5  ;;  %v1105_v5 = vld [vmem:[%s5762_s1 + $0x28] sm:$0xff] }
 0x249   : > { %v3948_v8 = vadd.f32 %v1100_v6, %v1036_v7 }
 0x24b   : > { %5846 = vst [vmem:[#allocation5_spill] sm:$0xff] %v3948_v8  ;;  %1180 = vmax.xlane.f32.xlu0 %v3948_v8 }
 0x24e   : > { %v770_v9 = vpop.f32.mrf.mxu1 }
 0x24f   : > { %v1037_v11 = vmul.f32 0.35355338, %v770_v9 }
 0x251   : > { %v3956_v13 = vadd.f32 %v1101_v10, %v1037_v11 }
 0x253   : > { %5848 = vst [vmem:[#allocation7_spill] sm:$0xff] %v3956_v13  ;;  %1182 = vmax.xlane.f32.xlu2 %v3956_v13 }
 0x254   : > { %v920_v14 = vpop.f32.mrf.mxu3 }
 0x255   : > { %v1068_v15 = vmul.f32 0.35355338, %v920_v14 }
 0x256   : > { %v773_v16 = vpop.f32.mrf.mxu1 }
 0x257   : > { %v1038_v18 = vmul.f32 0.35355338, %v773_v16  ;;  %v3964_v19 = vadd.f32 %v1100_v6, %v1068_v15  ;;  %v3427_v15 = vpop.trf.xlu0  ;;  %v4037_v16 = vld [vmem:[%s5762_s1 + $0x30] sm:$0xff] }
 0x258   : > { %3298 = vmatmul.msk.bf16.gmra.mxu0 %vm730_vm6, %v3427_v15 }
 0x259   : > { %5849 = vst [vmem:[#allocation8_spill] sm:$0xff] %v3964_v19  ;;  %v3969_v21 = vadd.f32 %v3962_v17, %v1038_v18 }
 0x25b   : > { %1184 = vmax.xlane.f32.xlu1 %v3969_v21  ;;  %1244 = vmax.xlane.f32.xlu2 %v3964_v19 }
 0x25c   : > { %v922_v30 = vpop.f32.mrf.mxu3 }
 0x25d   : > { %v1069_v35 = vmul.f32 0.35355338, %v922_v30 }
 0x25e   : > { %v775_v22 = vpop.f32.mrf.mxu1 }
 0x25f   : > { %v844_v23 = vpop.f32.mrf.mxu2  ;;  %v1039_v31 = vmul.f32 0.35355338, %v775_v22  ;;  %v3992_v42 = vadd.f32 %v1101_v10, %v1069_v35 }
 0x260   : > { %v1052_v24 = vmul.f32 0.35355338, %v844_v23 }
 0x261   : > { %v996_v25 = vpop.f32.mrf.mxu0  ;;  %v3986_v39 = vadd.f32 %v3982_v34, %v1039_v31  ;;  %5854 = vst [vmem:[#allocation13_spill] sm:$0xff] %v3992_v42  ;;  %v3428_v31 = vpop.trf.xlu0 }
 0x262   : > { %v1084_v26 = vmul.f32 0.35355338, %v996_v25  ;;  %v3973_v28 = vadd.f32 %v1100_v6, %v1052_v24  ;;  %3283 = vmatmul.msk.bf16.gmra.mxu2 %vm730_vm6, %v3428_v31 }
 0x264   : > { %5851 = vst [vmem:[#allocation10_spill] sm:$0xff] %v3973_v28  ;;  %1212 = vmax.xlane.f32.xlu0 %v3973_v28  ;;  %v3976_v29 = vadd.f32 %v1100_v6, %v1084_v26  ;;  %v925_v49 = vpop.f32.mrf.mxu3 }
 0x265   : > { %v1070_v52 = vmul.f32 0.35355338, %v925_v49 }
 0x266   : > { %5852 = vst [vmem:[#allocation11_spill] sm:$0xff] %v3976_v29  ;;  %v778_v32 = vpop.f32.mrf.mxu1  ;;  %1276 = vmax.xlane.f32.xlu1 %v3976_v29 }
 0x267   : > { %v846_v33 = vpop.f32.mrf.mxu2  ;;  %v1040_v41 = vmul.f32 0.35355338, %v778_v32  ;;  %v4010_v58 = vadd.f32 %v3962_v17, %v1070_v52 }
 0x268   : > { %v1053_v36 = vmul.f32 0.35355338, %v846_v33 }
 0x269   : > { %v998_v38 = vpop.f32.mrf.mxu0  ;;  %v4001_v47 = vadd.f32 %v3997_v43, %v1040_v41  ;;  %5856 = vst [vmem:[#allocation15_spill] sm:$0xff] %v4010_v58  ;;  %v3429_v48 = vpop.trf.xlu0 }
 0x26a   : > { %v3988_v40 = vadd.f32 %v1101_v10, %v1053_v36  ;;  %v1085_v54 = vmul.f32 0.35355338, %v998_v38  ;;  %3299 = vmatmul.msk.bf16.gmra.mxu0 %vm730_vm6, %v3429_v48  ;;  %v4115_v48 = vld [vmem:[%s5762_s1 + $0x48] sm:$0xff] }
 0x26c   : > { %5853 = vst [vmem:[#allocation12_spill] sm:$0xff] %v3988_v40  ;;  %1186 = vmax.xlane.f32.xlu0 %v3986_v39  ;;  %1214 = vmax.xlane.f32.xlu2 %v3988_v40  ;;  %v927_v60 = vpop.f32.mrf.mxu3  ;;  %v4015_v61 = vadd.f32 %v1101_v10, %v1085_v54  ;;  %v4068_v54 = vld [vmem:[%s5762_s1 + $0x38] sm:$0xff] }
 0x26d   : > { %v1071_v63 = vmul.f32 0.35355338, %v927_v60 }
 0x26e   : > { %v780_v44 = vpop.f32.mrf.mxu1  ;;  %1246 = vmax.xlane.f32.xlu1 %v3992_v42  ;;  %5858 = vst [vmem:[#allocation17_spill] sm:$0xff] %v4015_v61 }
 0x26f   : > { %v849_v45 = vpop.f32.mrf.mxu2  ;;  %v1041_v62 = vmul.f32 0.35355338, %v780_v44  ;;  %v4026_v9 = vadd.f32 %v3982_v34, %v1071_v63 }
 0x270   : > { %v1054_v46 = vmul.f32 0.35355338, %v849_v45 }
 0x271   : > { %v1001_v50 = vpop.f32.mrf.mxu0  ;;  %v4023_v7 = vadd.f32 %v1105_v5, %v1041_v62 }
 0x272   : > { %v4005_v51 = vadd.f32 %v3962_v17, %v1054_v46  ;;  %v1086_v1 = vmul.f32 0.35355338, %v1001_v50 }
 0x274   : > { %5855 = vst [vmem:[#allocation14_spill] sm:$0xff] %v4005_v51  ;;  %1188 = vmax.xlane.f32.xlu0 %v4001_v47  ;;  %1216 = vmax.xlane.f32.xlu2 %v4005_v51  ;;  %v4029_v10 = vadd.f32 %v3962_v17, %v1086_v1  ;;  %v930_v18 = vpop.f32.mrf.mxu3 }
 0x275   : > { %v1072_v17 = vmul.f32 0.35355338, %v930_v18  ;;  %v1108_v18 = vld [vmem:[%s5762_s1 + $0x40] sm:$0xff] }
 0x276   : > { %v783_v53 = vpop.f32.mrf.mxu1 }
 0x277   : > { %v851_v55 = vpop.f32.mrf.mxu2  ;;  %v1042_v11 = vmul.f32 0.35355338, %v783_v53  ;;  %v4047_v30 = vadd.f32 %v3997_v43, %v1072_v17 }
 0x278   : > { %v1055_v56 = vmul.f32 0.35355338, %v851_v55 }
 0x279   : > { %v1003_v57 = vpop.f32.mrf.mxu0  ;;  %v4044_v25 = vadd.f32 %v4037_v16, %v1042_v11 }
 0x27a   : > { %v4013_v59 = vadd.f32 %v3982_v34, %v1055_v56  ;;  %v1087_v32 = vmul.f32 0.35355338, %v1003_v57 }
 0x27c   : > { %5857 = vst [vmem:[#allocation16_spill] sm:$0xff] %v4013_v59  ;;  %1248 = vmax.xlane.f32.xlu2 %v4010_v58  ;;  %1218 = vmax.xlane.f32.xlu1 %v4013_v59  ;;  %v4059_v45 = vadd.f32 %v3982_v34, %v1087_v32  ;;  %v932_v46 = vpop.f32.mrf.mxu3 }
 0x27d   : > { %1278 = vmax.xlane.f32.xlu0 %v4015_v61  ;;  %v1073_v52 = vmul.f32 0.35355338, %v932_v46 }
 0x27e   : > { %v785_v0 = vpop.f32.mrf.mxu1  ;;  %5860 = vst [vmem:[#allocation19_spill] sm:$0xff] %v4059_v45 }
 0x27f   : > { %v854_v3 = vpop.f32.mrf.mxu2  ;;  %v1043_v50 = vmul.f32 0.35355338, %v785_v0  ;;  %v4075_v57 = vadd.f32 %v1105_v5, %v1073_v52  ;;  %v3412_v0 = vpop.trf.xlu2 }
 0x280   : > { %v1056_v14 = vmul.f32 0.35355338, %v854_v3  ;;  %3291 = vmatmul.msk.bf16.gmra.mxu3 %vm730_vm6, %v3412_v0 }
 0x281   : > { %v1006_v6 = vpop.f32.mrf.mxu0  ;;  %v4073_v56 = vadd.f32 %v4068_v54, %v1043_v50  ;;  %5862 = vst [vmem:[#allocation21_spill] sm:$0xff] %v4075_v57 }
 0x282   : > { %v4041_v24 = vadd.f32 %v3997_v43, %v1056_v14  ;;  %v1088_v62 = vmul.f32 0.35355338, %v1006_v6 }
 0x284   : > { %1190 = vmax.xlane.f32.xlu2 %v4023_v7  ;;  %1250 = vmax.xlane.f32.xlu1 %v4026_v9  ;;  %5859 = vst [vmem:[#allocation18_spill] sm:$0xff] %v4041_v24  ;;  %v935_v60 = vpop.f32.mrf.mxu3 }
 0x285   : > { %1280 = vmax.xlane.f32.xlu0 %v4029_v10  ;;  %v1074_v63 = vmul.f32 0.35355338, %v935_v60 }
 0x286   : > { %v788_v22 = vpop.f32.mrf.mxu1 }
 0x287   : > { %v856_v23 = vpop.f32.mrf.mxu2  ;;  %v4084_v3 = vadd.f32 %v4037_v16, %v1074_v63  ;;  %v1044_v14 = vmul.f32 0.35355338, %v788_v22 }
 0x288   : > { %v1057_v33 = vmul.f32 0.35355338, %v856_v23  ;;  %v4097_v23 = vld [vmem:[%s5762_s1 + $0x60] sm:$0xff] }
 0x289   : > { %v1008_v26 = vpop.f32.mrf.mxu0  ;;  %v4102_v22 = vadd.f32 %v1108_v18, %v1044_v14  ;;  %v4141_v14 = vld [vmem:[%s5762_s1 + $0x50] sm:$0xff] }
 0x28a   : > { %v4053_v41 = vadd.f32 %v1105_v5, %v1057_v33  ;;  %v1089_v49 = vmul.f32 0.35355338, %v1008_v26 }
 0x28c   : > { %1220 = vmax.xlane.f32.xlu2 %v4041_v24  ;;  %1192 = vmax.xlane.f32.xlu1 %v4044_v25  ;;  %v4070_v34 = vadd.f32 %v1105_v5, %v1089_v49  ;;  %v4087_v5 = vadd.f32 %v3997_v43, %v1088_v62  ;;  %v937_v60 = vpop.f32.mrf.mxu3 }
 0x28d   : > { %1252 = vmax.xlane.f32.xlu0 %v4047_v30  ;;  %v1075_v62 = vmul.f32 0.35355338, %v937_v60 }
 0x28e   : > { %v790_v35 = vpop.f32.mrf.mxu1  ;;  %5861 = vst [vmem:[#allocation20_spill] sm:$0xff] %v4070_v34 }
 0x28f   : > { %v859_v36 = vpop.f32.mrf.mxu2 }
 0x290   : > { %v1058_v37 = vmul.f32 0.35355338, %v859_v36 }
 0x291   : > { %v1011_v38 = vpop.f32.mrf.mxu0 }
 0x292   : > { %v4056_v44 = vadd.f32 %v4037_v16, %v1058_v37  ;;  %v1090_v36 = vmul.f32 0.35355338, %v1011_v38  ;;  %v1045_v37 = vmul.f32 0.35355338, %v790_v35 }
 0x294   : > { %1222 = vmax.xlane.f32.xlu1 %v4053_v41  ;;  %1282 = vmax.xlane.f32.xlu2 %v4059_v45  ;;  %v4121_v50 = vadd.f32 %v4037_v16, %v1090_v36  ;;  %v4124_v38 = vadd.f32 %v4115_v48, %v1045_v37  ;;  %v4134_v16 = vadd.f32 %v4068_v54, %v1075_v62  ;;  %v940_v60 = vpop.f32.mrf.mxu3 }
 0x295   : > { %1224 = vmax.xlane.f32.xlu0 %v4056_v44 }
 0x296   : > { %v793_v53 = vpop.f32.mrf.mxu1 }
 0x297   : > { %v861_v6 = vpop.f32.mrf.mxu2 }
 0x298   : > { %v1059_v15 = vmul.f32 0.35355338, %v861_v6  ;;  %v1046_v6 = vmul.f32 0.35355338, %v793_v53 }
 0x299   : > { %v1013_v55 = vpop.f32.mrf.mxu0 }
 0x29a   : > { %v4100_v26 = vadd.f32 %v4068_v54, %v1059_v15  ;;  %v1091_v37 = vmul.f32 0.35355338, %v1013_v55 }
 0x29c   : > { %1194 = vmax.xlane.f32.xlu1 %v4073_v56  ;;  %1254 = vmax.xlane.f32.xlu2 %v4075_v57 }
 0x29d   : > { %1286 = vmax.xlane.f32.xlu0 %v4070_v34 }
 0x29e   : > { %v4081_v1 = vpop.f32.mrf.mxu1 }
 0x29f   : > { %v864_v52 = vpop.f32.mrf.mxu2 }
 0x2a0   : > { %v1060_v35 = vmul.f32 0.35355338, %v864_v52  ;;  %v4159_v52 = vadd.f32 %v4068_v54, %v1091_v37 }
 0x2a1   : > { %v1016_v11 = vpop.f32.mrf.mxu0 }
 0x2a2   : > { %v4131_v0 = vadd.f32 %v1108_v18, %v1060_v35  ;;  %v1092_v53 = vmul.f32 0.35355338, %v1016_v11  ;;  %5863 = vst [vmem:[#allocation22_spill] sm:$0xff] %v4159_v52  ;;  %v1076_v35 = vmul.f32 0.35355338, %v940_v60 }
 0x2a4   : > { %1256 = vmax.xlane.f32.xlu2 %v4084_v3  ;;  %1284 = vmax.xlane.f32.xlu1 %v4087_v5  ;;  %v4156_v36 = vadd.f32 %v1108_v18, %v1092_v53 }
 0x2a6   : > { %v798_v17 = vpop.f32.mrf.mxu1 }
 0x2a7   : > { %v1048_v43 = vmul.f32 0.35355338, %v798_v17  ;;  %v4146_v17 = vld [vmem:[%s5762_s1 + $0x78] sm:$0xff]  ;;  %v866_v27 = vpop.f32.mrf.mxu2 }
 0x2a8   : > { %v1061_v54 = vmul.f32 0.35355338, %v866_v27  ;;  %v4185_v27 = vld [vmem:[%s5762_s1 + $0x58] sm:$0xff] }
 0x2a9   : > { %v4105_v31 = vadd.f32 %v4097_v23, %v1048_v43  ;;  %v1018_v32 = vpop.f32.mrf.mxu0 }
 0x2aa   : > { %v1093_v33 = vmul.f32 0.35355338, %v1018_v32  ;;  %v4149_v32 = vadd.f32 %v4141_v14, %v1046_v6  ;;  %v4176_v60 = vadd.f32 %v4115_v48, %v1061_v54 }
 0x2ab   : > { %1204 = vmax.xlane.f32.xlu0 %v4105_v31 }
 0x2ac   : > { %1226 = vmax.xlane.f32.xlu2 %v4100_v26  ;;  %1196 = vmax.xlane.f32.xlu1 %v4102_v22  ;;  %v4118_v49 = vadd.f32 %v4115_v48, %v1093_v33 }
 0x2ae   : > { %v4110_v46 = vpop.f32.mrf.mxu1 }
 0x2af   : > { %v869_v61 = vpop.f32.mrf.mxu2 }
 0x2b3   : > { %1294 = vmax.xlane.f32.xlu0 %v4118_v49 }
 0x2b4   : > { %1198 = vmax.xlane.f32.xlu1 %v4124_v38  ;;  %1288 = vmax.xlane.f32.xlu2 %v4121_v50 }
 0x2b6   : > { %v4129_v63 = vpop.f32.mrf.mxu1 }
 0x2bc   : > { %1258 = vmax.xlane.f32.xlu1 %v4134_v16  ;;  %1228 = vmax.xlane.f32.xlu2 %v4131_v0 }
 0x2be   : > { %v805_v15 = vpop.f32.mrf.mxu1  ;;  %v4162_v6 = vpop.xlane.xlu0 %1180 }
 0x2bf   : > { %v1051_v43 = vmul.f32 0.35355338, %v805_v15  ;;  %5864 = vst [vmem:[#allocation23_spill] sm:$0xff] %v4162_v6 }
 0x2c1   : > { %v4152_v33 = vadd.f32 %v4146_v17, %v1051_v43  ;;  %v4165_v43 = vadd.f32 %v1108_v18, %v1076_v35  ;;  %v1047_v18 = vmul.f32 0.35355338, %v4081_v1 }
 0x2c3   : > { %v4191_v54 = vadd.f32 %v4185_v27, %v1047_v18 }
 0x2c4   : > { %1200 = vmax.xlane.f32.xlu1 %v4149_v32  ;;  %1210 = vmax.xlane.f32.xlu2 %v4152_v33 }
 0x2c6   : > { %v4168_v55 = vpop.xlane.xlu2 %1182 }
 0x2c7   : > { %5865 = vst [vmem:[#allocation24_spill] sm:$0xff] %v4168_v55 }
 0x2cc   : > { %1290 = vmax.xlane.f32.xlu1 %v4159_v52 }
 0x2ce   : > { %v1185_v62 = vpop.xlane.xlu1 %1184 }
 0x2cf   : > { %v1310_v11 = vsub.f32 %v3969_v21, %v1185_v62  ;;  %v4187_v62 = vpop.xlane.xlu2 %1244 }
 0x2d0   : > { %5868 = vst [vmem:[#allocation27_spill] sm:$0xff] %v4187_v62 }
 0x2d1   : > { %v1376_v15 = vmul.f32 1.442695, %v1310_v11 }
 0x2d3   : > { %3434 = vpow2.f32 %v1376_v15 }
 0x2d4   : > { %1260 = vmax.xlane.f32.xlu1 %v4165_v43 }
 0x2d7   : > { %v4170_v53 = vpop.xlane.xlu0 %1212 }
 0x2d8   : > { %5866 = vst [vmem:[#allocation25_spill] sm:$0xff] %v4170_v53 }
 0x2d9   : > { %v4172_v37 = vpop.eup %3434  ;;  %v4179_v21 = vpop.xlane.xlu1 %1276 }
 0x2da   : > { %1504 = vadd.xlane.f32.xlu0 %v4172_v37  ;;  %5867 = vst [vmem:[#allocation26_spill] sm:$0xff] %v4179_v21 }
 0x2dc   : > { %1230 = vmax.xlane.f32.xlu1 %v4176_v60 }
 0x2df   : > { %v1187_v35 = vpop.xlane.xlu0 %1186  ;;  %v4196_v4 = vpop.xlane.xlu2 %1214 }
 0x2e0   : > { %v1311_v11 = vsub.f32 %v3986_v39, %v1187_v35  ;;  %5869 = vst [vmem:[#allocation28_spill] sm:$0xff] %v4196_v4  ;;  %v1062_v39 = vmul.f32 0.35355338, %v869_v61 }
 0x2e1   : > { %v4194_v20 = vpop.xlane.xlu1 %1246 }
 0x2e2   : > { %v1378_v15 = vmul.f32 1.442695, %v1311_v11  ;;  %v4208_v11 = vadd.f32 %v4141_v14, %v1062_v39 }
 0x2e4   : > { %3436 = vpow2.f32 %v1378_v15  ;;  %1202 = vmax.xlane.f32.xlu1 %v4191_v54 }
 0x2e7   : > { %v1189_v1 = vpop.xlane.xlu0 %1188 }
 0x2e8   : > { %v1312_v12 = vsub.f32 %v4001_v47, %v1189_v1  ;;  %v4212_v47 = vpop.xlane.xlu2 %1216  ;;  %v942_v1 = vpop.f32.mrf.mxu3 }
 0x2e9   : > { %5873 = vst [vmem:[#allocation32_spill] sm:$0xff] %v4212_v47 }
 0x2ea   : > { %v4199_v2 = vpop.eup %3436  ;;  %v1380_v40 = vmul.f32 1.442695, %v1312_v12  ;;  %v1077_v12 = vmul.f32 0.35355338, %v942_v1  ;;  %v871_v1 = vpop.f32.mrf.mxu2 }
 0x2eb   : > { %1506 = vadd.xlane.f32.xlu2 %v4199_v2  ;;  %v1063_v59 = vmul.f32 0.35355338, %v871_v1  ;;  %v4247_v1 = vld [vmem:[%s5762_s1 + $0x68] sm:$0xff] }
 0x2ec   : > { %3438 = vpow2.f32 %v1380_v40  ;;  %1292 = vmax.xlane.f32.xlu1 %v4156_v36  ;;  %v4221_v4 = vadd.f32 %v4115_v48, %v1077_v12 }
 0x2ed   : > { %v4240_v45 = vadd.f32 %v4185_v27, %v1063_v59 }
 0x2ef   : > { %v4203_v18 = vpop.xlane.xlu1 %1218 }
 0x2f0   : > { %5870 = vst [vmem:[#allocation29_spill] sm:$0xff] %v4203_v18  ;;  %v4205_v35 = vpop.xlane.xlu0 %1278  ;;  %v4223_v39 = vpop.xlane.xlu2 %1248 }
 0x2f1   : > { %5871 = vst [vmem:[#allocation30_spill] sm:$0xff] %v4205_v35  ;;  %v945_v35 = vpop.f32.mrf.mxu3 }
 0x2f2   : > { %v4210_v15 = vpop.eup %3438  ;;  %5874 = vst [vmem:[#allocation33_spill] sm:$0xff] %v4223_v39  ;;  %v1078_v19 = vmul.f32 0.35355338, %v945_v35 }
 0x2f3   : > { %5872 = vst [vmem:[#allocation31_spill] sm:$0xff] %v4210_v15  ;;  %1508 = vadd.xlane.f32.xlu2 %v4210_v15 }
 0x2f4   : > { %1232 = vmax.xlane.f32.xlu1 %v4208_v11  ;;  %v4231_v53 = vadd.f32 %v4141_v14, %v1078_v19  ;;  %v1049_v19 = vmul.f32 0.35355338, %v4110_v46 }
 0x2f6   : > { %v4253_v59 = vadd.f32 %v4247_v1, %v1049_v19 }
 0x2f7   : > { %v4216_v40 = vpop.xlane.xlu1 %1250 }
 0x2f8   : > { %v4218_v61 = vpop.xlane.xlu0 %1280  ;;  %v4234_v18 = vpop.xlane.xlu2 %1190 }
 0x2f9   : > { %v947_v34 = vpop.f32.mrf.mxu3 }
 0x2fc   : > { %1262 = vmax.xlane.f32.xlu1 %v4221_v4 }
 0x2ff   : > { %v4226_v62 = vpop.xlane.xlu1 %1192 }
 0x300   : > { %v4228_v28 = vpop.xlane.xlu0 %1252  ;;  %v4249_v51 = vpop.xlane.xlu2 %1220 }
 0x301   : > { %5875 = vst [vmem:[#allocation34_spill] sm:$0xff] %v4249_v51 }
 0x304   : > { %1264 = vmax.xlane.f32.xlu1 %v4231_v53 }
 0x307   : > { %v4236_v48 = vpop.xlane.xlu1 %1222 }
 0x308   : > { %v1225_v12 = vpop.xlane.xlu0 %1224  ;;  %v4263_v55 = vpop.xlane.xlu2 %1282 }
 0x309   : > { %v1330_v35 = vsub.f32 %v4056_v44, %v1225_v12  ;;  %5878 = vst [vmem:[#allocation37_spill] sm:$0xff] %v4263_v55 }
 0x30b   : > { %v1416_v58 = vmul.f32 1.442695, %v1330_v35 }
 0x30c   : > { %1234 = vmax.xlane.f32.xlu1 %v4240_v45 }
 0x30d   : > { %3440 = vpow2.f32 %v1416_v58  ;;  %v1021_v58 = vpop.f32.mrf.mxu0 }
 0x30e   : > { %v1094_v46 = vmul.f32 0.35355338, %v1021_v58 }
 0x30f   : > { %v1195_v39 = vpop.xlane.xlu1 %1194 }
 0x310   : > { %v1315_v47 = vsub.f32 %v4073_v56, %v1195_v39  ;;  %v4266_v56 = vadd.f32 %v4141_v14, %v1094_v46  ;;  %v4274_v24 = vpop.xlane.xlu2 %1254  ;;  %v1079_v14 = vmul.f32 0.35355338, %v947_v34  ;;  %v4289_v34 = vld [vmem:[%s5762_s1 + $0x70] sm:$0xff] }
 0x311   : > { %5879 = vst [vmem:[#allocation38_spill] sm:$0xff] %v4274_v24 }
 0x312   : > { %v1386_v44 = vmul.f32 1.442695, %v1315_v47  ;;  %v874_v47 = vpop.f32.mrf.mxu2 }
 0x313   : > { %v4255_v12 = vpop.eup %3440  ;;  %v1064_v39 = vmul.f32 0.35355338, %v874_v47 }
 0x314   : > { %5876 = vst [vmem:[#allocation35_spill] sm:$0xff] %v4255_v12  ;;  %3442 = vpow2.f32 %v1386_v44  ;;  %1544 = vadd.xlane.f32.xlu2 %v4255_v12  ;;  %1206 = vmax.xlane.f32.xlu1 %v4253_v59 }
 0x315   : > { %v4272_v58 = vadd.f32 %v4097_v23, %v1064_v39 }
 0x317   : > { %v4259_v35 = vpop.xlane.xlu1 %1284 }
 0x31a   : > { %v4261_v13 = vpop.eup %3442 }
 0x31b   : > { %5877 = vst [vmem:[#allocation36_spill] sm:$0xff] %v4261_v13  ;;  %1514 = vadd.xlane.f32.xlu0 %v4261_v13  ;;  %v4279_v13 = vadd.f32 %v4185_v27, %v1079_v14 }
 0x31c   : > { %1296 = vmax.xlane.f32.xlu1 %v4266_v56 }
 0x31f   : > { %v1197_v19 = vpop.xlane.xlu1 %1196 }
 0x320   : > { %v1316_v44 = vsub.f32 %v4102_v22, %v1197_v19  ;;  %v1050_v22 = vmul.f32 0.35355338, %v4129_v63 }
 0x322   : > { %v1388_v12 = vmul.f32 1.442695, %v1316_v44  ;;  %v4295_v39 = vadd.f32 %v4289_v34, %v1050_v22  ;;  %v1023_v44 = vpop.f32.mrf.mxu0 }
 0x323   : > { %v1095_v14 = vmul.f32 0.35355338, %v1023_v44 }
 0x324   : > { %1236 = vmax.xlane.f32.xlu1 %v4272_v58  ;;  %3444 = vpow2.f32 %v1388_v12  ;;  %v4291_v12 = vpop.xlane.xlu2 %1256 }
 0x325   : > { %v4307_v22 = vadd.f32 %v4185_v27, %v1095_v14  ;;  %v876_v27 = vpop.f32.mrf.mxu2 }
 0x327   : > { %v1199_v46 = vpop.xlane.xlu1 %1198 }
 0x328   : > { %v1317_v55 = vsub.f32 %v4124_v38, %v1199_v46 }
 0x32a   : > { %v1390_v47 = vmul.f32 1.442695, %v1317_v55  ;;  %v4281_v51 = vpop.eup %3444 }
 0x32b   : > { %1516 = vadd.xlane.f32.xlu0 %v4281_v51 }
 0x32c   : > { %3446 = vpow2.f32 %v1390_v47  ;;  %1266 = vmax.xlane.f32.xlu1 %v4279_v13  ;;  %v4301_v47 = vpop.xlane.xlu2 %1226 }
 0x32f   : > { %v1259_v38 = vpop.xlane.xlu1 %1258 }
 0x330   : > { %v1347_v55 = vsub.f32 %v4134_v16, %v1259_v38  ;;  %v4310_v38 = vpop.xlane.xlu0 %1286 }
 0x331   : > { %5881 = vst [vmem:[#allocation40_spill] sm:$0xff] %v4310_v38 }
 0x332   : > { %v4297_v19 = vpop.eup %3446  ;;  %v1450_v63 = vmul.f32 1.442695, %v1347_v55  ;;  %v950_v55 = vpop.f32.mrf.mxu3 }
 0x333   : > { %1518 = vadd.xlane.f32.xlu2 %v4297_v19 }
 0x334   : > { %3448 = vpow2.f32 %v1450_v63  ;;  %1208 = vmax.xlane.f32.xlu1 %v4295_v39  ;;  %v1080_v63 = vmul.f32 0.35355338, %v950_v55 }
 0x337   : > { %v1201_v46 = vpop.xlane.xlu1 %1200 }
 0x338   : > { %v1318_v15 = vsub.f32 %v4149_v32, %v1201_v46  ;;  %v4317_v32 = vpop.xlane.xlu2 %1288  ;;  %v4323_v14 = vpop.xlane.xlu0 %1204  ;;  %v1065_v46 = vmul.f32 0.35355338, %v876_v27 }
 0x33a   : > { %v4304_v8 = vpop.eup %3448  ;;  %v1392_v16 = vmul.f32 1.442695, %v1318_v15  ;;  %v4320_v15 = vadd.f32 %v4097_v23, %v1080_v63  ;;  %v4328_v38 = vadd.f32 %v4247_v1, %v1065_v46  ;;  %v1026_v63 = vpop.f32.mrf.mxu0 }
 0x33b   : > { %5880 = vst [vmem:[#allocation39_spill] sm:$0xff] %v4304_v8  ;;  %1578 = vadd.xlane.f32.xlu0 %v4304_v8  ;;  %v879_v46 = vpop.f32.mrf.mxu2 }
 0x33c   : > { %3450 = vpow2.f32 %v1392_v16  ;;  %1298 = vmax.xlane.f32.xlu1 %v4307_v22 }
 0x33f   : > { %v4313_v44 = vpop.xlane.xlu1 %1290 }
 0x340   : > { %5882 = vst [vmem:[#allocation41_spill] sm:$0xff] %v4313_v44  ;;  %v4330_v52 = vpop.xlane.xlu2 %1228  ;;  %v4333_v44 = vpop.xlane.xlu0 %1294 }
 0x342   : > { %v4315_v6 = vpop.eup %3450  ;;  %v1028_v42 = vpop.f32.mrf.mxu0 }
 0x343   : > { %5883 = vst [vmem:[#allocation42_spill] sm:$0xff] %v4315_v6  ;;  %1520 = vadd.xlane.f32.xlu0 %v4315_v6  ;;  %v1096_v6 = vmul.f32 0.35355338, %v1026_v63 }
 0x344   : > { %1268 = vmax.xlane.f32.xlu1 %v4320_v15 }
 0x347   : > { %v1261_v16 = vpop.xlane.xlu1 %1260 }
 0x348   : > { %v1348_v55 = vsub.f32 %v4165_v43, %v1261_v16  ;;  %v4339_v43 = vadd.f32 %v4097_v23, %v1096_v6  ;;  %v1066_v16 = vmul.f32 0.35355338, %v879_v46  ;;  %v952_v6 = vpop.f32.mrf.mxu3 }
 0x34a   : > { %v1452_v8 = vmul.f32 1.442695, %v1348_v55 }
 0x34c   : > { %3452 = vpow2.f32 %v1452_v8  ;;  %1238 = vmax.xlane.f32.xlu1 %v4328_v38  ;;  %v1211_v8 = vpop.xlane.xlu2 %1210 }
 0x34d   : > { %v1505_v55 = vpop.xlane.xlu0 %1504 }
 0x34f   : > { %v1231_v57 = vpop.xlane.xlu1 %1230 }
 0x350   : > { %v1333_v24 = vsub.f32 %v4176_v60, %v1231_v57  ;;  %v4345_v57 = vadd.f32 %v4289_v34, %v1066_v16 }
 0x352   : > { %v4336_v27 = vpop.eup %3452  ;;  %v1422_v29 = vmul.f32 1.442695, %v1333_v24  ;;  %5885 = vst [vmem:[#allocation44_spill] sm:$0xff] %v4345_v57 }
 0x353   : > { %5884 = vst [vmem:[#allocation43_spill] sm:$0xff] %v4336_v27  ;;  %1580 = vadd.xlane.f32.xlu0 %v4336_v27 }
 0x354   : > { %3454 = vpow2.f32 %v1422_v29  ;;  %1300 = vmax.xlane.f32.xlu1 %v4339_v43  ;;  %v1081_v29 = vmul.f32 0.35355338, %v952_v6  ;;  %v1097_v6 = vmul.f32 0.35355338, %v1028_v42  ;;  %v1320_v42 = vsub.f32 %v4105_v31, %v4323_v14 }
 0x355   : > { %3456 = vrcp.f32 %v1505_v55  ;;  %v1365_v14 = vsub.f32 %v4118_v49, %v4333_v44  ;;  %v1031_v49 = vpop.f32.mrf.mxu0 }
 0x356   : > { %v4355_v55 = vadd.f32 %v4247_v1, %v1081_v29  ;;  %v1098_v44 = vmul.f32 0.35355338, %v1031_v49 }
 0x357   : > { %v1203_v21 = vpop.xlane.xlu1 %1202 }
 0x358   : > { %v1319_v63 = vsub.f32 %v4191_v54, %v1203_v21 }
 0x35a   : > { %v4347_v24 = vpop.eup %3454  ;;  %v1394_v23 = vmul.f32 1.442695, %v1319_v63 }
 0x35b   : > { %5886 = vst [vmem:[#allocation45_spill] sm:$0xff] %v4347_v24  ;;  %1550 = vadd.xlane.f32.xlu0 %v4347_v24  ;;  %v3457_v46 = vpop.eup %3456 }
 0x35c   : > { %3458 = vpow2.f32 %v1394_v23  ;;  %1240 = vmax.xlane.f32.xlu1 %v4345_v57  ;;  %v1694_v63 = vmul.f32 %v3457_v46, %v4172_v37  ;;  %v4365_v37 = vadd.f32 %v4247_v1, %v1097_v6 }
 0x35e   : > { %v1507_v60 = vpop.xlane.xlu2 %1506  ;;  %v1758_v24 = vpack.c.bf16 %v1694_v63, %v1694_v63  ;;  %v1396_v63 = vmul.f32 1.442695, %v1320_v42 }
 0x35f   : > { %3460 = vrcp.f32 %v1507_v60  ;;  %v1293_v27 = vpop.xlane.xlu1 %1292 }
 0x360   : > { %v1364_v21 = vsub.f32 %v4156_v36, %v1293_v27  ;;  %v4367_v46 = vunpack.c.l.b16 %v1758_v24 }
 0x362   : > { %v4352_v54 = vpop.eup %3458  ;;  %v1484_v16 = vmul.f32 1.442695, %v1364_v21 }
 0x363   : > { %5887 = vst [vmem:[#allocation46_spill] sm:$0xff] %v4352_v54  ;;  %1522 = vadd.xlane.f32.xlu2 %v4352_v54  ;;  %v955_v54 = vpop.f32.mrf.mxu3 }
 0x364   : > { %3462 = vpow2.f32 %v1484_v16  ;;  %1270 = vmax.xlane.f32.xlu1 %v4355_v55 }
 0x365   : > { %v3461_v23 = vpop.eup %3460 }
 0x366   : > { %v1695_v60 = vmul.f32 %v3461_v23, %v4199_v2  ;;  %v1082_v2 = vmul.f32 0.35355338, %v955_v54  ;;  %v881_v54 = vpop.f32.mrf.mxu2 }
 0x367   : > { %v1233_v36 = vpop.xlane.xlu1 %1232 }
 0x368   : > { %v1334_v27 = vsub.f32 %v4208_v11, %v1233_v36  ;;  %v1759_v21 = vpack.c.bf16 %v1695_v60, %v1695_v60  ;;  %v4379_v23 = vadd.f32 %v4289_v34, %v1082_v2  ;;  %v1323_v60 = vsub.f32 %v4152_v33, %v1211_v8 }
 0x369   : > { %v1067_v36 = vmul.f32 0.35355338, %v881_v54 }
 0x36a   : > { %v4362_v57 = vpop.eup %3462  ;;  %v1424_v29 = vmul.f32 1.442695, %v1334_v27  ;;  %v4369_v16 = vunpack.c.l.b16 %v1759_v21  ;;  %v1402_v21 = vmul.f32 1.442695, %v1323_v60 }
 0x36b   : > { %1612 = vadd.xlane.f32.xlu0 %v4362_v57  ;;  %v4393_v2 = vadd.f32 %v4146_v17, %v1067_v36 }
 0x36c   : > { %3464 = vpow2.f32 %v1424_v29  ;;  %1302 = vmax.xlane.f32.xlu1 %v4365_v37 }
 0x36d   : > { %3466 = vpow2.f32 %v1396_v63 }
 0x36f   : > { %v1263_v1 = vpop.xlane.xlu1 %1262 }
 0x370   : > { %v1349_v24 = vsub.f32 %v4221_v4, %v1263_v1  ;;  %v1486_v4 = vmul.f32 1.442695, %v1365_v14  ;;  %v4400_v1 = vadd.f32 %v4289_v34, %v1098_v44  ;;  %v957_v14 = vpop.f32.mrf.mxu3 }
 0x371   : > { %v1083_v54 = vmul.f32 0.35355338, %v957_v14 }
 0x372   : > { %v4381_v6 = vpop.eup %3464  ;;  %v1454_v31 = vmul.f32 1.442695, %v1349_v24 }
 0x373   : > { %1552 = vadd.xlane.f32.xlu0 %v4381_v6  ;;  %v4388_v29 = vpop.eup %3466  ;;  %v4413_v34 = vadd.f32 %v4146_v17, %v1083_v54 }
 0x374   : > { %3468 = vpow2.f32 %v1454_v31  ;;  %1272 = vmax.xlane.f32.xlu1 %v4379_v23 }
 0x375   : > { %3470 = vpow2.f32 %v1486_v4 }
 0x376   : > { %3472 = vpow2.f32 %v1402_v21 }
 0x377   : > { %v1265_v27 = vpop.xlane.xlu1 %1264 }
 0x378   : > { %v1350_v33 = vsub.f32 %v4231_v53, %v1265_v27  ;;  %v1033_v27 = vpop.f32.mrf.mxu0 }
 0x379   : > { %v1099_v49 = vmul.f32 0.35355338, %v1033_v27 }
 0x37a   : > { %v4390_v42 = vpop.eup %3468  ;;  %v1456_v63 = vmul.f32 1.442695, %v1350_v33 }
 0x37b   : > { %1582 = vadd.xlane.f32.xlu2 %v4390_v42  ;;  %1524 = vadd.xlane.f32.xlu0 %v4388_v29  ;;  %v4402_v24 = vpop.eup %3470  ;;  %v4423_v14 = vadd.f32 %v4146_v17, %v1099_v49 }
 0x37c   : > { %1242 = vmax.xlane.f32.xlu1 %v4393_v2  ;;  %v4404_v31 = vpop.eup %3472  ;;  %3474 = vpow2.f32 %v1456_v63 }
 0x37f   : > { %v1235_v8 = vpop.xlane.xlu1 %1234 }
 0x380   : > { %v1335_v53 = vsub.f32 %v4240_v45, %v1235_v8  ;;  %v1313_v45 = vsub.f32 %v4023_v7, %v4234_v18  ;;  %v1314_v7 = vsub.f32 %v4044_v25, %v4226_v62  ;;  %v4430_v18 = vpop.xlane.xlu2 %1508  ;;  %v1346_v25 = vsub.f32 %v4084_v3, %v4291_v12 }
 0x381   : > { %v1331_v3 = vsub.f32 %v4100_v26, %v4301_v47  ;;  %v1362_v26 = vsub.f32 %v4121_v50, %v4317_v32  ;;  %v1332_v50 = vsub.f32 %v4131_v0, %v4330_v52 }
 0x382   : > { %v1426_v36 = vmul.f32 1.442695, %v1335_v53  ;;  %v4410_v4 = vpop.eup %3474  ;;  %v1382_v8 = vmul.f32 1.442695, %v1313_v45 }
 0x383   : > { %1530 = vadd.xlane.f32.xlu0 %v4404_v31  ;;  %1614 = vadd.xlane.f32.xlu2 %v4402_v24 }
 0x384   : > { %1304 = vmax.xlane.f32.xlu1 %v4400_v1  ;;  %3476 = vpow2.f32 %v1426_v36  ;;  %v1384_v36 = vmul.f32 1.442695, %v1314_v7  ;;  %v1418_v7 = vmul.f32 1.442695, %v1331_v3 }
 0x387   : > { %v1207_v60 = vpop.xlane.xlu1 %1206 }
 0x388   : > { %v1321_v21 = vsub.f32 %v4253_v59, %v1207_v60  ;;  %v4443_v62 = vpop.xlane.xlu2 %1544 }
 0x38a   : > { %v1398_v44 = vmul.f32 1.442695, %v1321_v21  ;;  %v4420_v63 = vpop.eup %3476 }
 0x38b   : > { %1584 = vadd.xlane.f32.xlu2 %v4410_v4 }
 0x38c   : > { %1274 = vmax.xlane.f32.xlu1 %v4413_v34  ;;  %3478 = vpow2.f32 %v1398_v44 }
 0x38d   : > { %3480 = vpow2.f32 %v1382_v8 }
 0x38e   : > { %v4432_v59 = vpop.xlane.xlu0 %1514 }
 0x38f   : > { %v1297_v33 = vpop.xlane.xlu1 %1296 }
 0x390   : > { %v1366_v53 = vsub.f32 %v4266_v56, %v1297_v33  ;;  %v1448_v33 = vmul.f32 1.442695, %v1346_v25 }
 0x392   : > { %v1488_v60 = vmul.f32 1.442695, %v1366_v53  ;;  %v4434_v17 = vpop.eup %3478 }
 0x393   : > { %1554 = vadd.xlane.f32.xlu2 %v4420_v63  ;;  %v4436_v27 = vpop.eup %3480 }
 0x394   : > { %1306 = vmax.xlane.f32.xlu1 %v4423_v14  ;;  %3482 = vpow2.f32 %v1488_v60 }
 0x395   : > { %3484 = vpow2.f32 %v1384_v36 }
 0x397   : > { %v1237_v54 = vpop.xlane.xlu1 %1236 }
 0x398   : > { %v1336_v56 = vsub.f32 %v4272_v58, %v1237_v54 }
 0x39a   : > { %v1428_v49 = vmul.f32 1.442695, %v1336_v56  ;;  %v4445_v44 = vpop.eup %3482 }
 0x39b   : > { %1526 = vadd.xlane.f32.xlu2 %v4434_v17  ;;  %v4447_v8 = vpop.eup %3484 }
 0x39c   : > { %1510 = vadd.xlane.f32.xlu1 %v4436_v27 }
 0x39e   : > { %v1517_v21 = vpop.xlane.xlu0 %1516 }
 0x39f   : > { %v1267_v45 = vpop.xlane.xlu1 %1266  ;;  %3486 = vrcp.f32 %v1517_v21 }
 0x3a0   : > { %3488 = vpow2.f32 %v1428_v49 }
 0x3a1   : > { %3490 = vpow2.f32 %v1448_v33  ;;  %v1480_v33 = vmul.f32 1.442695, %v1362_v26  ;;  %v1344_v26 = vsub.f32 %v4047_v30, %v4228_v28 }
 0x3a3   : > { %1616 = vadd.xlane.f32.xlu2 %v4445_v44 }
 0x3a4   : > { %1512 = vadd.xlane.f32.xlu1 %v4447_v8 }
 0x3a5   : > { %v3487_v12 = vpop.eup %3486 }
 0x3a6   : > { %v1519_v58 = vpop.xlane.xlu2 %1518  ;;  %v4453_v54 = vpop.eup %3488  ;;  %v1700_v60 = vmul.f32 %v3487_v12, %v4281_v51 }
 0x3a7   : > { %3492 = vrcp.f32 %v1519_v58  ;;  %v1209_v53 = vpop.xlane.xlu1 %1208  ;;  %v4456_v36 = vpop.eup %3490 }
 0x3a8   : > { %3494 = vpow2.f32 %v1418_v7  ;;  %v1764_v25 = vpack.c.bf16 %v1700_v60, %v1700_v60  ;;  %v1420_v7 = vmul.f32 1.442695, %v1332_v50  ;;  %v1322_v28 = vsub.f32 %v4295_v39, %v1209_v53 }
 0x3a9   : > { %3496 = vpow2.f32 %v1480_v33 }
 0x3aa   : > { %v4463_v3 = vunpack.c.l.b16 %v1764_v25 }
 0x3ab   : > { %1556 = vadd.xlane.f32.xlu2 %v4453_v54 }
 0x3ac   : > { %1576 = vadd.xlane.f32.xlu1 %v4456_v36 }
 0x3ad   : > { %v3493_v56 = vpop.eup %3492 }
 0x3ae   : > { %v1701_v47 = vmul.f32 %v3493_v56, %v4297_v19  ;;  %v4467_v58 = vpop.eup %3494 }
 0x3af   : > { %v1299_v21 = vpop.xlane.xlu1 %1298  ;;  %v4475_v56 = vpop.eup %3496 }
 0x3b0   : > { %v1765_v49 = vpack.c.bf16 %v1701_v47, %v1701_v47  ;;  %5888 = vst [vmem:[#allocation47_spill] sm:$0xff] %v4475_v56  ;;  %v1351_v47 = vsub.f32 %v4279_v13, %v1267_v45  ;;  %v1400_v45 = vmul.f32 1.442695, %v1322_v28  ;;  %v1358_v28 = vsub.f32 %v4029_v10, %v4218_v61  ;;  %v5891_v10 = vld [vmem:[#allocation13_spill] sm:$0xff] }
 0x3b1   : > { %v1341_v61 = vsub.f32 %v5891_v10, %v4194_v20  ;;  %v5894_v20 = vld [vmem:[#allocation26_spill] sm:$0xff] }
 0x3b2   : > { %v4465_v51 = vunpack.c.l.b16 %v1765_v49  ;;  %v1444_v49 = vmul.f32 1.442695, %v1344_v26  ;;  %v1458_v33 = vmul.f32 1.442695, %v1351_v47  ;;  %v1343_v47 = vsub.f32 %v4026_v9, %v4216_v40 }
 0x3b4   : > { %1546 = vadd.xlane.f32.xlu1 %v4467_v58 }
 0x3b7   : > { %v1269_v19 = vpop.xlane.xlu1 %1268 }
 0x3b8   : > { %v1352_v32 = vsub.f32 %v4320_v15, %v1269_v19  ;;  %v1329_v15 = vsub.f32 %v4053_v41, %v4236_v48  ;;  %v4492_v19 = vpop.xlane.xlu0 %1578  ;;  %v1360_v41 = vsub.f32 %v4087_v5, %v4259_v35  ;;  %v1367_v48 = vsub.f32 %v4307_v22, %v1299_v21 }
 0x3b9   : > { %v1442_v22 = vmul.f32 1.442695, %v1343_v47 }
 0x3ba   : > { %v1460_v60 = vmul.f32 1.442695, %v1352_v32  ;;  %v1414_v13 = vmul.f32 1.442695, %v1329_v15  ;;  %v1476_v53 = vmul.f32 1.442695, %v1360_v41 }
 0x3bc   : > { %3498 = vpow2.f32 %v1460_v60  ;;  %1608 = vadd.xlane.f32.xlu1 %v4475_v56 }
 0x3bd   : > { %3500 = vpow2.f32 %v1420_v7  ;;  %v1490_v7 = vmul.f32 1.442695, %v1367_v48 }
 0x3be   : > { %3502 = vpow2.f32 %v1444_v49 }
 0x3bf   : > { %v1239_v25 = vpop.xlane.xlu1 %1238  ;;  %3504 = vpow2.f32 %v1458_v33 }
 0x3c0   : > { %3506 = vpow2.f32 %v1414_v13  ;;  %v4508_v49 = vpop.xlane.xlu0 %1520  ;;  %v1337_v5 = vsub.f32 %v4328_v38, %v1239_v25  ;;  %v1472_v38 = vmul.f32 1.442695, %v1358_v28 }
 0x3c1   : > { %3508 = vpow2.f32 %v1400_v45 }
 0x3c2   : > { %v4481_v0 = vpop.eup %3498  ;;  %3510 = vpow2.f32 %v1476_v53  ;;  %v1430_v21 = vmul.f32 1.442695, %v1337_v5  ;;  %v1438_v5 = vmul.f32 1.442695, %v1341_v61 }
 0x3c3   : > { %v4483_v52 = vpop.eup %3500  ;;  %1588 = vadd.xlane.f32.xlu2 %v4481_v0  ;;  %3512 = vpow2.f32 %v1490_v7 }
 0x3c4   : > { %1548 = vadd.xlane.f32.xlu1 %v4483_v52  ;;  %v4490_v50 = vpop.eup %3502  ;;  %3514 = vpow2.f32 %v1442_v22 }
 0x3c5   : > { %v4494_v32 = vpop.eup %3504  ;;  %3516 = vpow2.f32 %v1430_v21 }
 0x3c6   : > { %v4501_v60 = vpop.eup %3506  ;;  %3518 = vpow2.f32 %v1472_v38  ;;  %v5895_v38 = vld [vmem:[#allocation11_spill] sm:$0xff] }
 0x3c7   : > { %v1301_v30 = vpop.xlane.xlu1 %1300  ;;  %v4503_v26 = vpop.eup %3508 }
 0x3c8   : > { %v4512_v33 = vpop.eup %3510  ;;  %v1581_v9 = vpop.xlane.xlu0 %1580  ;;  %v1368_v40 = vsub.f32 %v4339_v43, %v1301_v30  ;;  %v5892_v43 = vld [vmem:[#allocation44_spill] sm:$0xff] }
 0x3c9   : > { %5889 = vst [vmem:[#allocation48_spill] sm:$0xff] %v4512_v33  ;;  %v4514_v15 = vpop.eup %3512 }
 0x3ca   : > { %v1492_v45 = vmul.f32 1.442695, %v1368_v40  ;;  %v4522_v41 = vpop.eup %3514 }
 0x3cb   : > { %1572 = vadd.xlane.f32.xlu2 %v4490_v50  ;;  %5890 = vst [vmem:[#allocation49_spill] sm:$0xff] %v4522_v41  ;;  %v4524_v53 = vpop.eup %3516 }
 0x3cc   : > { %1586 = vadd.xlane.f32.xlu1 %v4494_v32  ;;  %v4535_v22 = vpop.eup %3518 }
 0x3cd   : > { %5893 = vst [vmem:[#allocation13_spill] sm:$0xff] %v4535_v22 }
 0x3cf   : > { %v1241_v39 = vpop.xlane.xlu1 %1240 }
 0x3d0   : > { %v1338_v30 = vsub.f32 %v5892_v43, %v1241_v39  ;;  %v4531_v7 = vpop.xlane.xlu0 %1550 }
 0x3d2   : > { %v1432_v21 = vmul.f32 1.442695, %v1338_v30 }
 0x3d3   : > { %1542 = vadd.xlane.f32.xlu2 %v4501_v60 }
 0x3d4   : > { %1528 = vadd.xlane.f32.xlu1 %v4503_v26 }
 0x3d7   : > { %v1271_v35 = vpop.xlane.xlu1 %1270 }
 0x3d8   : > { %v1353_v39 = vsub.f32 %v4355_v55, %v1271_v35 }
 0x3da   : > { %v1462_v43 = vmul.f32 1.442695, %v1353_v39 }
 0x3db   : > { %1604 = vadd.xlane.f32.xlu2 %v4512_v33 }
 0x3dc   : > { %1618 = vadd.xlane.f32.xlu1 %v4514_v15 }
 0x3df   : > { %v1303_v25 = vpop.xlane.xlu1 %1302 }
 0x3e0   : > { %v1369_v13 = vsub.f32 %v4365_v37, %v1303_v25  ;;  %v4533_v37 = vpop.xlane.xlu2 %1522  ;;  %v1356_v25 = vsub.f32 %v5895_v38, %v5894_v20  ;;  %v5897_v38 = vld [vmem:[#allocation43_spill] sm:$0xff] }
 0x3e2   : > { %v1494_v48 = vmul.f32 1.442695, %v1369_v13  ;;  %v1613_v13 = vpop.xlane.xlu0 %1612 }
 0x3e3   : > { %1570 = vadd.xlane.f32.xlu2 %v4522_v41 }
 0x3e4   : > { %3520 = vpow2.f32 %v1494_v48  ;;  %1558 = vadd.xlane.f32.xlu1 %v4524_v53  ;;  %v1468_v48 = vmul.f32 1.442695, %v1356_v25 }
 0x3e5   : > { %3522 = vpow2.f32 %v1492_v45 }
 0x3e6   : > { %3524 = vrcp.f32 %v1581_v9 }
 0x3e7   : > { %v1273_v47 = vpop.xlane.xlu1 %1272  ;;  %3526 = vpow2.f32 %v1438_v5 }
 0x3e8   : > { %3528 = vpow2.f32 %v1432_v21  ;;  %v1354_v35 = vsub.f32 %v4379_v23, %v1273_v47 }
 0x3ea   : > { %v4537_v28 = vpop.eup %3520 }
 0x3eb   : > { %v4539_v40 = vpop.eup %3522  ;;  %1600 = vadd.xlane.f32.xlu2 %v4535_v22  ;;  %1622 = vadd.xlane.f32.xlu0 %v4537_v28 }
 0x3ec   : > { %1620 = vadd.xlane.f32.xlu1 %v4539_v40  ;;  %v3525_v45 = vpop.eup %3524 }
 0x3ed   : > { %v4548_v30 = vpop.eup %3526  ;;  %v1732_v5 = vmul.f32 %v3525_v45, %v5897_v38 }
 0x3ee   : > { %v1583_v9 = vpop.xlane.xlu2 %1582  ;;  %5896 = vst [vmem:[#allocation44_spill] sm:$0xff] %v4548_v30  ;;  %v4551_v11 = vpop.eup %3528 }
 0x3ef   : > { %3530 = vrcp.f32 %v1583_v9  ;;  %v1243_v10 = vpop.xlane.xlu1 %1242  ;;  %v1796_v25 = vpack.c.bf16 %v1732_v5, %v1732_v5 }
 0x3f0   : > { %v1339_v61 = vsub.f32 %v4393_v2, %v1243_v10  ;;  %3532 = vrcp.f32 %v1613_v13 }
 0x3f1   : > { %3534 = vpow2.f32 %v1468_v48  ;;  %v1464_v48 = vmul.f32 1.442695, %v1354_v35 }
 0x3f2   : > { %v1434_v20 = vmul.f32 1.442695, %v1339_v61  ;;  %v4561_v61 = vunpack.c.l.b16 %v1796_v25 }
 0x3f3   : > { %1566 = vadd.xlane.f32.xlu2 %v4548_v30 }
 0x3f4   : > { %3536 = vpow2.f32 %v1434_v20  ;;  %1560 = vadd.xlane.f32.xlu1 %v4551_v11 }
 0x3f5   : > { %v3531_v55 = vpop.eup %3530  ;;  %3538 = vpow2.f32 %v1462_v43 }
 0x3f6   : > { %v1615_v2 = vpop.xlane.xlu2 %1614  ;;  %v1733_v21 = vmul.f32 %v3531_v55, %v4390_v42  ;;  %v3533_v39 = vpop.eup %3532 }
 0x3f7   : > { %3540 = vrcp.f32 %v1615_v2  ;;  %v1305_v13 = vpop.xlane.xlu1 %1304  ;;  %v4557_v45 = vpop.eup %3534  ;;  %v1748_v43 = vmul.f32 %v3533_v39, %v4362_v57 }
 0x3f8   : > { %v1797_v9 = vpack.c.bf16 %v1733_v21, %v1733_v21  ;;  %5898 = vst [vmem:[#allocation26_spill] sm:$0xff] %v4557_v45  ;;  %3542 = vpow2.f32 %v1464_v48  ;;  %v1370_v38 = vsub.f32 %v4400_v1, %v1305_v13  ;;  %v5902_v13 = vld [vmem:[#allocation21_spill] sm:$0xff] }
 0x3f9   : > { %v1812_v55 = vpack.c.bf16 %v1748_v43, %v1748_v43 }
 0x3fa   : > { %v4559_v10 = vpop.eup %3536  ;;  %v4563_v20 = vunpack.c.l.b16 %v1797_v9  ;;  %v1496_v21 = vmul.f32 1.442695, %v1370_v38 }
 0x3fb   : > { %v4566_v23 = vpop.eup %3538  ;;  %1596 = vadd.xlane.f32.xlu2 %v4557_v45  ;;  %1562 = vadd.xlane.f32.xlu0 %v4559_v10  ;;  %v4576_v39 = vunpack.c.l.b16 %v1812_v55 }
 0x3fc   : > { %1590 = vadd.xlane.f32.xlu1 %v4566_v23 }
 0x3fd   : > { %v3541_v47 = vpop.eup %3540  ;;  %5899 = vst [vmem:[#allocation11_spill] sm:$0xff] %v4576_v39 }
 0x3fe   : > { %v1749_v5 = vmul.f32 %v3541_v47, %v4402_v24  ;;  %v4580_v12 = vpop.eup %3542  ;;  %v5901_v24 = vld [vmem:[#allocation38_spill] sm:$0xff] }
 0x3ff   : > { %v1275_v35 = vpop.xlane.xlu1 %1274  ;;  %v1345_v48 = vsub.f32 %v5902_v13, %v5901_v24 }
 0x400   : > { %v1355_v57 = vsub.f32 %v4413_v34, %v1275_v35  ;;  %v1813_v2 = vpack.c.bf16 %v1749_v5, %v1749_v5  ;;  %v5903_v35 = vld [vmem:[#allocation41_spill] sm:$0xff] }
 0x401   : > { %v1446_v47 = vmul.f32 1.442695, %v1345_v48 }
 0x402   : > { %v1466_v25 = vmul.f32 1.442695, %v1355_v57  ;;  %v4578_v9 = vunpack.c.l.b16 %v1813_v2  ;;  %v5904_v57 = vld [vmem:[#allocation22_spill] sm:$0xff] }
 0x403   : > { %v1363_v2 = vsub.f32 %v5904_v57, %v5903_v35  ;;  %v5907_v35 = vld [vmem:[#allocation31_spill] sm:$0xff]  ;;  %v5908_v57 = vld [vmem:[#allocation34_spill] sm:$0xff] }
 0x404   : > { %5900 = vst [vmem:[#allocation43_spill] sm:$0xff] %v4578_v9  ;;  %3544 = vpow2.f32 %v1466_v25  ;;  %1592 = vadd.xlane.f32.xlu1 %v4580_v12  ;;  %v5906_v25 = vld [vmem:[#allocation5_spill] sm:$0xff] }
 0x405   : > { %3546 = vpow2.f32 %v1496_v21  ;;  %v5905_v21 = vld [vmem:[#allocation23_spill] sm:$0xff]  ;;  %v1482_v48 = vmul.f32 1.442695, %v1363_v2 }
 0x406   : > { %3548 = vrcp.f32 %v4430_v18  ;;  %v1308_v24 = vsub.f32 %v5906_v25, %v5905_v21  ;;  %v2071_v18 = vld [vmem:[%s5767_s6 + $0x8] sm:$0xff]  ;;  %v5909_v21 = vld [vmem:[#allocation18_spill] sm:$0xff]  ;;  %v5910_v25 = vld [vmem:[#allocation40_spill] sm:$0xff] }
 0x407   : > { %v1307_v34 = vpop.xlane.xlu1 %1306  ;;  %v1328_v2 = vsub.f32 %v5909_v21, %v5908_v57  ;;  %v5914_v21 = vld [vmem:[#allocation24_spill] sm:$0xff] }
 0x408   : > { %v1371_v43 = vsub.f32 %v4423_v14, %v1307_v34  ;;  %v1372_v34 = vmul.f32 1.442695, %v1308_v24  ;;  %v5911_v24 = vld [vmem:[#allocation20_spill] sm:$0xff] }
 0x409   : > { %v1412_v22 = vmul.f32 1.442695, %v1328_v2  ;;  %v5915_v2 = vld [vmem:[#allocation7_spill] sm:$0xff] }
 0x40a   : > { %v4588_v38 = vpop.eup %3544  ;;  %v1498_v5 = vmul.f32 1.442695, %v1371_v43 }
 0x40b   : > { %v4591_v55 = vpop.eup %3546  ;;  %1594 = vadd.xlane.f32.xlu0 %v4588_v38 }
 0x40c   : > { %3550 = vpow2.f32 %v1498_v5  ;;  %1624 = vadd.xlane.f32.xlu1 %v4591_v55  ;;  %v3549_v13 = vpop.eup %3548 }
 0x40d   : > { %3552 = vpow2.f32 %v1446_v47  ;;  %v1696_v47 = vmul.f32 %v3549_v13, %v5907_v35  ;;  %v2136_v13 = vld [vmem:[%s5768_s7 + $0x18] sm:$0xff] }
 0x40f   : > { %v1511_v14 = vpop.xlane.xlu1 %1510  ;;  %v1760_v45 = vpack.c.bf16 %v1696_v47, %v1696_v47 }
 0x410   : > { %3554 = vrcp.f32 %v1511_v14  ;;  %v1361_v14 = vsub.f32 %v5911_v24, %v5910_v25  ;;  %v1309_v25 = vsub.f32 %v5915_v2, %v5914_v21  ;;  %v5916_v24 = vld [vmem:[#allocation32_spill] sm:$0xff] }
 0x411   : > { %3556 = vrcp.f32 %v4432_v59  ;;  %v4625_v47 = vunpack.c.l.b16 %v1760_v45 }
 0x412   : > { %v4602_v43 = vpop.eup %3550  ;;  %3558 = vpow2.f32 %v1482_v48  ;;  %v1478_v35 = vmul.f32 1.442695, %v1361_v14  ;;  %v5917_v14 = vld [vmem:[#allocation14_spill] sm:$0xff] }
 0x413   : > { %v4605_v5 = vpop.eup %3552  ;;  %2081 = vperm.xlu2 %3395, %v2071_v18   ;;  %1626 = vadd.xlane.f32.xlu0 %v4602_v43  ;;  %3560 = vpow2.f32 %v1372_v34 }
 0x414   : > { %1574 = vadd.xlane.f32.xlu1 %v4605_v5 }
 0x416   : > { %v3555_v1 = vpop.eup %3554 }
 0x417   : > { %v1513_v42 = vpop.xlane.xlu1 %1512  ;;  %v1697_v59 = vmul.f32 %v3555_v1, %v4436_v27  ;;  %v3557_v18 = vpop.eup %3556  ;;  %v5913_v27 = vld [vmem:[#allocation36_spill] sm:$0xff] }
 0x418   : > { %3562 = vrcp.f32 %v1513_v42  ;;  %v4618_v57 = vpop.eup %3558  ;;  %v1699_v1 = vmul.f32 %v3557_v18, %v5913_v27  ;;  %v1374_v27 = vmul.f32 1.442695, %v1309_v25 }
 0x419   : > { %v1761_v48 = vpack.c.bf16 %v1697_v59, %v1697_v59  ;;  %5912 = vst [vmem:[#allocation38_spill] sm:$0xff] %v4618_v57  ;;  %3564 = vrcp.f32 %v4492_v19  ;;  %v4621_v34 = vpop.eup %3560  ;;  %v1326_v19 = vsub.f32 %v5917_v14, %v5916_v24  ;;  %v5920_v24 = vld [vmem:[#allocation33_spill] sm:$0xff]  ;;  %v5921_v14 = vld [vmem:[#allocation15_spill] sm:$0xff] }
 0x41a   : > { %3566 = vpow2.f32 %v1412_v22  ;;  %v1763_v18 = vpack.c.bf16 %v1699_v1, %v1699_v1  ;;  %v2133_v22 = vld [vmem:[%s5768_s7] sm:$0xff] }
 0x41b   : > { %2201 = vperm.xlu2 %3395, %v2136_v13   ;;  %1610 = vadd.xlane.f32.xlu0 %v4618_v57  ;;  %v4627_v42 = vunpack.c.l.b16 %v1761_v48  ;;  %3568 = vpow2.f32 %v1478_v35  ;;  %v1408_v21 = vmul.f32 1.442695, %v1326_v19  ;;  %v1342_v19 = vsub.f32 %v5921_v14, %v5920_v24 }
 0x41c   : > { %1500 = vadd.xlane.f32.xlu1 %v4621_v34  ;;  %v4648_v1 = vunpack.c.l.b16 %v1763_v18 }
 0x41e   : > { %v3563_v13 = vpop.eup %3562 }
 0x41f   : > { %v1577_v33 = vpop.xlane.xlu1 %1576  ;;  %v1698_v45 = vmul.f32 %v3563_v13, %v4447_v8  ;;  %v3565_v48 = vpop.eup %3564  ;;  %v5922_v13 = vld [vmem:[#allocation37_spill] sm:$0xff] }
 0x420   : > { %3570 = vrcp.f32 %v1577_v33  ;;  %v4640_v39 = vpop.eup %3566  ;;  %v5919_v33 = vld [vmem:[#allocation39_spill] sm:$0xff] }
 0x421   : > { %v1762_v2 = vpack.c.bf16 %v1698_v45, %v1698_v45  ;;  %3572 = vrcp.f32 %v4443_v62  ;;  %v4643_v35 = vpop.eup %3568  ;;  %v1731_v25 = vmul.f32 %v3565_v48, %v5919_v33  ;;  %v5923_v62 = vld [vmem:[#allocation19_spill] sm:$0xff]  ;;  %v1440_v48 = vmul.f32 1.442695, %v1342_v19 }
 0x422   : > { %5918 = vst [vmem:[#allocation21_spill] sm:$0xff] %v4643_v35  ;;  %3574 = vpow2.f32 %v1374_v27  ;;  %v1359_v45 = vsub.f32 %v5923_v62, %v5922_v13  ;;  %v2138_v27 = vld [vmem:[%s5769_s8 + $0x8] sm:$0xff]  ;;  %v4666_v62 = vpop.xlane.xlu0 %1552 }
 0x423   : > { %2186 = vperm.xlu2 %3395, %v2133_v22   ;;  %1540 = vadd.xlane.f32.xlu0 %v4640_v39  ;;  %v4646_v8 = vunpack.c.l.b16 %v1762_v2  ;;  %3576 = vpow2.f32 %v1408_v21  ;;  %v1795_v9 = vpack.c.bf16 %v1731_v25, %v1731_v25  ;;  %v1585_v21 = vpop.xlane.xlu2 %1584 }
 0x424   : > { %1606 = vadd.xlane.f32.xlu1 %v4643_v35  ;;  %v1474_v33 = vmul.f32 1.442695, %v1359_v45  ;;  %v5929_v45 = vld [vmem:[#allocation16_spill] sm:$0xff]  ;;  %v5931_v35 = vld [vmem:[#allocation10_spill] sm:$0xff] }
 0x425   : > { %v4672_v19 = vunpack.c.l.b16 %v1795_v9 }
 0x426   : > { %v3571_v59 = vpop.eup %3570 }
 0x427   : > { %v1547_v2 = vpop.xlane.xlu1 %1546  ;;  %v1730_v18 = vmul.f32 %v3571_v59, %v4456_v36  ;;  %v3573_v56 = vpop.eup %3572  ;;  %v5925_v36 = vld [vmem:[#allocation35_spill] sm:$0xff]  ;;  %5927 = vst [vmem:[#allocation23_spill] sm:$0xff] %v4672_v19 }
 0x428   : > { %3578 = vrcp.f32 %v1547_v2  ;;  %v4662_v14 = vpop.eup %3574  ;;  %v1714_v59 = vmul.f32 %v3573_v56, %v5925_v36  ;;  %v5928_v2 = vld [vmem:[#allocation29_spill] sm:$0xff] }
 0x429   : > { %v1794_v24 = vpack.c.bf16 %v1730_v18, %v1730_v18  ;;  %v4664_v13 = vpop.eup %3576  ;;  %3580 = vpow2.f32 %v1440_v48  ;;  %v1327_v22 = vsub.f32 %v5929_v45, %v5928_v2  ;;  %v5930_v18 = vld [vmem:[#allocation25_spill] sm:$0xff]  ;;  %v2262_v48 = vld [vmem:[%s5771_s10 + $0x60] sm:$0xff] }
 0x42a   : > { %5924 = vst [vmem:[#allocation41_spill] sm:$0xff] %v4664_v13  ;;  %v1324_v57 = vsub.f32 %v5931_v35, %v5930_v18  ;;  %3582 = vpow2.f32 %v1474_v33  ;;  %v1778_v9 = vpack.c.bf16 %v1714_v59, %v1714_v59  ;;  %v5936_v59 = vld [vmem:[#allocation8_spill] sm:$0xff] }
 0x42b   : > { %2215 = vperm.xlu2 %3395, %v2138_v27   ;;  %1502 = vadd.xlane.f32.xlu0 %v4662_v14  ;;  %v4670_v25 = vunpack.c.l.b16 %v1794_v24  ;;  %v1410_v24 = vmul.f32 1.442695, %v1327_v22  ;;  %3584 = vrcp.f32 %v4531_v7  ;;  %v4692_v33 = vpop.xlane.xlu2 %1554  ;;  %v5935_v22 = vld [vmem:[#allocation27_spill] sm:$0xff]  ;;  %v5938_v7 = vld [vmem:[#allocation17_spill] sm:$0xff]  ;;  %v1525_v27 = vpop.xlane.xlu0 %1524 }
 0x42c   : > { %1536 = vadd.xlane.f32.xlu1 %v4664_v13  ;;  %v1404_v36 = vmul.f32 1.442695, %v1324_v57  ;;  %v1340_v18 = vsub.f32 %v5936_v59, %v5935_v22  ;;  %v5937_v57 = vld [vmem:[#allocation30_spill] sm:$0xff]  ;;  %v5940_v59 = vld [vmem:[#allocation45_spill] sm:$0xff] }
 0x42d   : > { %5926 = vst [vmem:[#allocation22_spill] sm:$0xff] %v4670_v25  ;;  %3586 = vpow2.f32 %v1410_v24 }
 0x42e   : > { %v3579_v30 = vpop.eup %3578  ;;  %3588 = vpow2.f32 %v1404_v36 }
 0x42f   : > { %v4681_v41 = vpop.xlane.xlu1 %1608  ;;  %v1715_v56 = vmul.f32 %v3579_v30, %v4467_v58  ;;  %v4687_v45 = vpop.eup %3580  ;;  %v4695_v58 = vunpack.c.l.b16 %v1778_v9  ;;  %v1436_v9 = vmul.f32 1.442695, %v1340_v18 }
 0x430   : > { %5932 = vst [vmem:[#allocation5_spill] sm:$0xff] %v4681_v41  ;;  %v4690_v35 = vpop.eup %3582 }
 0x431   : > { %v1779_v2 = vpack.c.bf16 %v1715_v56, %v1715_v56  ;;  %5933 = vst [vmem:[#allocation31_spill] sm:$0xff] %v4687_v45  ;;  %v1357_v56 = vsub.f32 %v5938_v7, %v5937_v57  ;;  %v3585_v13 = vpop.eup %3584  ;;  %v5941_v7 = vld [vmem:[#allocation28_spill] sm:$0xff] }
 0x432   : > { %5934 = vst [vmem:[#allocation34_spill] sm:$0xff] %v4690_v35  ;;  %v1717_v57 = vmul.f32 %v3585_v13, %v5940_v59  ;;  %v2256_v13 = vld [vmem:[%s5771_s10 + $0x30] sm:$0xff] }
 0x433   : > { %2328 = vperm.xlu2 %3395, %v2262_v48   ;;  %1568 = vadd.xlane.f32.xlu0 %v4687_v45  ;;  %v4697_v30 = vunpack.c.l.b16 %v1779_v2  ;;  %v2261_v2 = vld [vmem:[%s5771_s10 + $0x58] sm:$0xff]  ;;  %v1470_v22 = vmul.f32 1.442695, %v1357_v56  ;;  %v4709_v24 = vpop.eup %3586  ;;  %v5942_v48 = vld [vmem:[#allocation12_spill] sm:$0xff]  ;;  %v1531_v56 = vpop.xlane.xlu0 %1530 }
 0x434   : > { %1602 = vadd.xlane.f32.xlu1 %v4690_v35  ;;  %v4711_v36 = vpop.eup %3588  ;;  %v1325_v18 = vsub.f32 %v5942_v48, %v5941_v7  ;;  %v1781_v25 = vpack.c.bf16 %v1717_v57, %v1717_v57 }
 0x435   : > { %5939 = vst [vmem:[#allocation18_spill] sm:$0xff] %v4711_v36 }
 0x437   : > { %v1549_v41 = vpop.xlane.xlu1 %1548 }
 0x438   : > { %3590 = vrcp.f32 %v1549_v41  ;;  %v1527_v41 = vpop.xlane.xlu2 %1526 }
 0x439   : > { %3592 = vrcp.f32 %v1585_v21 }
 0x43a   : > { %3594 = vpow2.f32 %v1436_v9 }
 0x43b   : > { %2323 = vperm.xlu2 %3395, %v2261_v2   ;;  %1538 = vadd.xlane.f32.xlu0 %v4709_v24  ;;  %3596 = vpow2.f32 %v1470_v22  ;;  %v1406_v2 = vmul.f32 1.442695, %v1325_v18 }
 0x43c   : > { %1532 = vadd.xlane.f32.xlu1 %v4711_v36 }
 0x43e   : > { %v3591_v35 = vpop.eup %3590 }
 0x43f   : > { %v1587_v45 = vpop.xlane.xlu1 %1586  ;;  %v1716_v21 = vmul.f32 %v3591_v35, %v4483_v52  ;;  %v3593_v19 = vpop.eup %3592  ;;  %v4729_v52 = vunpack.c.l.b16 %v1781_v25  ;;  %v2255_v25 = vld [vmem:[%s5771_s10 + $0x28] sm:$0xff] }
 0x440   : > { %3598 = vrcp.f32 %v1587_v45  ;;  %v4722_v59 = vpop.eup %3594  ;;  %v1734_v35 = vmul.f32 %v3593_v19, %v4410_v4  ;;  %v1617_v7 = vpop.xlane.xlu2 %1616 }
 0x441   : > { %v1780_v9 = vpack.c.bf16 %v1716_v21, %v1716_v21  ;;  %3600 = vrcp.f32 %v1531_v56  ;;  %v4724_v48 = vpop.eup %3596 }
 0x442   : > { %5943 = vst [vmem:[#allocation40_spill] sm:$0xff] %v4724_v48  ;;  %3602 = vpow2.f32 %v1406_v2  ;;  %v1798_v21 = vpack.c.bf16 %v1734_v35, %v1734_v35 }
 0x443   : > { %2298 = vperm.xlu2 %3395, %v2256_v13   ;;  %1564 = vadd.xlane.f32.xlu0 %v4722_v59  ;;  %v4727_v22 = vunpack.c.l.b16 %v1780_v9  ;;  %3604 = vrcp.f32 %v1527_v41 }
 0x444   : > { %1598 = vadd.xlane.f32.xlu1 %v4724_v48  ;;  %v4743_v2 = vunpack.c.l.b16 %v1798_v21 }
 0x446   : > { %v3599_v57 = vpop.eup %3598 }
 0x447   : > { %v1529_v18 = vpop.xlane.xlu1 %1528  ;;  %v1735_v56 = vmul.f32 %v3599_v57, %v4494_v32  ;;  %v3601_v13 = vpop.eup %3600 }
 0x448   : > { %3606 = vrcp.f32 %v1529_v18  ;;  %v4739_v19 = vpop.eup %3602  ;;  %v1707_v41 = vmul.f32 %v3601_v13, %v4404_v31  ;;  %v2250_v31 = vld [vmem:[%s5771_s10] sm:$0xff] }
 0x449   : > { %3608 = vrcp.f32 %v1525_v27  ;;  %v1799_v4 = vpack.c.bf16 %v1735_v56, %v1735_v56  ;;  %5944 = vst [vmem:[#allocation20_spill] sm:$0xff] %v4739_v19  ;;  %v3605_v9 = vpop.eup %3604 }
 0x44a   : > { %3610 = vrcp.f32 %v1617_v7  ;;  %v1771_v56 = vpack.c.bf16 %v1707_v41, %v1707_v41  ;;  %v1705_v13 = vmul.f32 %v3605_v9, %v4434_v17 }
 0x44b   : > { %2293 = vperm.xlu2 %3395, %v2255_v25   ;;  %1534 = vadd.xlane.f32.xlu0 %v4739_v19  ;;  %v4745_v32 = vunpack.c.l.b16 %v1799_v4  ;;  %3612 = vrcp.f32 %v4533_v37 }
 0x44c   : > { %v1851_v35 = vunpack.c.l.b16 %v1771_v56  ;;  %v5945_v56 = vld [vmem:[#allocation46_spill] sm:$0xff] }
 0x44e   : > { %v3607_v57 = vpop.eup %3606 }
 0x44f   : > { %v3609_v18 = vpop.eup %3608  ;;  %v1619_v27 = vpop.xlane.xlu1 %1618  ;;  %v1706_v7 = vmul.f32 %v3607_v57, %v4503_v26  ;;  %v1769_v57 = vpack.c.bf16 %v1705_v13, %v1705_v13 }
 0x450   : > { %v3611_v25 = vpop.eup %3610  ;;  %3614 = vrcp.f32 %v1619_v27  ;;  %v1704_v37 = vmul.f32 %v3609_v18, %v4388_v29 }
 0x451   : > { %v1770_v21 = vpack.c.bf16 %v1706_v7, %v1706_v7  ;;  %3616 = vrcp.f32 %v4508_v49  ;;  %v1750_v45 = vmul.f32 %v3611_v25, %v4445_v44  ;;  %v3613_v26 = vpop.eup %3612  ;;  %v3112_v49 = vld [vmem:[%s5773_s12 + $0x8] sm:$0xff]  ;;  %v1849_v9 = vunpack.c.l.b16 %v1769_v57  ;;  %v2072_v44 = vld [vmem:[%s5767_s6 + $0x10] sm:$0xff]  ;;  %v5946_v25 = vld [vmem:[#allocation42_spill] sm:$0xff] }
 0x452   : > { %v1768_v19 = vpack.c.bf16 %v1704_v37, %v1704_v37  ;;  %v1703_v29 = vmul.f32 %v3613_v26, %v5945_v56  ;;  %v2139_v57 = vld [vmem:[%s5769_s8 + $0x10] sm:$0xff] }
 0x453   : > { %2268 = vperm.xlu2 %3395, %v2250_v31   ;;  %v1850_v4 = vunpack.c.l.b16 %v1770_v21  ;;  %v1814_v36 = vpack.c.bf16 %v1750_v45, %v1750_v45  ;;  %v2070_v45 = vld [vmem:[%s5767_s6] sm:$0xff] }
 0x455   : > { %v1859_v41 = vpack.c.b16 %v1851_v35, %v1850_v4  ;;  %v1848_v35 = vunpack.c.l.b16 %v1768_v19  ;;  %v4767_v21 = vunpack.c.l.b16 %v1814_v36  ;;  %v1767_v4 = vpack.c.bf16 %v1703_v29, %v1703_v29 }
 0x456   : > { %v3615_v27 = vpop.eup %3614 }
 0x457   : > { %1868 = vmatpush.bf16.xpose.msrb.mxu1 %v1859_v41  ;;  %v1559_v48 = vpop.xlane.xlu1 %1558  ;;  %v1751_v7 = vmul.f32 %v3615_v27, %v4514_v15  ;;  %v3617_v17 = vpop.eup %3616  ;;  %v1858_v13 = vpack.c.b16 %v1849_v9, %v1848_v35  ;;  %v1847_v36 = vunpack.c.l.b16 %v1767_v4 }
 0x458   : > { %v1702_v31 = vmul.f32 %v3617_v17, %v5946_v25  ;;  %v1557_v35 = vpop.xlane.xlu2 %1556  ;;  %v2134_v25 = vld [vmem:[%s5768_s7 + $0x8] sm:$0xff] }
 0x459   : > { %v1815_v18 = vpack.c.bf16 %v1751_v7, %v1751_v7  ;;  %v2073_v7 = vld [vmem:[%s5767_s6 + $0x18] sm:$0xff] }
 0x45a   : > { %v1766_v41 = vpack.c.bf16 %v1702_v31, %v1702_v31 }
 0x45b   : > { %3122 = vperm.xlu2 %3395, %v3112_v49   ;;  %v4769_v15 = vunpack.c.l.b16 %v1815_v18 }
 0x45c   : > { %v1846_v27 = vunpack.c.l.b16 %v1766_v41 }
 0x45d   : > { %2086 = vperm.xlu1 %3394, %v2072_v44   ;;  %v2040_v37 = vpack.c.b16 %v4769_v15, %v4767_v21  ;;  %v5967_v21 = vld [vmem:[#allocation20_spill] sm:$0xff] }
 0x45e   : > { %v1623_v26 = vpop.xlane.xlu0 %1622  ;;  %v1857_v17 = vpack.c.b16 %v1847_v36, %v1846_v27 }
 0x45f   : > { %2076 = vperm.xlu0 %3393, %v2070_v45   ;;  %1869 = vmatpush.bf16.xpose.msrb.mxu1 %v1858_v13  ;;  %v1621_v19 = vpop.xlane.xlu1 %1620  ;;  %3618 = vrcp.f32 %v1623_v26  ;;  %v2135_v13 = vld [vmem:[%s5768_s7 + $0x10] sm:$0xff]  ;;  %v5947_v26 = vpack.c.b16 %v4465_v51, %v4463_v3  ;;  %v5948_v3 = vpack.c.b16 %v4648_v1, %v4646_v8 }
 0x460   : > { %3620 = vrcp.f32 %v1621_v19  ;;  %v1589_v36 = vpop.xlane.xlu2 %1588 }
 0x465   : > { %2220 = vperm.xlu1 %3394, %v2139_v57   ;;  %v3619_v49 = vpop.eup %3618  ;;  %v2264_v57 = vld [vmem:[%s5771_s10 + $0x70] sm:$0xff] }
 0x466   : > { %v3621_v9 = vpop.eup %3620  ;;  %v1753_v29 = vmul.f32 %v3619_v49, %v4537_v28 }
 0x467   : > { %2091 = vperm.xlu0 %3393, %v2073_v7   ;;  %1870 = vmatpush.bf16.xpose.msrb.mxu1 %v1857_v17  ;;  %v1561_v56 = vpop.xlane.xlu1 %1560  ;;  %v1752_v18 = vmul.f32 %v3621_v9, %v4539_v40 }
 0x468   : > { %v1817_v44 = vpack.c.bf16 %v1753_v29, %v1753_v29  ;;  %3622 = vrcp.f32 %v1561_v56 }
 0x469   : > { %v1816_v31 = vpack.c.bf16 %v1752_v18, %v1752_v18  ;;  %3624 = vrcp.f32 %v1559_v48  ;;  %v2140_v48 = vld [vmem:[%s5769_s8 + $0x18] sm:$0xff]  ;;  %v2263_v18 = vld [vmem:[%s5771_s10 + $0x68] sm:$0xff] }
 0x46a   : > { %v4787_v45 = vunpack.c.l.b16 %v1817_v44 }
 0x46b   : > { %v4792_v4 = vunpack.c.l.b16 %v1816_v31 }
 0x46d   : > { %2191 = vperm.xlu1 %3394, %v2134_v25   ;;  %v2041_v40 = vpack.c.b16 %v4787_v45, %v4792_v4 }
 0x46e   : > { %v1563_v28 = vpop.xlane.xlu0 %1562  ;;  %v3623_v41 = vpop.eup %3622 }
 0x46f   : > { %2196 = vperm.xlu0 %3393, %v2135_v13   ;;  %1871 = vmatpush.bf16.xpose.msrb.mxu1 %v5947_v26  ;;  %v1591_v19 = vpop.xlane.xlu1 %1590  ;;  %3626 = vrcp.f32 %v1563_v28  ;;  %v1722_v27 = vmul.f32 %v3623_v41, %v4551_v11  ;;  %v3625_v7 = vpop.eup %3624  ;;  %v5949_v26 = vpack.c.b16 %v4627_v42, %v4625_v47 }
 0x470   : > { %3628 = vrcp.f32 %v1557_v35  ;;  %v1721_v29 = vmul.f32 %v3625_v7, %v4524_v53  ;;  %v4817_v35 = vpop.xlane.xlu2 %1572 }
 0x471   : > { %v1786_v9 = vpack.c.bf16 %v1722_v27, %v1722_v27  ;;  %3630 = vrcp.f32 %v4692_v33 }
 0x472   : > { %v1785_v25 = vpack.c.bf16 %v1721_v29, %v1721_v29 }
 0x473   : > { %v1911_v44 = vunpack.c.l.b16 %v1786_v9 }
 0x474   : > { %v1910_v41 = vunpack.c.l.b16 %v1785_v25 }
 0x475   : > { %2338 = vperm.xlu1 %3394, %v2264_v57   ;;  %v3627_v17 = vpop.eup %3626 }
 0x476   : > { %v1723_v49 = vmul.f32 %v3627_v17, %v4559_v10  ;;  %v3629_v56 = vpop.eup %3628  ;;  %v2137_v10 = vld [vmem:[%s5769_s8] sm:$0xff] }
 0x477   : > { %2225 = vperm.xlu0 %3393, %v2140_v48   ;;  %1872 = vmatpush.bf16.xpose.msrb.mxu1 %v5948_v3  ;;  %v1593_v51 = vpop.xlane.xlu1 %1592  ;;  %v1720_v1 = vmul.f32 %v3629_v56, %v4453_v54  ;;  %v3631_v53 = vpop.eup %3630  ;;  %v2265_v3 = vld [vmem:[%s5771_s10 + $0x78] sm:$0xff] }
 0x478   : > { %3632 = vrcp.f32 %v1593_v51  ;;  %v1787_v11 = vpack.c.bf16 %v1723_v49, %v1723_v49  ;;  %v1719_v57 = vmul.f32 %v3631_v53, %v4420_v63  ;;  %v1543_v51 = vpop.xlane.xlu2 %1542  ;;  %v2260_v53 = vld [vmem:[%s5771_s10 + $0x50] sm:$0xff] }
 0x479   : > { %3634 = vrcp.f32 %v4666_v62  ;;  %v1784_v28 = vpack.c.bf16 %v1720_v1, %v1720_v1 }
 0x47a   : > { %v1912_v8 = vunpack.c.l.b16 %v1787_v11  ;;  %3636 = vrcp.f32 %v1591_v19  ;;  %v2258_v19 = vld [vmem:[%s5771_s10 + $0x40] sm:$0xff] }
 0x47b   : > { %v1909_v48 = vunpack.c.l.b16 %v1784_v28 }
 0x47c   : > { %v1920_v33 = vpack.c.b16 %v1912_v8, %v1911_v44  ;;  %v2257_v8 = vld [vmem:[%s5771_s10 + $0x38] sm:$0xff] }
 0x47d   : > { %2333 = vperm.xlu1 %3394, %v2263_v18   ;;  %v1919_v42 = vpack.c.b16 %v1910_v41, %v1909_v48  ;;  %v5951_v48 = vpack.c.b16 %v4729_v52, %v4727_v22 }
 0x47e   : > { %v1595_v62 = vpop.xlane.xlu0 %1594  ;;  %v3633_v31 = vpop.eup %3632  ;;  %1929 = vmatpush.bf16.xpose.msrb.mxu2 %v1920_v33 }
 0x47f   : > { %3638 = vrcp.f32 %v1595_v62  ;;  %2210 = vperm.xlu0 %3393, %v2137_v10   ;;  %v4822_v13 = vpop.xlane.xlu1 %1624  ;;  %v3635_v54 = vpop.eup %3634  ;;  %1873 = vmatpush.bf16.xpose.msrb.mxu1 %v5949_v26  ;;  %v1738_v27 = vmul.f32 %v3633_v31, %v4580_v12 }
 0x480   : > { %3640 = vrcp.f32 %v1589_v36  ;;  %v1718_v7 = vmul.f32 %v3635_v54, %v4381_v6  ;;  %v3637_v17 = vpop.eup %3636  ;;  %v1783_v36 = vpack.c.bf16 %v1719_v57, %v1719_v57  ;;  %v5950_v6 = vpack.c.b16 %v4369_v16, %v4367_v46  ;;  %v4850_v28 = vpop.xlane.xlu2 %1604  ;;  %v2259_v57 = vld [vmem:[%s5771_s10 + $0x48] sm:$0xff] }
 0x481   : > { %v1802_v9 = vpack.c.bf16 %v1738_v27, %v1738_v27  ;;  %v1737_v18 = vmul.f32 %v3637_v17, %v4566_v23  ;;  %3642 = vrcp.f32 %v1543_v51  ;;  %v5952_v51 = vpack.c.b16 %v4745_v32, %v4743_v2  ;;  %v3113_v2 = vld [vmem:[%s5773_s12 + $0x10] sm:$0xff] }
 0x482   : > { %v1782_v11 = vpack.c.bf16 %v1718_v7, %v1718_v7  ;;  %v1908_v44 = vunpack.c.l.b16 %v1783_v36 }
 0x483   : > { %v1972_v1 = vunpack.c.l.b16 %v1802_v9  ;;  %v1801_v46 = vpack.c.bf16 %v1737_v18, %v1737_v18 }
 0x484   : > { %v1907_v33 = vunpack.c.l.b16 %v1782_v11 }
 0x485   : > { %v3639_v47 = vpop.eup %3638  ;;  %2308 = vperm.xlu1 %3394, %v2258_v19   ;;  %v1971_v54 = vunpack.c.l.b16 %v1801_v46 }
 0x486   : > { %v1627_v63 = vpop.xlane.xlu0 %1626  ;;  %v1739_v49 = vmul.f32 %v3639_v47, %v4588_v38  ;;  %v3641_v56 = vpop.eup %3640  ;;  %1930 = vmatpush.bf16.xpose.msrb.mxu2 %v1919_v42  ;;  %v1918_v16 = vpack.c.b16 %v1908_v44, %v1907_v33  ;;  %v2254_v42 = vld [vmem:[%s5771_s10 + $0x20] sm:$0xff] }
 0x487   : > { %2343 = vperm.xlu0 %3393, %v2265_v3   ;;  %v1575_v12 = vpop.xlane.xlu1 %1574  ;;  %1874 = vmatpush.bf16.xpose.msrb.mxu1 %v5950_v6  ;;  %v1736_v10 = vmul.f32 %v3641_v56, %v4481_v0  ;;  %v2252_v0 = vld [vmem:[%s5771_s10 + $0x10] sm:$0xff]  ;;  %v3643_v27 = vpop.eup %3642  ;;  %v2251_v3 = vld [vmem:[%s5771_s10 + $0x8] sm:$0xff] }
 0x488   : > { %v1803_v29 = vpack.c.bf16 %v1739_v49, %v1739_v49  ;;  %v1571_v17 = vpop.xlane.xlu2 %1570  ;;  %v1713_v47 = vmul.f32 %v3643_v27, %v4501_v60  ;;  %v5953_v60 = vpack.c.b16 %v4697_v30, %v4695_v58  ;;  %v5956_v27 = vld [vmem:[#allocation22_spill] sm:$0xff] }
 0x489   : > { %v1800_v23 = vpack.c.bf16 %v1736_v10, %v1736_v10 }
 0x48a   : > { %v1973_v38 = vunpack.c.l.b16 %v1803_v29 }
 0x48b   : > { %v1970_v26 = vunpack.c.l.b16 %v1800_v23 }
 0x48c   : > { %v1981_v25 = vpack.c.b16 %v1973_v38, %v1972_v1  ;;  %v5954_v1 = vpack.c.b16 %v4563_v20, %v4561_v61 }
 0x48d   : > { %2303 = vperm.xlu1 %3394, %v2257_v8   ;;  %v1980_v41 = vpack.c.b16 %v1971_v54, %v1970_v26 }
 0x48e   : > { %v4848_v62 = vpop.xlane.xlu0 %1610  ;;  %1990 = vmatpush.bf16.xpose.msrb.mxu3 %v1981_v25  ;;  %1931 = vmatpush.bf16.xpose.msrb.mxu2 %v1918_v16 }
 0x48f   : > { %2318 = vperm.xlu0 %3393, %v2260_v53   ;;  %v1501_v31 = vpop.xlane.xlu1 %1500 }
 0x490   : > { %v4885_v30 = vpop.xlane.xlu2 %1600 }
 0x495   : > { %2278 = vperm.xlu1 %3394, %v2252_v0  }
 0x496   : > { %v1541_v19 = vpop.xlane.xlu0 %1540  ;;  %1991 = vmatpush.bf16.xpose.msrb.mxu3 %v1980_v41  ;;  %1932 = vmatpush.bf16.xpose.msrb.mxu2 %v5951_v48 }
 0x497   : > { %3644 = vrcp.f32 %v1541_v19  ;;  %2313 = vperm.xlu0 %3393, %v2259_v57   ;;  %v4861_v7 = vpop.xlane.xlu1 %1606  ;;  %v5955_v19 = vld [vmem:[#allocation23_spill] sm:$0xff] }
 0x498   : > { %3646 = vrcp.f32 %v1627_v63  ;;  %v1777_v63 = vpack.c.bf16 %v1713_v47, %v1713_v47  ;;  %v1567_v57 = vpop.xlane.xlu2 %1566  ;;  %v5957_v48 = vpack.c.b16 %v5955_v19, %v5956_v27  ;;  %v5958_v47 = vld [vmem:[#allocation31_spill] sm:$0xff] }
 0x499   : > { %3648 = vrcp.f32 %v1501_v31  ;;  %v3111_v31 = vld [vmem:[%s5773_s12] sm:$0xff] }
 0x49a   : > { %3650 = vrcp.f32 %v4822_v13  ;;  %v1902_v32 = vunpack.c.l.b16 %v1777_v63  ;;  %v5961_v63 = vld [vmem:[#allocation3_spill] sm:$0xff] }
 0x49b   : > { %3652 = vrcp.f32 %v1575_v12 }
 0x49d   : > { %v3645_v22 = vpop.eup %3644  ;;  %2273 = vperm.xlu1 %3394, %v2251_v3  }
 0x49e   : > { %v3647_v52 = vpop.eup %3646  ;;  %v1503_v36 = vpop.xlane.xlu0 %1502  ;;  %1992 = vmatpush.bf16.xpose.msrb.mxu3 %v5952_v51  ;;  %v1712_v13 = vmul.f32 %v3645_v22, %v4640_v39  ;;  %1933 = vmatpush.bf16.xpose.msrb.mxu2 %v5953_v60  ;;  %v5960_v51 = vld [vmem:[#allocation49_spill] sm:$0xff] }
 0x49f   : > { %v3649_v49 = vpop.eup %3648  ;;  %3654 = vrcp.f32 %v1503_v36  ;;  %2288 = vperm.xlu0 %3393, %v2254_v42   ;;  %v1755_v12 = vmul.f32 %v3647_v52, %v4602_v43  ;;  %v1537_v11 = vpop.xlane.xlu1 %1536  ;;  %v5959_v52 = vld [vmem:[#allocation41_spill] sm:$0xff] }
 0x4a0   : > { %v3651_v9 = vpop.eup %3650  ;;  %v1776_v56 = vpack.c.bf16 %v1712_v13, %v1712_v13  ;;  %3656 = vrcp.f32 %v4817_v35  ;;  %v1692_v6 = vmul.f32 %v3649_v49, %v4621_v34  ;;  %v2253_v35 = vld [vmem:[%s5771_s10 + $0x18] sm:$0xff]  ;;  %v662_v49 = vpack.c.bf16 %v5961_v63, %v5961_v63 }
 0x4a1   : > { %v1754_v29 = vmul.f32 %v3651_v9, %v4591_v55  ;;  %v3653_v58 = vpop.eup %3652  ;;  %v1819_v44 = vpack.c.bf16 %v1755_v12, %v1755_v12  ;;  %v3114_v9 = vld [vmem:[%s5773_s12 + $0x18] sm:$0xff] }
 0x4a2   : > { %v1901_v39 = vunpack.c.l.b16 %v1776_v56  ;;  %v1756_v38 = vpack.c.bf16 %v1692_v6, %v1692_v6  ;;  %v1729_v25 = vmul.f32 %v3653_v58, %v4605_v5 }
 0x4a3   : > { %v1818_v10 = vpack.c.bf16 %v1754_v29, %v1754_v29  ;;  %v2034_v53 = vunpack.c.l.b16 %v1819_v44 }
 0x4a4   : > { %v1915_v18 = vpack.c.b16 %v1902_v32, %v1901_v39  ;;  %v1836_v46 = vunpack.c.l.b16 %v1756_v38  ;;  %v1793_v54 = vpack.c.bf16 %v1729_v25, %v1729_v25 }
 0x4a5   : > { %v3655_v43 = vpop.eup %3654  ;;  %3127 = vperm.xlu1 %3394, %v3113_v2   ;;  %v2033_v61 = vunpack.c.l.b16 %v1818_v10 }
 0x4a6   : > { %v1569_v8 = vpop.xlane.xlu0 %1568  ;;  %1993 = vmatpush.bf16.xpose.msrb.mxu3 %v5954_v1  ;;  %v1693_v34 = vmul.f32 %v3655_v43, %v4662_v14  ;;  %v3657_v55 = vpop.eup %3656  ;;  %1934 = vmatpush.bf16.xpose.msrb.mxu2 %v1915_v18  ;;  %v1963_v3 = vunpack.c.l.b16 %v1793_v54  ;;  %v5963_v1 = vld [vmem:[#allocation44_spill] sm:$0xff] }
 0x4a7   : > { %3658 = vrcp.f32 %v1569_v8  ;;  %2283 = vperm.xlu0 %3393, %v2253_v35   ;;  %v1728_v23 = vmul.f32 %v3657_v55, %v4490_v50  ;;  %v4896_v20 = vpop.xlane.xlu1 %1602  ;;  %v2042_v26 = vpack.c.b16 %v2034_v53, %v2033_v61  ;;  %v5964_v53 = vld [vmem:[#allocation38_spill] sm:$0xff] }
 0x4a8   : > { %3660 = vrcp.f32 %v1571_v17  ;;  %v1757_v33 = vpack.c.bf16 %v1693_v34, %v1693_v34  ;;  %v5965_v61 = vld [vmem:[#allocation18_spill] sm:$0xff] }
 0x4a9   : > { %3662 = vrcp.f32 %v1537_v11  ;;  %v1792_v50 = vpack.c.bf16 %v1728_v23, %v1728_v23  ;;  %v5962_v11 = vld [vmem:[#allocation5_spill] sm:$0xff] }
 0x4aa   : > { %v1837_v16 = vunpack.c.l.b16 %v1757_v33 }
 0x4ab   : > { %v1962_v22 = vunpack.c.l.b16 %v1792_v50  ;;  %v5971_v50 = vld [vmem:[#allocation21_spill] sm:$0xff] }
 0x4ac   : > { %v1852_v14 = vpack.c.b16 %v1837_v16, %v1836_v46 }
 0x4ad   : > { %v3659_v0 = vpop.eup %3658  ;;  %v1976_v60 = vpack.c.b16 %v1963_v3, %v1962_v22 }
 0x4ae   : > { %v3661_v41 = vpop.eup %3660  ;;  %v1539_v5 = vpop.xlane.xlu0 %1538  ;;  %1875 = vmatpush.bf16.xpose.msrb.mxu1 %v1852_v14  ;;  %1994 = vmatpush.bf16.xpose.msrb.mxu3 %v5957_v48  ;;  %v1726_v42 = vmul.f32 %v3659_v0, %v5958_v47 }
 0x4af   : > { %v3663_v17 = vpop.eup %3662  ;;  %3664 = vrcp.f32 %v1539_v5  ;;  %3117 = vperm.xlu0 %3393, %v3111_v31   ;;  %v1727_v13 = vmul.f32 %v3661_v41, %v5960_v51  ;;  %v1533_v2 = vpop.xlane.xlu1 %1532  ;;  %v5966_v31 = vld [vmem:[#allocation47_spill] sm:$0xff] }
 0x4b0   : > { %3666 = vrcp.f32 %v1567_v57  ;;  %v1710_v36 = vmul.f32 %v3663_v17, %v5959_v52  ;;  %v1790_v56 = vpack.c.bf16 %v1726_v42, %v1726_v42  ;;  %v5969_v57 = vld [vmem:[#allocation11_spill] sm:$0xff]  ;;  %v5972_v42 = vld [vmem:[#allocation6_spill] sm:$0xff] }
 0x4b1   : > { %3668 = vrcp.f32 %v5962_v11  ;;  %v1791_v29 = vpack.c.bf16 %v1727_v13, %v1727_v13  ;;  %v664_v22 = vpack.c.bf16 %v5972_v42, %v5972_v42  ;;  %v5974_v11 = vld [vmem:[#allocation34_spill] sm:$0xff] }
 0x4b2   : > { %v1774_v6 = vpack.c.bf16 %v1710_v36, %v1710_v36  ;;  %v1960_v35 = vunpack.c.l.b16 %v1790_v56  ;;  %v5973_v36 = vld [vmem:[#allocation48_spill] sm:$0xff] }
 0x4b3   : > { %v1961_v8 = vunpack.c.l.b16 %v1791_v29  ;;  %v5976_v29 = vld [vmem:[#allocation13_spill] sm:$0xff] }
 0x4b4   : > { %v1899_v43 = vunpack.c.l.b16 %v1774_v6 }
 0x4b5   : > { %v3665_v12 = vpop.eup %3664  ;;  %1876 = vmatmul.bf16.vlgmr.msrb.gmra.mxu1 %v662_v49  ;;  %v1975_v55 = vpack.c.b16 %v1961_v8, %v1960_v35 }
 0x4b6   : > { %2051 = vmatpush.bf16.xpose.msra.mxu1 %v2042_v26  ;;  %v1565_v39 = vpop.xlane.xlu0 %1564  ;;  %1995 = vmatpush.bf16.xpose.msrb.mxu3 %v1976_v60  ;;  %v1711_v32 = vmul.f32 %v3665_v12, %v4709_v24  ;;  %v3667_v58 = vpop.eup %3666 }
 0x4b7   : > { %3670 = vrcp.f32 %v1565_v39  ;;  %3132 = vperm.xlu0 %3393, %v3114_v9   ;;  %v1725_v34 = vmul.f32 %v3667_v58, %v5963_v1  ;;  %v3669_v24 = vpop.eup %3668  ;;  %v1599_v63 = vpop.xlane.xlu1 %1598  ;;  %v5975_v39 = vld [vmem:[#allocation4_spill] sm:$0xff] }
 0x4b8   : > { %3672 = vrcp.f32 %v4848_v62  ;;  %v1775_v18 = vpack.c.bf16 %v1711_v32, %v1711_v32  ;;  %v1597_v9 = vpop.xlane.xlu2 %1596  ;;  %v663_v32 = vpack.c.bf16 %v5975_v39, %v5975_v39 }
 0x4b9   : > { %3674 = vrcp.f32 %v1533_v2  ;;  %v1789_v4 = vpack.c.bf16 %v1725_v34, %v1725_v34  ;;  %v5977_v34 = vld [vmem:[#allocation40_spill] sm:$0xff] }
 0x4ba   : > { %v1900_v44 = vunpack.c.l.b16 %v1775_v18 }
 0x4bb   : > { %v1959_v23 = vunpack.c.l.b16 %v1789_v4 }
 0x4bc   : > { %v1914_v38 = vpack.c.b16 %v1900_v44, %v1899_v43 }
 0x4bd   : > { %v3671_v10 = vpop.eup %3670 }
 0x4be   : > { %2052 = vmatpush.bf16.xpose.msra.mxu1 %v2041_v40  ;;  %v3673_v33 = vpop.eup %3672  ;;  %v1535_v25 = vpop.xlane.xlu0 %1534  ;;  %1935 = vmatpush.bf16.xpose.msrb.mxu2 %v1914_v38  ;;  %v1724_v45 = vmul.f32 %v3671_v10, %v4722_v59  ;;  %v1746_v59 = vmul.f32 %v3669_v24, %v5966_v31 }
 0x4bf   : > { %1996 = vmatpush.bf16.xpose.msrb.mxu3 %v1975_v55  ;;  %v3675_v40 = vpop.eup %3674  ;;  %3676 = vrcp.f32 %v1535_v25  ;;  %v1747_v46 = vmul.f32 %v3673_v33, %v5964_v53  ;;  %v5978_v55 = vld [vmem:[#allocation26_spill] sm:$0xff]  ;;  %v5979_v53 = vld [vmem:[#allocation9_spill] sm:$0xff] }
 0x4c0   : > { %3678 = vrcp.f32 %v4861_v7  ;;  %v1788_v62 = vpack.c.bf16 %v1724_v45, %v1724_v45  ;;  %v1708_v14 = vmul.f32 %v3675_v40, %v5965_v61  ;;  %v5968_v7 = vld [vmem:[#allocation43_spill] sm:$0xff]  ;;  %v1810_v19 = vpack.c.bf16 %v1746_v59, %v1746_v59 }
 0x4c1   : > { %3680 = vrcp.f32 %v4850_v28  ;;  %v1811_v26 = vpack.c.bf16 %v1747_v46, %v1747_v46  ;;  %v5970_v5 = vpack.c.b16 %v5968_v7, %v5969_v57  ;;  %v665_v46 = vpack.c.bf16 %v5979_v53, %v5979_v53 }
 0x4c2   : > { %v1958_v16 = vunpack.c.l.b16 %v1788_v62  ;;  %3682 = vrcp.f32 %v4896_v20  ;;  %v2025_v52 = vunpack.c.l.b16 %v1810_v19 }
 0x4c3   : > { %v2026_v48 = vunpack.c.l.b16 %v1811_v26  ;;  %3684 = vrcp.f32 %v4885_v30 }
 0x4c4   : > { %v1974_v54 = vpack.c.b16 %v1959_v23, %v1958_v16  ;;  %3686 = vrcp.f32 %v1599_v63 }
 0x4c5   : > { %v3677_v0 = vpop.eup %3676  ;;  %v2038_v49 = vpack.c.b16 %v2026_v48, %v2025_v52  ;;  %3688 = vrcp.f32 %v1597_v9 }
 0x4c6   : > { %2053 = vmatpush.bf16.xpose.msra.mxu1 %v2040_v37  ;;  %v3679_v41 = vpop.eup %3678  ;;  %v1709_v15 = vmul.f32 %v3677_v0, %v5967_v21  ;;  %v1772_v37 = vpack.c.bf16 %v1708_v14, %v1708_v14 }
 0x4c7   : > { %1997 = vmatpush.bf16.xpose.msrb.mxu3 %v1974_v54  ;;  %v3681_v28 = vpop.eup %3680  ;;  %v1745_v17 = vmul.f32 %v3679_v41, %v5971_v50  ;;  %v3368_v41 = vld [vmem:[%s5766_s5] sm:$0xff] }
 0x4c8   : > { %v1773_v27 = vpack.c.bf16 %v1709_v15, %v1709_v15  ;;  %v1897_v3 = vunpack.c.l.b16 %v1772_v37  ;;  %v1744_v51 = vmul.f32 %v3681_v28, %v5973_v36  ;;  %v3683_v20 = vpop.eup %3682  ;;  %v3369_v15 = vld [vmem:[%s5766_s5 + $0x8] sm:$0xff] }
 0x4c9   : > { %v1809_v60 = vpack.c.bf16 %v1745_v17, %v1745_v17  ;;  %v3685_v12 = vpop.eup %3684  ;;  %v1743_v2 = vmul.f32 %v3683_v20, %v5974_v11  ;;  %v3756_v17 = vld [vmem:[%s3881_s14 + $0x8] sm:$0xff] }
 0x4ca   : > { %v1898_v47 = vunpack.c.l.b16 %v1773_v27  ;;  %v1808_v56 = vpack.c.bf16 %v1744_v51, %v1744_v51  ;;  %v1742_v58 = vmul.f32 %v3685_v12, %v5976_v29  ;;  %v3687_v43 = vpop.eup %3686 }
 0x4cb   : > { %v2024_v30 = vunpack.c.l.b16 %v1809_v60  ;;  %v1807_v35 = vpack.c.bf16 %v1743_v2, %v1743_v2  ;;  %v3689_v8 = vpop.eup %3688  ;;  %v1741_v24 = vmul.f32 %v3687_v43, %v5977_v34  ;;  %v3759_v60 = vld [vmem:[%s3881_s14 + $0x18] sm:$0xff] }
 0x4cc   : > { %v1913_v13 = vpack.c.b16 %v1898_v47, %v1897_v3  ;;  %v2023_v6 = vunpack.c.l.b16 %v1808_v56  ;;  %v1806_v44 = vpack.c.bf16 %v1742_v58, %v1742_v58  ;;  %v1740_v10 = vmul.f32 %v3689_v8, %v5978_v55  ;;  %v3757_v47 = vld [vmem:[%s3881_s14] sm:$0xff] }
 0x4cd   : > { %v2022_v1 = vunpack.c.l.b16 %v1807_v35  ;;  %v1805_v25 = vpack.c.bf16 %v1741_v24, %v1741_v24 }
 0x4ce   : > { %2054 = vmatpush.bf16.xpose.msra.mxu1 %v5970_v5  ;;  %1998 = vmatmul.bf16.vlgmr.msrb.gmra.mxu3 %v664_v22  ;;  %v2037_v18 = vpack.c.b16 %v2024_v30, %v2023_v6  ;;  %v2021_v38 = vunpack.c.l.b16 %v1806_v44  ;;  %v1804_v45 = vpack.c.bf16 %v1740_v10, %v1740_v10  ;;  %v2082_v5 = vpop.permute.xlu2 %2081  ;;  %v3758_v22 = vld [vmem:[%s3881_s14 + $0x10] sm:$0xff] }
 0x4cf   : > { %1936 = vmatpush.bf16.xpose.msrb.mxu2 %v1913_v13  ;;  %v2020_v4 = vunpack.c.l.b16 %v1805_v25  ;;  %v2087_v27 = vpop.permute.xlu1 %2086 }
 0x4d0   : > { %v2036_v33 = vpack.c.b16 %v2022_v1, %v2021_v38  ;;  %v2019_v40 = vunpack.c.l.b16 %v1804_v45 }
 0x4d1   : > { %v2077_v57 = vpop.permute.xlu0 %2076 }
 0x4d2   : > { %v2035_v62 = vpack.c.b16 %v2020_v4, %v2019_v40 }
 0x4d6   : > { %2055 = vmatpush.bf16.xpose.msra.mxu1 %v2038_v49  ;;  %1937 = vmatmul.bf16.vlgmr.msrb.gmra.mxu2 %v663_v32  ;;  %v5984_v32 = vld [vmem:[#allocation2_spill] sm:$0xff]  ;;  %v2202_v53 = vpop.permute.xlu2 %2201 }
 0x4d9   : > { %v2092_v36 = vpop.permute.xlu0 %2091 }
 0x4de   : > { %2056 = vmatpush.bf16.xpose.msra.mxu1 %v2037_v18 }
 0x4e6   : > { %2057 = vmatpush.bf16.xpose.msra.mxu1 %v2036_v33 }
 0x4ee   : > { %2058 = vmatpush.bf16.xpose.msra.mxu1 %v2035_v62 }
 0x4f5   : > { %2059 = vmatmul.bf16.vlgmr.msra.gmra.mxu1 %v665_v46  ;;  %v2197_v46 = vpop.permute.xlu0 %2196 }
 0x532   : > { %v1877_v16 = vpop.f32.mrf.mxu1 }
 0x53a   : > { %v1879_v23 = vpop.f32.mrf.mxu1 }
 0x551   : > { %v1999_v61 = vpop.f32.mrf.mxu3 }
 0x559   : > { %v1938_v14 = vpop.f32.mrf.mxu2  ;;  %v2001_v31 = vpop.f32.mrf.mxu3 }
 0x55a   : > { %v2068_v26 = vpack.c.bf16 %v1938_v14, %v1877_v16 }
 0x561   : > { %v1940_v59 = vpop.f32.mrf.mxu2 }
 0x562   : > { %v2187_v59 = vpop.permute.xlu2 %2186 }
 0x572   : > { %v2060_v54 = vpop.f32.mrf.mxu1 }
 0x573   : > { %v2069_v0 = vpack.c.bf16 %v2060_v54, %v1999_v61  ;;  %v2221_v61 = vpop.permute.xlu1 %2220  ;;  %v2226_v54 = vpop.permute.xlu0 %2225 }
 0x575   : > { %2116 = vmatpush.bf16.msra.mxu2 %v2069_v0 }
 0x579   : > { %2117 = vmatpush.bf16.msra.mxu2 %v2068_v26 }
 0x57a   : > { %v2062_v21 = vpop.f32.mrf.mxu1 }
 0x57c   : > { %3308 = vmatmul.msk.bf16.vlgmr.msra.gmra.mxu2 %vm596_vm4, %v3368_v41 }
 0x58c   : > { %3309 = vmatmul.msk.bf16.gmra.mxu2 %vm596_vm4, %v3369_v15 }
 0x5ff   : > { %v2119_v37 = vpop.f32.mrf.mxu2 }
 0x600   : > { %v2120_v48 = vadd.f32 %v2119_v37, %v2077_v57  ;;  %v2192_v57 = vpop.permute.xlu1 %2191 }
 0x602   : > { %v4958_v42 = vadd.f32 %v3757_v47, %v2120_v48  ;;  %v2211_v47 = vpop.permute.xlu0 %2210 }
 0x604   : > { %5981 = vst [vmem:[#allocation24_spill] sm:$0xff] %v4958_v42 }
 0x607   : > { %v2121_v7 = vpop.f32.mrf.mxu2 }
 0x608   : > { %v2122_v28 = vadd.f32 %v2121_v7, %v2082_v5 }
 0x60a   : > { %v4955_v3 = vadd.f32 %v3756_v17, %v2122_v28  ;;  %v2216_v17 = vpop.permute.xlu2 %2215 }
 0x60c   : > { %5980 = vst [vmem:[#allocation36_spill] sm:$0xff] %v4955_v3  ;;  %v2141_v13 = vadd.f32 %v4955_v3, %v4958_v42 }
 0x60f   : > { %v2124_v19 = vpop.f32.mrf.mxu2 }
 0x610   : > { %v2125_v50 = vadd.f32 %v2124_v19, %v2087_v27 }
 0x612   : > { %v4961_v52 = vadd.f32 %v3758_v22, %v2125_v50 }
 0x614   : > { %5982 = vst [vmem:[#allocation7_spill] sm:$0xff] %v4961_v52  ;;  %v2142_v49 = vadd.f32 %v2141_v13, %v4961_v52 }
 0x617   : > { %v2126_v51 = vpop.f32.mrf.mxu2 }
 0x618   : > { %v2127_v63 = vadd.f32 %v2126_v51, %v2092_v36 }
 0x61a   : > { %v4967_v20 = vadd.f32 %v3759_v60, %v2127_v63  ;;  %v3370_v63 = vld [vmem:[%s5770_s9] sm:$0xff]  ;;  %v3371_v60 = vld [vmem:[%s5770_s9 + $0x8] sm:$0xff] }
 0x61c   : > { %5983 = vst [vmem:[#allocation32_spill] sm:$0xff] %v4967_v20  ;;  %v2143_v9 = vadd.f32 %v2142_v49, %v4967_v20  ;;  %v3372_v49 = vld [vmem:[%s5770_s9 + $0x10] sm:$0xff] }
 0x61e   : > { %v2144_v56 = vrot.slane %v2143_v9, 4 }
 0x620   : > { %v2145_v12 = vadd.f32 %v2144_v56, %v2143_v9  ;;  %v3373_v9 = vld [vmem:[%s5770_s9 + $0x18] sm:$0xff]  ;;  %v3374_v56 = vld [vmem:[%s5770_s9 + $0x20] sm:$0xff] }
 0x622   : > { %v2146_v30 = vrot.slane %v2145_v12, 2 }
 0x624   : > { %v2147_v11 = vadd.f32 %v2146_v30, %v2145_v12  ;;  %v3375_v12 = vld [vmem:[%s5770_s9 + $0x28] sm:$0xff]  ;;  %v3376_v30 = vld [vmem:[%s5770_s9 + $0x30] sm:$0xff] }
 0x626   : > { %v2148_v2 = vrot.slane %v2147_v11, 1 }
 0x628   : > { %v2149_v39 = vadd.f32 %v2148_v2, %v2147_v11  ;;  %v3377_v11 = vld [vmem:[%s5770_s9 + $0x38] sm:$0xff]  ;;  %v5008_v2 = vpop.permute.xlu0 %2343 }
 0x62a   : > { %v2150_v6 = vmul.f32 %v2149_v39, %v5984_v32  ;;  %v5010_v39 = vpop.permute.xlu2 %2328 }
 0x62c   : > { %v2151_v29 = vsub.f32 %v4958_v42, %v2150_v6  ;;  %v2152_v58 = vsub.f32 %v4955_v3, %v2150_v6  ;;  %v2153_v18 = vsub.f32 %v4961_v52, %v2150_v6  ;;  %v2154_v35 = vsub.f32 %v4967_v20, %v2150_v6 }
 0x62e   : > { %v2155_v43 = vmul.f32 %v2151_v29, %v2151_v29  ;;  %v2156_v44 = vmul.f32 %v2152_v58, %v2152_v58  ;;  %v2157_v8 = vmul.f32 %v2153_v18, %v2153_v18  ;;  %v2158_v34 = vmul.f32 %v2154_v35, %v2154_v35 }
 0x630   : > { %v2159_v1 = vadd.f32 %v2156_v44, %v2155_v43  ;;  %v5014_v6 = vpop.permute.xlu0 %2318 }
 0x632   : > { %v2160_v24 = vadd.f32 %v2159_v1, %v2157_v8 }
 0x634   : > { %v2161_v38 = vadd.f32 %v2160_v24, %v2158_v34 }
 0x636   : > { %v2162_v55 = vrot.slane %v2161_v38, 4 }
 0x638   : > { %v2163_v10 = vadd.f32 %v2162_v55, %v2161_v38 }
 0x63a   : > { %v2164_v33 = vrot.slane %v2163_v10, 2 }
 0x63c   : > { %v2165_v25 = vadd.f32 %v2164_v33, %v2163_v10 }
 0x63e   : > { %v2166_v45 = vrot.slane %v2165_v25, 1 }
 0x640   : > { %v2167_v4 = vadd.f32 %v2166_v45, %v2165_v25 }
 0x642   : > { %v2168_v40 = vmul.f32 %v2167_v4, %v5984_v32  ;;  %v5012_v32 = vpop.permute.xlu1 %2338 }
 0x644   : > { %v2169_v62 = vadd.f32 1e-05, %v2168_v40 }
 0x646   : > { %3690 = vrsqrt.f32 %v2169_v62  ;;  %vm2176_vm8 = vweird.f32 %v2169_v62 }
 0x64c   : > { %v3691_v16 = vpop.eup %3690 }
 0x64d   : > { %v2171_v23 = vmul.f32 %v3691_v16, %v2169_v62  ;;  %vm2177_vm7 = vweird.f32 %v3691_v16 }
 0x64e   : > { %vm2178_vm9 = vmor %vm2176_vm8, %vm2177_vm7 }
 0x64f   : > { %v2172_v14 = vmul.f32 %v3691_v16, %v2171_v23 }
 0x651   : > { %v2173_v31 = vmul.f32 0.5, %v2172_v14 }
 0x653   : > { %v2174_v0 = vsub.f32 1.5, %v2173_v31 }
 0x655   : > { %v2175_v26 = vmul.f32 %v3691_v16, %v2174_v0 }
 0x657   : > { %v2179_v41 = vsel %vm2178_vm9, %v3691_v16, %v2175_v26 }
 0x658   : > { %v2183_v21 = vmul.f32 %v2179_v41, %v2154_v35  ;;  %v2182_v15 = vmul.f32 %v2179_v41, %v2153_v18  ;;  %v2180_v37 = vmul.f32 %v2179_v41, %v2151_v29  ;;  %v2181_v7 = vmul.f32 %v2179_v41, %v2152_v58  ;;  %v5016_v29 = vpop.permute.xlu2 %2323  ;;  %v5018_v58 = vpop.permute.xlu1 %2333 }
 0x659   : > { %v5020_v18 = vpop.permute.xlu0 %2313 }
 0x65a   : > { %v2207_v5 = vmul.f32 %v2202_v53, %v2183_v21  ;;  %v2206_v19 = vmul.f32 %v2197_v46, %v2182_v15  ;;  %v2204_v28 = vmul.f32 %v2187_v59, %v2180_v37  ;;  %v2205_v27 = vmul.f32 %v2192_v57, %v2181_v7 }
 0x65c   : > { %v2230_v48 = vadd.f32 %v2221_v61, %v2206_v19  ;;  %v2231_v50 = vadd.f32 %v2226_v54, %v2207_v5  ;;  %v2228_v36 = vadd.f32 %v2211_v47, %v2204_v28  ;;  %v2229_v51 = vadd.f32 %v2216_v17, %v2205_v27 }
 0x65e   : > { %v2249_v22 = vpack.c.bf16 %v2231_v50, %v2230_v48  ;;  %v2248_v13 = vpack.c.bf16 %v2229_v51, %v2228_v36 }
 0x660   : > { %2416 = vmatpush.bf16.msrb.mxu1 %v2249_v22  ;;  %3380 = vmatpush.bf16.msra.mxu3 %v2249_v22  ;;  %v2299_v43 = vpop.permute.xlu2 %2298  ;;  %v5022_v44 = vpop.permute.xlu1 %2308 }
 0x661   : > { %v2289_v8 = vpop.permute.xlu0 %2288 }
 0x664   : > { %2417 = vmatpush.bf16.msrb.mxu1 %v2248_v13  ;;  %3381 = vmatpush.bf16.msra.mxu3 %v2248_v13 }
 0x667   : > { %3342 = vmatmul.msk.bf16.vlgmr.msrb.gmra.mxu1 %vm596_vm4, %v3370_v63  ;;  %3344 = vmatmul.msk.bf16.vlgmr.msra.gmra.mxu3 %vm596_vm4, %v3372_v49 }
 0x668   : > { %v2294_v24 = vpop.permute.xlu2 %2293  ;;  %v2304_v10 = vpop.permute.xlu1 %2303 }
 0x670   : > { %v2269_v62 = vpop.permute.xlu2 %2268  ;;  %v2279_v23 = vpop.permute.xlu1 %2278 }
 0x677   : > { %3343 = vmatmul.msk.bf16.gmra.mxu1 %vm596_vm4, %v3371_v60  ;;  %3345 = vmatmul.msk.bf16.gmra.mxu3 %vm596_vm4, %v3373_v9 }
 0x678   : > { %v2274_v15 = vpop.permute.xlu1 %2273 }
 0x687   : > { %3346 = vmatmul.msk.bf16.gmra.mxu3 %vm596_vm4, %v3374_v56 }
 0x697   : > { %3347 = vmatmul.msk.bf16.gmra.mxu3 %vm596_vm4, %v3375_v12 }
 0x6a7   : > { %3348 = vmatmul.msk.bf16.gmra.mxu3 %vm596_vm4, %v3376_v30 }
 0x6b7   : > { %3349 = vmatmul.msk.bf16.gmra.mxu3 %vm596_vm4, %v3377_v11 }
 0x6e4   : > { %v2419_v45 = vpop.f32.mrf.mxu1 }
 0x6e5   : > { %v5041_v53 = vadd.f32 %v2419_v45, %v2269_v62 }
 0x6e7   : > { %5985 = vst [vmem:[#allocation14_spill] sm:$0xff] %v5041_v53  ;;  %v5045_v14 = vmul.f32 0.70710677, %v5041_v53 }
 0x6e9   : > { %5986 = vst [vmem:[#allocation39_spill] sm:$0xff] %v5045_v14  ;;  %v5052_v54 = vand.u32 2147483647, %v5045_v14 }
 0x6ea   : > { %v2429_v35 = vpop.f32.mrf.mxu3 }
 0x6eb   : > { %v5024_v1 = vadd.f32 %v2429_v35, %v2289_v8  ;;  %v2539_v21 = vmul.f32 0.3275911, %v5052_v54 }
 0x6ec   : > { %v2421_v41 = vpop.f32.mrf.mxu1 }
 0x6ed   : > { %v5027_v38 = vmul.f32 0.70710677, %v5024_v1  ;;  %v5059_v7 = vadd.f32 %v2421_v41, %v2274_v15  ;;  %v5064_v19 = vadd.f32 1.0, %v2539_v21 }
 0x6ef   : > { %v5032_v33 = vand.u32 2147483647, %v5027_v38  ;;  %5987 = vst [vmem:[#allocation33_spill] sm:$0xff] %v5059_v7  ;;  %v5068_v48 = vmul.f32 0.70710677, %v5059_v7  ;;  %vm2576_vm7 = vweird.f32 %v5064_v19  ;;  %vm2495_vm8 = vcmp.ge.f32.partialorder %v5027_v38, 0.0 }
 0x6f1   : > { %v2543_v4 = vmul.f32 0.3275911, %v5032_v33  ;;  %5988 = vst [vmem:[#allocation15_spill] sm:$0xff] %v5068_v48  ;;  %v5076_v51 = vand.u32 2147483647, %v5068_v48 }
 0x6f2   : > { %v2431_v34 = vpop.f32.mrf.mxu3 }
 0x6f3   : > { %v5029_v55 = vadd.f32 %v2431_v34, %v2294_v24  ;;  %v2559_v46 = vadd.f32 1.0, %v2543_v4  ;;  %v2540_v56 = vmul.f32 0.3275911, %v5076_v51 }
 0x6f4   : > { %v2424_v22 = vpop.f32.mrf.mxu1 }
 0x6f5   : > { %v5035_v25 = vmul.f32 0.70710677, %v5029_v55  ;;  %3692 = vrcp.f32 %v2559_v46  ;;  %v5078_v63 = vadd.f32 %v2424_v22, %v2279_v23  ;;  %v2642_v9 = vand.u32 2147483648, %v2559_v46 }
 0x6f6   : > { %vm2636_vm11 = vweird.f32 %v2559_v46  ;;  %v2640_v11 = vand.u32 2147483647, %v2559_v46  ;;  %v5089_v45 = vadd.f32 1.0, %v2540_v56  ;;  %v2955_v22 = vsub.f32 0.0, %v5052_v54 }
 0x6f7   : > { %v5039_v40 = vand.u32 2147483647, %v5035_v25  ;;  %5989 = vst [vmem:[#allocation37_spill] sm:$0xff] %v5078_v63  ;;  %v5084_v35 = vmul.f32 0.70710677, %v5078_v63  ;;  %v2643_v24 = vor.u32 1.1754944e-38, %v2642_v9 }
 0x6f8   : > { %vm2641_vm14 = vcmp.eq.f32.partialorder %v2640_v11, 8.507059e+37 }
 0x6f9   : > { %v2544_v16 = vmul.f32 0.3275911, %v5039_v40  ;;  %5990 = vst [vmem:[#allocation19_spill] sm:$0xff] %v5084_v35 }
 0x6fa   : > { %v2434_v61 = vpop.f32.mrf.mxu3 }
 0x6fb   : > { %v5047_v31 = vadd.f32 1.0, %v2544_v16  ;;  %v5049_v59 = vadd.f32 %v2434_v61, %v2299_v43  ;;  %v3693_v26 = vpop.eup %3692  ;;  %v5097_v61 = vand.u32 2147483647, %v5084_v35 }
 0x6fc   : > { %v2632_v37 = vmul.f32 %v3693_v26, %v2559_v46  ;;  %vm2637_vm10 = vweird.f32 %v3693_v26 }
 0x6fd   : > { %3694 = vrcp.f32 %v5047_v31  ;;  %v5056_v0 = vmul.f32 0.70710677, %v5049_v59  ;;  %vm2638_vm12 = vmor %vm2636_vm11, %vm2637_vm10  ;;  %v2657_v46 = vand.u32 2147483648, %v5047_v31  ;;  %vm2651_vm15 = vweird.f32 %v5047_v31 }
 0x6fe   : > { %v2633_v27 = vsub.f32 1.0, %v2632_v37  ;;  %3696 = vrcp.f32 %v5064_v19  ;;  %vm2591_vm11 = vweird.f32 %v5089_v45 }
 0x6ff   : > { %v5062_v57 = vand.u32 2147483647, %v5056_v0 }
 0x700   : > { %v2634_v36 = vmul.f32 %v3693_v26, %v2633_v27 }
 0x701   : > { %v2545_v28 = vmul.f32 0.3275911, %v5062_v57 }
 0x702   : > { %v2436_v47 = vpop.f32.mrf.mxu3  ;;  %v2635_v60 = vadd.f32 %v3693_v26, %v2634_v36  ;;  %v2959_v36 = vsub.f32 0.0, %v5032_v33 }
 0x703   : > { %v3695_v5 = vpop.eup %3694  ;;  %v5071_v17 = vadd.f32 1.0, %v2545_v28  ;;  %v5094_v23 = vadd.f32 %v2436_v47, %v2304_v10  ;;  %v2658_v28 = vor.u32 1.1754944e-38, %v2657_v46  ;;  %v2580_v46 = vand.u32 2147483647, %v5064_v19 }
 0x704   : > { %v2647_v50 = vmul.f32 %v3695_v5, %v5047_v31  ;;  %v5080_v49 = vpop.eup %3696  ;;  %v2639_v34 = vsel %vm2638_vm12, %v3693_v26, %v2635_v60  ;;  %vm2652_vm13 = vweird.f32 %v3695_v5  ;;  %v2655_v26 = vand.u32 2147483647, %v5047_v31 }
 0x705   : > { %3698 = vrcp.f32 %v5071_v17  ;;  %v2572_v8 = vmul.f32 %v5080_v49, %v5064_v19  ;;  %v5099_v21 = vsel %vm2641_vm14, %v2643_v24, %v2639_v34  ;;  %vm2653_vm0 = vmor %vm2651_vm15, %vm2652_vm13  ;;  %v5105_v10 = vmul.f32 0.70710677, %v5094_v23 }
 0x706   : > { %v2648_v13 = vsub.f32 1.0, %v2647_v50  ;;  %3700 = vrcp.f32 %v5089_v45  ;;  %v2815_v27 = vmul.f32 1.0614054, %v5099_v21  ;;  %v2541_v50 = vmul.f32 0.3275911, %v5097_v61 }
 0x707   : > { %v2573_v15 = vsub.f32 1.0, %v2572_v8  ;;  %vm2656_vm2 = vcmp.eq.f32.partialorder %v2655_v26, 8.507059e+37  ;;  %v2672_v31 = vand.u32 2147483648, %v5071_v17  ;;  %vm2666_vm3 = vweird.f32 %v5071_v17 }
 0x708   : > { %v2649_v30 = vmul.f32 %v3695_v5, %v2648_v13  ;;  %v5121_v9 = vand.u32 2147483647, %v5105_v10  ;;  %v2831_v11 = vadd.f32 -1.4531521, %v2815_v27  ;;  %v2975_v26 = vmul.f32 %v2959_v36, %v5032_v33  ;;  %v2284_v27 = vpop.permute.xlu0 %2283 }
 0x709   : > { %vm2577_vm6 = vweird.f32 %v5080_v49  ;;  %v5150_v33 = vmul.f32 0.5, %v5024_v1  ;;  %vm5162_vm10 = vcmp.eq.f32.partialorder %v2580_v46, 8.507059e+37  ;;  %v5177_v46 = vmul.f32 0.5, %v5029_v55 }
 0x70a   : > { %v5091_v62 = vpop.f32.mrf.mxu3  ;;  %v2650_v16 = vadd.f32 %v3695_v5, %v2649_v30  ;;  %v2574_v30 = vmul.f32 %v5080_v49, %v2573_v15  ;;  %v2426_v15 = vpop.f32.mrf.mxu1  ;;  %v2995_v36 = vmul.f32 1.442695, %v2975_v26  ;;  %vm5158_vm9 = vmor %vm2576_vm7, %vm2577_vm6  ;;  %vm2496_vm12 = vcmp.ge.f32.partialorder %v5035_v25, 0.0 }
 0x70b   : > { %v3699_v12 = vpop.eup %3698 }
 0x70c   : > { %v2662_v43 = vmul.f32 %v3699_v12, %v5071_v17  ;;  %v2654_v37 = vsel %vm2653_vm0, %v3695_v5, %v2650_v16  ;;  %vm2667_vm1 = vweird.f32 %v3699_v12  ;;  %v2670_v5 = vand.u32 2147483647, %v5071_v17  ;;  %v5123_v56 = vpop.eup %3700 }
 0x70d   : > { %v5112_v13 = vsel %vm2656_vm2, %v2658_v28, %v2654_v37  ;;  %vm5116_vm4 = vmor %vm2666_vm3, %vm2667_vm1  ;;  %v2971_v17 = vmul.f32 %v2955_v22, %v5052_v54  ;;  %v2546_v16 = vmul.f32 0.3275911, %v5121_v9  ;;  %v2956_v37 = vsub.f32 0.0, %v5076_v51 }
 0x70e   : > { %v2663_v4 = vsub.f32 1.0, %v2662_v43  ;;  %v5126_v43 = vadd.f32 1.0, %v2541_v50  ;;  %v2816_v24 = vmul.f32 1.0614054, %v5112_v13  ;;  %vm2671_vm5 = vcmp.eq.f32.partialorder %v2670_v5, 8.507059e+37 }
 0x70f   : > { %v5143_v54 = vadd.f32 1.0, %v2546_v16  ;;  %v2575_v50 = vadd.f32 %v5080_v49, %v2574_v30  ;;  %v5166_v1 = vmul.f32 1.442695, %v2971_v17  ;;  %v5822_v16 = vmov -1.0  }
 0x710   : > { %v2664_v41 = vmul.f32 %v3699_v12, %v2663_v4  ;;  %v2673_v4 = vor.u32 1.1754944e-38, %v2672_v31  ;;  %3702 = vrcp.f32 %v5126_v43  ;;  %v2832_v22 = vadd.f32 -1.4531521, %v2816_v24 }
 0x711   : > { %v5152_v31 = vadd.f32 %v2426_v15, %v2284_v27  ;;  %3704 = vrcp.f32 %v5143_v54  ;;  %5998 = vst [vmem:[#allocation29_spill] sm:$0xff] %v5166_v1  ;;  %v2579_v38 = vsel %vm5158_vm9, %v5080_v49, %v2575_v50  ;;  %v5174_v26 = vsel %vm2495_vm8, 1.0, %v5822_v16 }
 0x712   : > { %v2665_v47 = vadd.f32 %v3699_v12, %v2664_v41  ;;  %v5130_v34 = vpop.f32.mrf.mxu3  ;;  %v2582_v41 = vand.u32 2147483648, %v5064_v19  ;;  %v2848_v17 = vmul.f32 %v2832_v22, %v5112_v13  ;;  %3706 = vpow2.f32 %v2995_v36 }
 0x713   : > { %5993 = vst [vmem:[#allocation35_spill] sm:$0xff] %v5152_v31  ;;  %v5181_v15 = vmul.f32 0.70710677, %v5152_v31  ;;  %v2595_v27 = vand.u32 2147483647, %v5089_v45  ;;  %v2597_v22 = vand.u32 2147483648, %v5089_v45  ;;  %vm2592_vm13 = vweird.f32 %v5123_v56 }
 0x714   : > { %v2669_v8 = vsel %vm5116_vm4, %v3699_v12, %v2665_v47  ;;  %v2587_v12 = vmul.f32 %v5123_v56, %v5089_v45  ;;  %v2847_v47 = vmul.f32 %v2831_v11, %v5099_v21  ;;  %v2583_v19 = vor.u32 1.1754944e-38, %v2582_v41  ;;  %vm5232_vm0 = vmor %vm2591_vm11, %vm2592_vm13 }
 0x715   : > { %v5141_v28 = vsel %vm2671_vm5, %v2673_v4, %v2669_v8  ;;  %v2960_v8 = vsub.f32 0.0, %v5039_v40  ;;  %v2972_v4 = vmul.f32 %v2956_v37, %v5076_v51  ;;  %5999 = vst [vmem:[#allocation16_spill] sm:$0xff] %v5181_v15  ;;  %v2864_v60 = vadd.f32 1.4214138, %v2848_v17 }
 0x716   : > { %v2817_v5 = vmul.f32 1.0614054, %v5141_v28  ;;  %v2588_v11 = vsub.f32 1.0, %v2587_v12  ;;  %v2863_v24 = vadd.f32 1.4214138, %v2847_v47  ;;  %v5183_v12 = vpop.eup %3702  ;;  %v5189_v37 = vsel %vm5162_vm10, %v2583_v19, %v2579_v38 }
 0x717   : > { %v3705_v41 = vpop.eup %3704  ;;  %6000 = vst [vmem:[#allocation25_spill] sm:$0xff] %v5189_v37  ;;  %v2976_v50 = vmul.f32 %v2960_v8, %v5039_v40  ;;  %v5196_v36 = vmul.f32 1.442695, %v2972_v4  ;;  %v2602_v30 = vmul.f32 %v5183_v12, %v5126_v43  ;;  %v5202_v38 = vand.u32 2147483647, %v5181_v15 }
 0x718   : > { %v2833_v51 = vadd.f32 -1.4531521, %v2817_v5  ;;  %v2589_v55 = vmul.f32 %v5123_v56, %v2588_v11  ;;  %v2879_v47 = vmul.f32 %v2863_v24, %v5099_v21  ;;  %v2677_v5 = vmul.f32 %v3705_v41, %v5143_v54  ;;  %v5222_v20 = vpop.eup %3706 }
 0x719   : > { %v5206_v11 = vadd.f32 %v5091_v62, %v5022_v44  ;;  %v2811_v40 = vmul.f32 1.0614054, %v5189_v37  ;;  %v5212_v8 = vsel %vm2496_vm12, 1.0, %v5822_v16  ;;  %vm5217_vm14 = vcmp.eq.f32.partialorder %v2595_v27, 8.507059e+37 }
 0x71a   : > { %v2444_v49 = vpop.f32.mrf.mxu3  ;;  %v2849_v19 = vmul.f32 %v2833_v51, %v5141_v28  ;;  %v2678_v24 = vsub.f32 1.0, %v2677_v5  ;;  %v2590_v4 = vadd.f32 %v5123_v56, %v2589_v55  ;;  %v2997_v44 = vmul.f32 1.442695, %v2976_v50 }
 0x71b   : > { %6001 = vst [vmem:[#allocation10_spill] sm:$0xff] %v5206_v11  ;;  %v2687_v62 = vand.u32 2147483648, %v5143_v54  ;;  %v2895_v52 = vadd.f32 -0.28449672, %v2879_v47  ;;  %vm2682_vm15 = vweird.f32 %v3705_v41  ;;  %v2685_v16 = vand.u32 2147483647, %v5143_v54 }
 0x71c   : > { %v2679_v25 = vmul.f32 %v3705_v41, %v2678_v24  ;;  %v2880_v51 = vmul.f32 %v2864_v60, %v5112_v13  ;;  %v2603_v5 = vsub.f32 1.0, %v2602_v30  ;;  %v2542_v55 = vmul.f32 0.3275911, %v5202_v38 }
 0x71d   : > { %v5228_v27 = vmul.f32 0.70710677, %v5206_v11  ;;  %v2865_v3 = vadd.f32 1.4214138, %v2849_v19  ;;  %vm2681_vm1 = vweird.f32 %v5143_v54  ;;  %v5239_v24 = vadd.f32 %v5130_v34, %v5020_v18 }
 0x71e   : > { %v2680_v47 = vadd.f32 %v3705_v41, %v2679_v25  ;;  %v2827_v60 = vadd.f32 -1.4531521, %v2811_v40  ;;  %v2598_v30 = vor.u32 1.1754944e-38, %v2597_v22  ;;  %3708 = vpow2.f32 %v2997_v44  ;;  %vm2683_vm2 = vmor %vm2681_vm1, %vm2682_vm15 }
 0x71f   : > { %6006 = vst [vmem:[#allocation27_spill] sm:$0xff] %v5239_v24  ;;  %v2688_v42 = vor.u32 1.1754944e-38, %v2687_v62  ;;  %v2911_v53 = vmul.f32 %v2895_v52, %v5099_v21  ;;  %v2594_v45 = vsel %vm5232_vm0, %v5123_v56, %v2590_v4  ;;  %vm2686_vm3 = vcmp.eq.f32.partialorder %v2685_v16, 8.507059e+37 }
 0x720   : > { %v2684_v7 = vsel %vm2683_vm2, %v3705_v41, %v2680_v47  ;;  %v2896_v25 = vadd.f32 -0.28449672, %v2880_v51  ;;  %v5245_v54 = vadd.f32 1.0, %v2542_v55  ;;  %v5250_v18 = vand.u32 2147483647, %v5228_v27 }
 0x721   : > { %v5247_v63 = vsel %vm2686_vm3, %v2688_v42, %v2684_v7  ;;  %v2604_v34 = vmul.f32 %v5183_v12, %v2603_v5  ;;  %v2881_v22 = vmul.f32 %v2865_v3, %v5141_v28  ;;  %v5256_v40 = vmul.f32 0.70710677, %v5239_v24 }
 0x722   : > { %v2446_v19 = vpop.f32.mrf.mxu3  ;;  %v2818_v52 = vmul.f32 1.0614054, %v5247_v63  ;;  %v2843_v56 = vmul.f32 %v2827_v60, %v5189_v37  ;;  %vm2606_vm4 = vweird.f32 %v5126_v43  ;;  %v2957_v16 = vsub.f32 0.0, %v5097_v61 }
 0x723   : > { %v5262_v42 = vadd.f32 %v2444_v49, %v5014_v6  ;;  %v5266_v7 = vsel %vm5217_vm14, %v2598_v30, %v2594_v45  ;;  %vm2607_vm5 = vweird.f32 %v5183_v12  ;;  %v2961_v3 = vsub.f32 0.0, %v5062_v57 }
 0x724   : > { %v2834_v41 = vadd.f32 -1.4531521, %v2818_v52  ;;  %v3709_v4 = vpop.eup %3708  ;;  %v2927_v44 = vadd.f32 0.2548296, %v2911_v53  ;;  %v2912_v62 = vmul.f32 %v2896_v25, %v5112_v13  ;;  %3710 = vrcp.f32 %v5245_v54  ;;  %vm5294_vm6 = vmor %vm2606_vm4, %vm2607_vm5 }
 0x725   : > { %6007 = vst [vmem:[#allocation8_spill] sm:$0xff] %v5262_v42  ;;  %v2547_v51 = vmul.f32 0.3275911, %v5250_v18  ;;  %v2605_v6 = vadd.f32 %v5183_v12, %v2604_v34  ;;  %v2897_v49 = vadd.f32 -0.28449672, %v2881_v22  ;;  %v2612_v50 = vand.u32 2147483648, %v5126_v43 }
 0x726   : > { %v2850_v17 = vmul.f32 %v2834_v41, %v5247_v63  ;;  %v5276_v5 = vand.u32 2147483647, %v5256_v40  ;;  %v2610_v55 = vand.u32 2147483647, %v5126_v43  ;;  %v5281_v53 = vmul.f32 0.70710677, %v5262_v42 }
 0x727   : > { %v5284_v47 = vadd.f32 %v2446_v19, %v5016_v29  ;;  %v2812_v60 = vmul.f32 1.0614054, %v5266_v7  ;;  %v2977_v30 = vmul.f32 %v2961_v3, %v5062_v57  ;;  %v2962_v25 = vsub.f32 0.0, %v5121_v9 }
 0x728   : > { %v2866_v45 = vadd.f32 1.4214138, %v2850_v17  ;;  %v2859_v34 = vadd.f32 1.4214138, %v2843_v56  ;;  %v2943_v22 = vmul.f32 %v2927_v44, %v5099_v21  ;;  %v2928_v52 = vadd.f32 0.2548296, %v2912_v62 }
 0x729   : > { %6008 = vst [vmem:[#allocation30_spill] sm:$0xff] %v5284_v47  ;;  %v5298_v29 = vadd.f32 1.0, %v2547_v51  ;;  %v2609_v57 = vsel %vm5294_vm6, %v5183_v12, %v2605_v6  ;;  %v2913_v19 = vmul.f32 %v2897_v49, %v5141_v28  ;;  %v2548_v21 = vmul.f32 0.3275911, %v5276_v5 }
 0x72a   : > { %v2882_v56 = vmul.f32 %v2866_v45, %v5247_v63  ;;  %v2449_v3 = vpop.f32.mrf.mxu3  ;;  %v5306_v44 = vpop.eup %3710  ;;  %vm2611_vm7 = vcmp.eq.f32.partialorder %v2610_v55, 8.507059e+37  ;;  %v2613_v43 = vor.u32 1.1754944e-38, %v2612_v50  ;;  %v5309_v62 = vand.u32 2147483647, %v5281_v53 }
 0x72b   : > { %v5312_v51 = vmul.f32 0.70710677, %v5284_v47  ;;  %v2828_v17 = vadd.f32 -1.4531521, %v2812_v60  ;;  %v2999_v41 = vmul.f32 1.442695, %v2977_v30  ;;  %v2978_v6 = vmul.f32 %v2962_v25, %v5121_v9 }
 0x72c   : > { %v2898_v12 = vadd.f32 -0.28449672, %v2882_v56  ;;  %v2875_v49 = vmul.f32 %v2859_v34, %v5189_v37  ;;  %v2944_v45 = vmul.f32 %v2928_v52, %v5112_v13  ;;  %v5317_v31 = vsel %vm2611_vm7, %v2613_v43, %v2609_v57 }
 0x72d   : > { %3712 = vrcp.f32 %v5298_v29  ;;  %v3023_v55 = vmul.f32 %v5222_v20, %v2943_v22  ;;  %v2929_v50 = vadd.f32 0.2548296, %v2913_v19  ;;  %v2617_v14 = vmul.f32 %v5306_v44, %v5245_v54 }
 0x72e   : > { %v5323_v48 = vadd.f32 1.0, %v2548_v21  ;;  %v2914_v60 = vmul.f32 %v2898_v12, %v5247_v63  ;;  %v2549_v9 = vmul.f32 0.3275911, %v5309_v62  ;;  %v5328_v30 = vand.u32 2147483647, %v5312_v51 }
 0x72f   : > { %v5331_v13 = vadd.f32 %v2449_v3, %v5010_v39  ;;  %v2844_v25 = vmul.f32 %v2828_v17, %v5266_v7  ;;  %v2813_v20 = vmul.f32 1.0614054, %v5317_v31  ;;  %3714 = vpow2.f32 %v2999_v41 }
 0x730   : > { %v3001_v34 = vmul.f32 1.442695, %v2978_v6  ;;  %3716 = vpow2.f32 %v5196_v36  ;;  %v3024_v22 = vmul.f32 %v3709_v4, %v2944_v45  ;;  %v2973_v52 = vmul.f32 %v2957_v16, %v5097_v61 }
 0x731   : > { %v2550_v57 = vmul.f32 0.3275911, %v5328_v30  ;;  %v2891_v19 = vadd.f32 -0.28449672, %v2875_v49  ;;  %v3039_v56 = vsub.f32 1.0, %v3023_v55  ;;  %v2945_v21 = vmul.f32 %v2929_v50, %v5141_v28 }
 0x732   : > { %v2618_v43 = vsub.f32 1.0, %v2617_v14  ;;  %v2930_v3 = vadd.f32 0.2548296, %v2914_v60  ;;  %3718 = vrcp.f32 %v5323_v48  ;;  %v5342_v17 = vadd.f32 1.0, %v2549_v9  ;;  %v2451_v16 = vpop.f32.mrf.mxu3 }
 0x733   : > { %v5339_v39 = vpop.eup %3712  ;;  %v5345_v41 = vmul.f32 0.70710677, %v5331_v13  ;;  %v2860_v36 = vadd.f32 1.4214138, %v2844_v25  ;;  %v2829_v4 = vadd.f32 -1.4531521, %v2813_v20  ;;  %3720 = vpow2.f32 %v3001_v34 }
 0x734   : > { %v5347_v61 = vadd.f32 1.0, %v2550_v57  ;;  %v3040_v12 = vsub.f32 1.0, %v3024_v22  ;;  %v5349_v6 = vmul.f32 1.442695, %v2973_v52  ;;  %v5352_v14 = vmul.f32 0.5, %v5049_v59 }
 0x735   : > { %vm2497_vm8 = vcmp.ge.f32.partialorder %v5056_v0, 0.0  ;;  %v3715_v28 = vpop.eup %3714  ;;  %v5356_v49 = vmul.f32 %v2891_v19, %v5189_v37  ;;  %v3055_v45 = vmul.f32 %v3039_v56, %v5174_v26  ;;  %v2619_v55 = vmul.f32 %v5306_v44, %v2618_v43 }
 0x736   : > { %v2692_v50 = vmul.f32 %v5339_v39, %v5298_v29  ;;  %v5362_v60 = vpop.eup %3716  ;;  %v3025_v9 = vmul.f32 %v3715_v28, %v2945_v21  ;;  %v2946_v25 = vmul.f32 %v2930_v3, %v5247_v63  ;;  %3722 = vrcp.f32 %v5342_v17 }
 0x737   : > { %6011 = vst [vmem:[#allocation17_spill] sm:$0xff] %v5362_v60  ;;  %v5367_v59 = vand.u32 2147483647, %v5345_v41  ;;  %v5370_v0 = vmul.f32 %v2860_v36, %v5266_v7  ;;  %v2845_v26 = vmul.f32 %v2829_v4, %v5317_v31  ;;  %v6012_v20 = vmov -1.0  }
 0x738   : > { %v2513_v34 = vsel %vm2497_vm8, 1.0, %v6012_v20  ;;  %3724 = vrcp.f32 %v5347_v61  ;;  %v5375_v22 = vpop.eup %3718  ;;  %v3056_v52 = vmul.f32 %v3040_v12, %v5212_v8  ;;  %v2627_v63 = vand.u32 2147483648, %v5245_v54 }
 0x739   : > { %v2551_v19 = vmul.f32 0.3275911, %v5367_v59  ;;  %v3721_v56 = vpop.eup %3720  ;;  %v3071_v21 = vadd.f32 1.0, %v3055_v45  ;;  %v2620_v43 = vadd.f32 %v5306_v44, %v2619_v55  ;;  %vm2622_vm9 = vweird.f32 %v5306_v44 }
 0x73a   : > { %v2693_v3 = vsub.f32 1.0, %v2692_v50  ;;  %v3041_v36 = vsub.f32 1.0, %v3025_v9  ;;  %v3026_v4 = vmul.f32 %v3721_v56, %v2946_v25  ;;  %v5386_v35 = vadd.f32 %v2451_v16, %v5018_v58 }
 0x73b   : > { %v5383_v28 = vadd.f32 1.0, %v2551_v19  ;;  %vm2621_vm10 = vweird.f32 %v5245_v54  ;;  %v2625_v8 = vand.u32 2147483647, %v5245_v54  ;;  %v5391_v12 = vmul.f32 0.5, %v5094_v23 }
 0x73c   : > { %v2707_v45 = vmul.f32 %v5375_v22, %v5323_v48  ;;  %v5395_v55 = vpop.eup %3722  ;;  %v3072_v50 = vadd.f32 1.0, %v3056_v52  ;;  %v5397_v9 = vadd.f32 1.4214138, %v2845_v26  ;;  %vm5399_vm11 = vmor %vm2621_vm10, %vm2622_vm9  ;;  %v2628_v58 = vor.u32 1.1754944e-38, %v2627_v63  ;;  %v2454_v52 = vpop.f32.mrf.mxu3 }
 0x73d   : > { %3726 = vrcp.f32 %v5383_v28  ;;  %v2624_v23 = vsel %vm5399_vm11, %v5306_v44, %v2620_v43  ;;  %vm2498_vm12 = vcmp.ge.f32.partialorder %v5105_v10, 0.0  ;;  %v2694_v54 = vmul.f32 %v5339_v39, %v2693_v3 }
 0x73e   : > { %v5404_v16 = vpop.eup %3724  ;;  %v2700_v26 = vand.u32 2147483647, %v5298_v29  ;;  %v3057_v19 = vmul.f32 %v3041_v36, %v2513_v34  ;;  %v3042_v56 = vsub.f32 1.0, %v3026_v4  ;;  %v2702_v57 = vand.u32 2147483648, %v5298_v29 }
 0x73f   : > { %v5414_v63 = vmul.f32 0.70710677, %v5386_v35  ;;  %v5417_v11 = vmul.f32 %v3071_v21, %v5150_v33  ;;  %vm2626_vm13 = vcmp.eq.f32.partialorder %v2625_v8, 8.507059e+37  ;;  %v2708_v25 = vsub.f32 1.0, %v2707_v45 }
 0x740   : > { %v2722_v10 = vmul.f32 %v5395_v55, %v5342_v17  ;;  %v5422_v44 = vmul.f32 %v3072_v50, %v5177_v46  ;;  %v5424_v43 = vsel %vm2626_vm13, %v2628_v58, %v2624_v23  ;;  %v2514_v34 = vsel %vm2498_vm12, 1.0, %v6012_v20 }
 0x741   : > { %6015 = vst [vmem:[#allocation45_spill] sm:$0xff] %v5417_v11  ;;  %v2737_v3 = vmul.f32 %v5404_v16, %v5347_v61  ;;  %v2695_v36 = vadd.f32 %v5339_v39, %v2694_v54  ;;  %vm2696_vm14 = vweird.f32 %v5298_v29  ;;  %vm2697_vm15 = vweird.f32 %v5339_v39 }
 0x742   : > { %6016 = vst [vmem:[#allocation28_spill] sm:$0xff] %v5422_v44  ;;  %vm5432_vm0 = vcmp.eq.f32.partialorder %v2700_v26, 8.507059e+37  ;;  %v3073_v46 = vadd.f32 1.0, %v3057_v19  ;;  %v3058_v4 = vmul.f32 %v3042_v56, %v2514_v34  ;;  %v2703_v8 = vor.u32 1.1754944e-38, %v2702_v57  ;;  %vm5445_vm1 = vmor %vm2696_vm14, %vm2697_vm15 }
 0x743   : > { %v5436_v21 = vpop.eup %3726  ;;  %v5439_v45 = vand.u32 2147483647, %v5414_v63  ;;  %v2709_v50 = vmul.f32 %v5375_v22, %v2708_v25  ;;  %v2715_v58 = vand.u32 2147483647, %v5323_v48  ;;  %v2723_v23 = vsub.f32 1.0, %v2722_v10 }
 0x744   : > { %v2752_v29 = vmul.f32 %v5436_v21, %v5383_v28  ;;  %v2717_v26 = vand.u32 2147483648, %v5323_v48  ;;  %v2738_v57 = vsub.f32 1.0, %v2737_v3  ;;  %v2699_v25 = vsel %vm5445_vm1, %v5339_v39, %v2695_v36 }
 0x745   : > { %v2552_v56 = vmul.f32 0.3275911, %v5439_v45  ;;  %v2730_v10 = vand.u32 2147483647, %v5342_v17  ;;  %v5457_v15 = vadd.f32 %v2454_v52, %v5012_v32  ;;  %v5460_v60 = vmul.f32 %v3073_v46, %v5352_v14  ;;  %v2456_v52 = vpop.f32.mrf.mxu3 }
 0x746   : > { %v2753_v34 = vsub.f32 1.0, %v2752_v29  ;;  %v3074_v24 = vadd.f32 1.0, %v3058_v4  ;;  %vm2711_vm2 = vweird.f32 %v5323_v48  ;;  %v2710_v3 = vadd.f32 %v5375_v22, %v2709_v50 }
 0x747   : > { %6021 = vst [vmem:[#allocation12_spill] sm:$0xff] %v5460_v60  ;;  %v5463_v19 = vadd.f32 1.0, %v2552_v56  ;;  %vm2712_vm3 = vweird.f32 %v5375_v22  ;;  %vm5467_vm4 = vcmp.eq.f32.partialorder %v2715_v58, 8.507059e+37  ;;  %v2724_v36 = vmul.f32 %v5395_v55, %v2723_v23 }
 0x748   : > { %v2754_v32 = vmul.f32 %v5436_v21, %v2753_v34  ;;  %v5475_v14 = vsel %vm5432_vm0, %v2703_v8, %v2699_v25  ;;  %v2718_v46 = vor.u32 1.1754944e-38, %v2717_v26  ;;  %v2739_v4 = vmul.f32 %v5404_v16, %v2738_v57  ;;  %vm5493_vm7 = vmor %vm2711_vm2, %vm2712_vm3 }
 0x749   : > { %3728 = vrcp.f32 %v5463_v19  ;;  %vm2726_vm5 = vweird.f32 %v5342_v17  ;;  %vm5480_vm6 = vcmp.eq.f32.partialorder %v2730_v10, 8.507059e+37  ;;  %v2732_v58 = vand.u32 2147483648, %v5342_v17 }
 0x74a   : > { %v5486_v23 = vmul.f32 0.70710677, %v5457_v15  ;;  %v5489_v33 = vmul.f32 %v3074_v24, %v5391_v12  ;;  %v2755_v29 = vadd.f32 %v5436_v21, %v2754_v32  ;;  %vm2757_vm8 = vweird.f32 %v5436_v21 }
 0x74b   : > { %v5500_v54 = vadd.f32 %v2456_v52, %v5008_v2  ;;  %v2714_v26 = vsel %vm5493_vm7, %v5375_v22, %v2710_v3  ;;  %v2725_v24 = vadd.f32 %v5395_v55, %v2724_v36  ;;  %vm2727_vm9 = vweird.f32 %v5395_v55 }
 0x74c   : > { %6026 = vst [vmem:[#allocation46_spill] sm:$0xff] %v5489_v33  ;;  %v2762_v48 = vand.u32 2147483648, %v5383_v28  ;;  %v2740_v12 = vadd.f32 %v5404_v16, %v2739_v4  ;;  %vm2742_vm10 = vweird.f32 %v5404_v16  ;;  %vm2756_vm11 = vweird.f32 %v5383_v28  ;;  %vm5524_vm14 = vmor %vm2726_vm5, %vm2727_vm9 }
 0x74d   : > { %v2760_v57 = vand.u32 2147483647, %v5383_v28  ;;  %vm2741_vm12 = vweird.f32 %v5347_v61  ;;  %v2745_v2 = vand.u32 2147483647, %v5347_v61  ;;  %v2747_v22 = vand.u32 2147483648, %v5347_v61  ;;  %vm5515_vm13 = vmor %vm2756_vm11, %vm2757_vm8 }
 0x74e   : > { %v5520_v25 = vand.u32 2147483647, %v5486_v23  ;;  %v2759_v28 = vsel %vm5515_vm13, %v5436_v21, %v2755_v29  ;;  %v5532_v61 = vmul.f32 0.70710677, %v5500_v54  ;;  %v2729_v17 = vsel %vm5524_vm14, %v5395_v55, %v2725_v24  ;;  %vm5543_vm15 = vmor %vm2741_vm12, %vm2742_vm10 }
 0x74f   : > { %v3729_v10 = vpop.eup %3728  ;;  %v2733_v32 = vor.u32 1.1754944e-38, %v2732_v58  ;;  %v2763_v21 = vor.u32 1.1754944e-38, %v2762_v48  ;;  %v5550_v8 = vsel %vm5467_vm4, %v2718_v46, %v2714_v26  ;;  %v2744_v29 = vsel %vm5543_vm15, %v5404_v16, %v2740_v12 }
 0x750   : > { %v2767_v4 = vmul.f32 %v3729_v10, %v5463_v19  ;;  %vm2761_vm0 = vcmp.eq.f32.partialorder %v2760_v57, 8.507059e+37  ;;  %v2553_v55 = vmul.f32 0.3275911, %v5520_v25  ;;  %vm2746_vm1 = vcmp.eq.f32.partialorder %v2745_v2, 8.507059e+37 }
 0x751   : > { %v2748_v58 = vor.u32 1.1754944e-38, %v2747_v22  ;;  %v5556_v24 = vsel %vm2761_vm0, %v2763_v21, %v2759_v28  ;;  %v5560_v48 = vsel %vm5480_vm6, %v2733_v32, %v2729_v17  ;;  %v2777_v39 = vand.u32 2147483648, %v5463_v19 }
 0x752   : > { %v2768_v56 = vsub.f32 1.0, %v2767_v4  ;;  %v5563_v46 = vadd.f32 1.0, %v2553_v55  ;;  %v5566_v26 = vand.u32 2147483647, %v5532_v61  ;;  %vm2772_vm2 = vweird.f32 %v3729_v10 }
 0x753   : > { %v5568_v16 = vsel %vm2746_vm1, %v2748_v58, %v2744_v29  ;;  %v2775_v57 = vand.u32 2147483647, %v5463_v19  ;;  %v2814_v2 = vmul.f32 1.0614054, %v5424_v43  ;;  %v2819_v22 = vmul.f32 1.0614054, %v5475_v14 }
 0x754   : > { %v2769_v12 = vmul.f32 %v3729_v10, %v2768_v56  ;;  %v2823_v50 = vmul.f32 1.0614054, %v5556_v24  ;;  %3730 = vrcp.f32 %v5563_v46  ;;  %v2820_v34 = vmul.f32 1.0614054, %v5550_v8 }
 0x755   : > { %v2821_v28 = vmul.f32 1.0614054, %v5560_v48  ;;  %vm2771_vm3 = vweird.f32 %v5463_v19  ;;  %v6035_v32 = vsub.f32 0.0, %v5202_v38  ;;  %v2822_v21 = vmul.f32 1.0614054, %v5568_v16 }
 0x756   : > { %v2770_v17 = vadd.f32 %v3729_v10, %v2769_v12  ;;  %vm2773_vm4 = vmor %vm2771_vm3, %vm2772_vm2  ;;  %v2778_v4 = vor.u32 1.1754944e-38, %v2777_v39  ;;  %v2554_v29 = vmul.f32 0.3275911, %v5566_v26  ;;  %v2877_v55 = vmul.f32 %v5397_v9, %v5317_v31 }
 0x757   : > { %v2974_v52 = vmul.f32 %v6035_v32, %v5202_v38  ;;  %v6036_v58 = vsub.f32 0.0, %v5276_v5  ;;  %vm2776_vm5 = vcmp.eq.f32.partialorder %v2775_v57, 8.507059e+37  ;;  %v2835_v19 = vadd.f32 -1.4531521, %v2819_v22 }
 0x758   : > { %v2774_v12 = vsel %vm2773_vm4, %v3729_v10, %v2770_v17  ;;  %v2839_v36 = vadd.f32 -1.4531521, %v2823_v50  ;;  %v5590_v38 = vadd.f32 1.0, %v2554_v29  ;;  %3732 = vpow2.f32 %v5349_v6 }
 0x759   : > { %v2980_v56 = vmul.f32 %v6036_v58, %v5276_v5  ;;  %v5588_v3 = vsel %vm2776_vm5, %v2778_v4, %v2774_v12  ;;  %v2963_v39 = vsub.f32 0.0, %v5250_v18  ;;  %v2836_v32 = vadd.f32 -1.4531521, %v2820_v34 }
 0x75a   : > { %v2824_v11 = vmul.f32 1.0614054, %v5588_v3  ;;  %v3731_v9 = vpop.eup %3730  ;;  %v2830_v44 = vadd.f32 -1.4531521, %v2814_v2  ;;  %v2837_v60 = vadd.f32 -1.4531521, %v2821_v28  ;;  %3734 = vrcp.f32 %v5590_v38 }
 0x75b   : > { %v2838_v33 = vadd.f32 -1.4531521, %v2822_v21  ;;  %v5597_v5 = vadd.f32 -0.28449672, %v5370_v0  ;;  %v5599_v10 = vmul.f32 1.442695, %v2974_v52  ;;  %v2782_v22 = vmul.f32 %v3731_v9, %v5563_v46 }
 0x75c   : > { %v2840_v57 = vadd.f32 -1.4531521, %v2824_v11  ;;  %v5602_v6 = vadd.f32 -0.28449672, %v2877_v55  ;;  %v2851_v50 = vmul.f32 %v2835_v19, %v5475_v14  ;;  %v3005_v34 = vmul.f32 1.442695, %v2980_v56 }
 0x75d   : > { %v2855_v17 = vmul.f32 %v2839_v36, %v5556_v24  ;;  %v5607_v2 = vmul.f32 %v2963_v39, %v5250_v18  ;;  %v2852_v28 = vmul.f32 %v2836_v32, %v5550_v8  ;;  %v2783_v21 = vsub.f32 1.0, %v2782_v22 }
 0x75e   : > { %v2856_v0 = vmul.f32 %v2840_v57, %v5588_v3  ;;  %v5612_v52 = vmul.f32 %v2830_v44, %v5424_v43  ;;  %v2853_v11 = vmul.f32 %v2837_v60, %v5560_v48  ;;  %v2854_v4 = vmul.f32 %v2838_v33, %v5568_v16  ;;  %v5617_v55 = vpop.eup %3732 }
 0x75f   : > { %v2792_v29 = vand.u32 2147483648, %v5563_v46  ;;  %6037 = vst [vmem:[#allocation42_spill] sm:$0xff] %v5617_v55  ;;  %v2784_v58 = vmul.f32 %v3731_v9, %v2783_v21  ;;  %vm2787_vm6 = vweird.f32 %v3731_v9  ;;  %v2790_v18 = vand.u32 2147483647, %v5563_v46 }
 0x760   : > { %v2872_v36 = vadd.f32 1.4214138, %v2856_v0  ;;  %v3735_v56 = vpop.eup %3734  ;;  %v2867_v12 = vadd.f32 1.4214138, %v2851_v50  ;;  %3736 = vpow2.f32 %v3005_v34  ;;  %v2965_v19 = vsub.f32 0.0, %v5309_v62 }
 0x761   : > { %v2871_v44 = vadd.f32 1.4214138, %v2855_v17  ;;  %v2868_v39 = vadd.f32 1.4214138, %v2852_v28  ;;  %v2785_v32 = vadd.f32 %v3731_v9, %v2784_v58  ;;  %vm2786_vm7 = vweird.f32 %v5563_v46 }
 0x762   : > { %v2797_v60 = vmul.f32 %v3735_v56, %v5590_v38  ;;  %v2869_v33 = vadd.f32 1.4214138, %v2853_v11  ;;  %v2870_v57 = vadd.f32 1.4214138, %v2854_v4  ;;  %v2968_v22 = vsub.f32 0.0, %v5439_v45  ;;  %vm2788_vm8 = vmor %vm2786_vm7, %vm2787_vm6 }
 0x763   : > { %v2793_v0 = vor.u32 1.1754944e-38, %v2792_v29  ;;  %v2888_v21 = vmul.f32 %v2872_v36, %v5588_v3  ;;  %v2789_v55 = vsel %vm2788_vm8, %v3731_v9, %v2785_v32  ;;  %vm2791_vm9 = vcmp.eq.f32.partialorder %v2790_v18, 8.507059e+37 }
 0x764   : > { %v2798_v50 = vsub.f32 1.0, %v2797_v60  ;;  %v2887_v34 = vmul.f32 %v2871_v44, %v5556_v24  ;;  %v2969_v28 = vsub.f32 0.0, %v5520_v25  ;;  %v2807_v46 = vand.u32 2147483648, %v5590_v38 }
 0x765   : > { %v5626_v17 = vsel %vm2791_vm9, %v2793_v0, %v2789_v55  ;;  %vm2802_vm10 = vweird.f32 %v3735_v56  ;;  %v2805_v58 = vand.u32 2147483647, %v5590_v38  ;;  %v2886_v9 = vmul.f32 %v2870_v57, %v5568_v16 }
 0x766   : > { %v2825_v11 = vmul.f32 1.0614054, %v5626_v17  ;;  %v2799_v4 = vmul.f32 %v3735_v56, %v2798_v50  ;;  %v5632_v29 = vpop.eup %3736  ;;  %v2966_v36 = vsub.f32 0.0, %v5328_v30  ;;  %v2967_v18 = vsub.f32 0.0, %v5367_v59 }
 0x767   : > { %v2984_v55 = vmul.f32 %v2968_v22, %v5439_v45  ;;  %v2904_v44 = vadd.f32 -0.28449672, %v2888_v21  ;;  %vm2801_vm11 = vweird.f32 %v5590_v38  ;;  %v2884_v0 = vmul.f32 %v2868_v39, %v5550_v8 }
 0x768   : > { %v2841_v32 = vadd.f32 -1.4531521, %v2825_v11  ;;  %v2800_v60 = vadd.f32 %v3735_v56, %v2799_v4  ;;  %v2885_v50 = vmul.f32 %v2869_v33, %v5560_v48  ;;  %v2985_v37 = vmul.f32 %v2969_v28, %v5520_v25  ;;  %vm2803_vm12 = vmor %vm2801_vm11, %vm2802_vm10 }
 0x769   : > { %v2808_v42 = vor.u32 1.1754944e-38, %v2807_v46  ;;  %v2903_v57 = vadd.f32 -0.28449672, %v2887_v34  ;;  %vm2806_vm13 = vcmp.eq.f32.partialorder %v2805_v58, 8.507059e+37  ;;  %v2983_v45 = vmul.f32 %v2967_v18, %v5367_v59 }
 0x76a   : > { %v2857_v1 = vmul.f32 %v2841_v32, %v5626_v17  ;;  %v2804_v47 = vsel %vm2803_vm12, %v3735_v56, %v2800_v60  ;;  %v3013_v22 = vmul.f32 1.442695, %v2984_v55  ;;  %v2970_v38 = vsub.f32 0.0, %v5566_v26 }
 0x76b   : > { %v5644_v21 = vsel %vm2806_vm13, %v2808_v42, %v2804_v47  ;;  %v2902_v11 = vadd.f32 -0.28449672, %v2886_v9  ;;  %v2920_v39 = vmul.f32 %v2904_v44, %v5588_v3  ;;  %v2883_v28 = vmul.f32 %v2867_v12, %v5475_v14 }
 0x76c   : > { %v2873_v33 = vadd.f32 1.4214138, %v2857_v1  ;;  %v2826_v25 = vmul.f32 1.0614054, %v5644_v21  ;;  %v2901_v34 = vadd.f32 -0.28449672, %v2885_v50  ;;  %v2982_v46 = vmul.f32 %v2966_v36, %v5328_v30 }
 0x76d   : > { %v3015_v56 = vmul.f32 1.442695, %v2985_v37  ;;  %v2981_v4 = vmul.f32 %v2965_v19, %v5309_v62  ;;  %v2919_v59 = vmul.f32 %v2903_v57, %v5556_v24  ;;  %v2900_v58 = vadd.f32 -0.28449672, %v2884_v0 }
 0x76e   : > { %v2889_v42 = vmul.f32 %v2873_v33, %v5626_v17  ;;  %v2842_v47 = vadd.f32 -1.4531521, %v2826_v25  ;;  %v3011_v9 = vmul.f32 1.442695, %v2983_v45  ;;  %3738 = vpow2.f32 %v3013_v22 }
 0x76f   : > { %v2986_v1 = vmul.f32 %v2970_v38, %v5566_v26  ;;  %v2918_v18 = vmul.f32 %v2902_v11, %v5568_v16  ;;  %v2936_v55 = vadd.f32 0.2548296, %v2920_v39  ;;  %v2899_v30 = vadd.f32 -0.28449672, %v2883_v28 }
 0x770   : > { %v2905_v12 = vadd.f32 -0.28449672, %v2889_v42  ;;  %v2858_v44 = vmul.f32 %v2842_v47, %v5644_v21  ;;  %v2917_v37 = vmul.f32 %v2901_v34, %v5560_v48  ;;  %v3009_v62 = vmul.f32 1.442695, %v2982_v46 }
 0x771   : > { %3740 = vpow2.f32 %v3015_v56  ;;  %v3007_v19 = vmul.f32 1.442695, %v2981_v4  ;;  %v2935_v36 = vadd.f32 0.2548296, %v2919_v59  ;;  %v2862_v0 = vadd.f32 1.4214138, %v5612_v52 }
 0x772   : > { %v2921_v32 = vmul.f32 %v2905_v12, %v5626_v17  ;;  %v2874_v60 = vadd.f32 1.4214138, %v2858_v44  ;;  %v2916_v26 = vmul.f32 %v2900_v58, %v5550_v8  ;;  %3742 = vpow2.f32 %v3011_v9 }
 0x773   : > { %v3017_v50 = vmul.f32 1.442695, %v2986_v1  ;;  %v2934_v57 = vadd.f32 0.2548296, %v2918_v18  ;;  %v2952_v45 = vmul.f32 %v2936_v55, %v5588_v3  ;;  %v2915_v39 = vmul.f32 %v2899_v30, %v5475_v14 }
 0x774   : > { %v2937_v22 = vadd.f32 0.2548296, %v2921_v32  ;;  %v2890_v38 = vmul.f32 %v2874_v60, %v5644_v21  ;;  %v3739_v11 = vpop.eup %3738  ;;  %v3003_v33 = vmul.f32 1.442695, %v5607_v2  ;;  %v2933_v25 = vadd.f32 0.2548296, %v2917_v37 }
 0x775   : > { %3744 = vpow2.f32 %v3009_v62  ;;  %v2951_v52 = vmul.f32 %v2935_v36, %v5556_v24  ;;  %v2909_v3 = vmul.f32 %v5602_v6, %v5317_v31  ;;  %v2878_v56 = vmul.f32 %v2862_v0, %v5424_v43 }
 0x776   : > { %3746 = vpow2.f32 %v3007_v19  ;;  %v2953_v28 = vmul.f32 %v2937_v22, %v5626_v17  ;;  %v2906_v34 = vadd.f32 -0.28449672, %v2890_v38  ;;  %v2932_v4 = vadd.f32 0.2548296, %v2916_v26 }
 0x777   : > { %v3741_v46 = vpop.eup %3740  ;;  %3748 = vpow2.f32 %v3017_v50  ;;  %v2950_v59 = vmul.f32 %v2934_v57, %v5568_v16  ;;  %v3032_v42 = vmul.f32 %v3739_v11, %v2952_v45  ;;  %v2908_v24 = vmul.f32 %v5597_v5, %v5266_v7 }
 0x778   : > { %v3033_v2 = vmul.f32 %v3741_v46, %v2953_v28  ;;  %v2922_v47 = vmul.f32 %v2906_v34, %v5644_v21  ;;  %v3743_v58 = vpop.eup %3742  ;;  %v2931_v17 = vadd.f32 0.2548296, %v2915_v39  ;;  %3750 = vpow2.f32 %v3003_v33 }
 0x779   : > { %v2949_v9 = vmul.f32 %v2933_v25, %v5560_v48  ;;  %v3031_v1 = vmul.f32 %v3743_v58, %v2951_v52  ;;  %vm2505_vm14 = vcmp.ge.f32.partialorder %v5486_v23, 0.0  ;;  %v2925_v12 = vadd.f32 0.2548296, %v2909_v3 }
 0x77a   : > { %v3049_v6 = vsub.f32 1.0, %v3033_v2  ;;  %v2938_v18 = vadd.f32 0.2548296, %v2922_v47  ;;  %v2894_v16 = vadd.f32 -0.28449672, %v2878_v56  ;;  %3752 = vpow2.f32 %v5599_v10 }
 0x77b   : > { %v3745_v55 = vpop.eup %3744  ;;  %v2948_v44 = vmul.f32 %v2932_v4, %v5550_v8  ;;  %vm2504_vm15 = vcmp.ge.f32.partialorder %v5414_v63, 0.0  ;;  %v3048_v5 = vsub.f32 1.0, %v3032_v42  ;;  %v2947_v19 = vmul.f32 %v2931_v17, %v5475_v14 }
 0x77c   : > { %v3747_v30 = vpop.eup %3746  ;;  %v3030_v37 = vmul.f32 %v3745_v55, %v2950_v59  ;;  %v2954_v62 = vmul.f32 %v2938_v18, %v5644_v21  ;;  %vm2503_vm0 = vcmp.ge.f32.partialorder %v5345_v41, 0.0  ;;  %v2521_v32 = vsel %vm2505_vm14, 1.0, %v6012_v20 }
 0x77d   : > { %v3749_v48 = vpop.eup %3748  ;;  %v3029_v36 = vmul.f32 %v3747_v30, %v2949_v9  ;;  %v3047_v10 = vsub.f32 1.0, %v3031_v1  ;;  %v3065_v60 = vmul.f32 %v3049_v6, %v2521_v32  ;;  %vm2506_vm1 = vcmp.ge.f32.partialorder %v5532_v61, 0.0  ;;  %v6039_v30 = vld [vmem:[#allocation29_spill] sm:$0xff] }
 0x77e   : > { %v3034_v8 = vmul.f32 %v3749_v48, %v2954_v62  ;;  %v3751_v0 = vpop.eup %3750  ;;  %v2910_v26 = vmul.f32 %v2894_v16, %v5424_v43  ;;  %vm2500_vm2 = vcmp.ge.f32.partialorder %v5256_v40, 0.0  ;;  %v3028_v21 = vmul.f32 %v5632_v29, %v2948_v44  ;;  %v6038_v16 = vld [vmem:[#allocation30_spill] sm:$0xff] }
 0x77f   : > { %v2520_v14 = vsel %vm2504_vm15, 1.0, %v6012_v20  ;;  %vm2502_vm3 = vcmp.ge.f32.partialorder %v5312_v51, 0.0  ;;  %v3046_v23 = vsub.f32 1.0, %v3030_v37  ;;  %v3027_v22 = vmul.f32 %v3751_v0, %v2947_v19  ;;  %v6040_v37 = vld [vmem:[#allocation8_spill] sm:$0xff]  ;;  %v6044_v0 = vld [vmem:[#allocation17_spill] sm:$0xff] }
 0x780   : > { %v3064_v50 = vmul.f32 %v3048_v5, %v2520_v14  ;;  %v3050_v57 = vsub.f32 1.0, %v3034_v8  ;;  %v3753_v45 = vpop.eup %3752  ;;  %vm2501_vm4 = vcmp.ge.f32.partialorder %v5281_v53, 0.0  ;;  %v2519_v61 = vsel %vm2503_vm0, 1.0, %v6012_v20  ;;  %v6046_v14 = vld [vmem:[#allocation10_spill] sm:$0xff] }
 0x781   : > { %v2522_v38 = vsel %vm2506_vm1, 1.0, %v6012_v20  ;;  %v3045_v29 = vsub.f32 1.0, %v3029_v36  ;;  %v3063_v11 = vmul.f32 %v3047_v10, %v2519_v61  ;;  %v3081_v39 = vadd.f32 1.0, %v3065_v60  ;;  %v6043_v10 = vld [vmem:[#allocation27_spill] sm:$0xff] }
 0x782   : > { %v3066_v63 = vmul.f32 %v3050_v57, %v2522_v38  ;;  %v2926_v33 = vadd.f32 0.2548296, %v2910_v26  ;;  %v3044_v25 = vsub.f32 1.0, %v3028_v21  ;;  %v2518_v51 = vsel %vm2502_vm3, 1.0, %v6012_v20  ;;  %v6045_v21 = vld [vmem:[#allocation16_spill] sm:$0xff]  ;;  %v6047_v61 = vld [vmem:[#allocation19_spill] sm:$0xff] }
 0x783   : > { %v2473_v52 = vmul.f32 0.5, %v5457_v15  ;;  %v3062_v28 = vmul.f32 %v3046_v23, %v2518_v51  ;;  %v3080_v34 = vadd.f32 1.0, %v3064_v50  ;;  %v2474_v46 = vmul.f32 0.5, %v5500_v54 }
 0x784   : > { %v3082_v3 = vadd.f32 1.0, %v3066_v63  ;;  %vm2499_vm5 = vcmp.ge.f32.partialorder %v5228_v27, 0.0  ;;  %v3043_v41 = vsub.f32 1.0, %v3027_v22  ;;  %v2517_v56 = vsel %vm2501_vm4, 1.0, %v6012_v20  ;;  %v6042_v27 = vld [vmem:[#allocation42_spill] sm:$0xff] }
 0x785   : > { %v2472_v4 = vmul.f32 0.5, %v5386_v35  ;;  %v3061_v59 = vmul.f32 %v3045_v29, %v2517_v56  ;;  %v3079_v42 = vadd.f32 1.0, %v3063_v11  ;;  %v3097_v2 = vmul.f32 %v3081_v39, %v2473_v52  ;;  %v6048_v39 = vld [vmem:[#allocation15_spill] sm:$0xff] }
 0x786   : > { %v3098_v47 = vmul.f32 %v3082_v3, %v2474_v46  ;;  %v2924_v58 = vadd.f32 0.2548296, %v2908_v24  ;;  %v2942_v15 = vmul.f32 %v2926_v33, %v5424_v43  ;;  %v2516_v54 = vsel %vm2500_vm2, 1.0, %v6012_v20  ;;  %v6049_v52 = vld [vmem:[#allocation39_spill] sm:$0xff] }
 0x787   : > { %v2471_v17 = vmul.f32 0.5, %v5331_v13  ;;  %v3060_v9 = vmul.f32 %v3044_v25, %v2516_v54  ;;  %v3078_v1 = vadd.f32 1.0, %v3062_v28  ;;  %v3096_v6 = vmul.f32 %v3080_v34, %v2472_v4 }
 0x788   : > { %v3110_v53 = vpack.c.bf16 %v3098_v47, %v3097_v2  ;;  %v2923_v18 = vadd.f32 0.2548296, %v5356_v49  ;;  %v2941_v35 = vmul.f32 %v2925_v12, %v5317_v31  ;;  %v2515_v24 = vsel %vm2499_vm5, 1.0, %v6012_v20  ;;  %v6041_v12 = vld [vmem:[#allocation25_spill] sm:$0xff]  ;;  %v6051_v47 = vld [vmem:[#allocation46_spill] sm:$0xff] }
 0x789   : > { %v3059_v55 = vmul.f32 %v3043_v41, %v2515_v24  ;;  %v3077_v43 = vadd.f32 1.0, %v3061_v59  ;;  %v2470_v44 = vmul.f32 0.5, %v6038_v16  ;;  %v3095_v40 = vmul.f32 %v3079_v42, %v2471_v17  ;;  %v6050_v42 = vld [vmem:[#allocation35_spill] sm:$0xff]  ;;  %v6054_v17 = vld [vmem:[#allocation37_spill] sm:$0xff]  ;;  %v6056_v24 = vld [vmem:[#allocation28_spill] sm:$0xff] }
 0x78a   : > { %3147 = vmatpush.bf16.msrb.mxu2 %v3110_v53  ;;  %3754 = vpow2.f32 %v6039_v30  ;;  %v2940_v13 = vmul.f32 %v2924_v58, %v5266_v7  ;;  %v2469_v5 = vmul.f32 0.5, %v6040_v37  ;;  %v3022_v62 = vmul.f32 %v3753_v45, %v2942_v15  ;;  %v6052_v58 = vld [vmem:[#allocation12_spill] sm:$0xff]  ;;  %v6055_v53 = vld [vmem:[#allocation33_spill] sm:$0xff]  ;;  %v3378_v37 = vld [vmem:[%s5772_s11] sm:$0xff] }
 0x78b   : > { %v3076_v49 = vadd.f32 1.0, %v3060_v9  ;;  %v3094_v48 = vmul.f32 %v3078_v1, %v2470_v44  ;;  %v3109_v31 = vpack.c.bf16 %v3096_v6, %v3095_v40  ;;  %v2939_v19 = vmul.f32 %v2923_v18, %v6041_v12 }
 0x78c   : > { %v3021_v36 = vmul.f32 %v6042_v27, %v2941_v35  ;;  %v3075_v32 = vadd.f32 1.0, %v3059_v55  ;;  %v2468_v60 = vmul.f32 0.5, %v6043_v10  ;;  %v3093_v8 = vmul.f32 %v3077_v43, %v2469_v5  ;;  %v6057_v55 = vld [vmem:[#allocation45_spill] sm:$0xff]  ;;  %v3379_v5 = vld [vmem:[%s5772_s11 + $0x8] sm:$0xff] }
 0x78d   : > { %v3020_v26 = vmul.f32 %v6044_v0, %v2940_v13  ;;  %vm2494_vm6 = vcmp.ge.f32.partialorder %v6045_v21, 0.0  ;;  %v3038_v7 = vsub.f32 1.0, %v3022_v62  ;;  %v2467_v23 = vmul.f32 0.5, %v6046_v14  ;;  %v3118_v62 = vpop.permute.xlu0 %3117 }
 0x78e   : > { %3148 = vmatpush.bf16.msrb.mxu2 %v3109_v31  ;;  %v3092_v50 = vmul.f32 %v3076_v49, %v2468_v60  ;;  %v3108_v57 = vpack.c.bf16 %v3094_v48, %v3093_v8  ;;  %vm2493_vm7 = vcmp.ge.f32.partialorder %v6047_v61, 0.0  ;;  %v3037_v38 = vsub.f32 1.0, %v3021_v36  ;;  %v6060_v31 = vld [vmem:[#allocation24_spill] sm:$0xff]  ;;  %v3128_v60 = vpop.permute.xlu1 %3127 }
 0x78f   : > { %v3091_v29 = vmul.f32 %v3075_v32, %v2467_v23  ;;  %v2510_v11 = vsel %vm2494_vm6, 1.0, %v6012_v20  ;;  %vm2492_vm8 = vcmp.ge.f32.partialorder %v6048_v39, 0.0  ;;  %v3036_v63 = vsub.f32 1.0, %v3020_v26  ;;  %v6061_v32 = vld [vmem:[#allocation36_spill] sm:$0xff]  ;;  %v6062_v26 = vld [vmem:[#allocation7_spill] sm:$0xff] }
 0x790   : > { %v3755_v45 = vpop.eup %3754  ;;  %v3054_v33 = vmul.f32 %v3038_v7, %v2510_v11  ;;  %v2509_v51 = vsel %vm2493_vm7, 1.0, %v6012_v20  ;;  %vm2491_vm9 = vcmp.ge.f32.partialorder %v6049_v52, 0.0  ;;  %v2508_v46 = vsel %vm2492_vm8, 1.0, %v6012_v20 }
 0x791   : > { %v3019_v22 = vmul.f32 %v3755_v45, %v2939_v19  ;;  %v3107_v25 = vpack.c.bf16 %v3092_v50, %v3091_v29  ;;  %v3053_v34 = vmul.f32 %v3037_v38, %v2509_v51  ;;  %v3052_v3 = vmul.f32 %v3036_v63, %v2508_v46  ;;  %v3123_v19 = vpop.permute.xlu2 %3122  ;;  %v6063_v50 = vld [vmem:[#allocation32_spill] sm:$0xff] }
 0x792   : > { %3149 = vmatpush.bf16.msrb.mxu2 %v3108_v57  ;;  %v3070_v41 = vadd.f32 1.0, %v3054_v33  ;;  %v2507_v56 = vsel %vm2491_vm9, 1.0, %v6012_v20  ;;  %v2462_v2 = vmul.f32 0.5, %v6050_v42  ;;  %v6053_v15 = vpack.c.bf16 %v6051_v47, %v6052_v58  ;;  %v6059_v20 = vld [vmem:[#allocation14_spill] sm:$0xff] }
 0x793   : > { %v3035_v28 = vsub.f32 1.0, %v3019_v22  ;;  %v3069_v59 = vadd.f32 1.0, %v3053_v34  ;;  %v3068_v54 = vadd.f32 1.0, %v3052_v3  ;;  %v2461_v9 = vmul.f32 0.5, %v6054_v17 }
 0x794   : > { %v3086_v1 = vmul.f32 %v3070_v41, %v2462_v2  ;;  %v2460_v18 = vmul.f32 0.5, %v6055_v53  ;;  %v6058_v43 = vpack.c.bf16 %v6056_v24, %v6057_v55  ;;  %v2459_v16 = vmul.f32 0.5, %v6059_v20 }
 0x795   : > { %v3051_v4 = vmul.f32 %v3035_v28, %v2507_v56  ;;  %v3085_v35 = vmul.f32 %v3069_v59, %v2461_v9  ;;  %v3133_v7 = vpop.permute.xlu0 %3132 }
 0x796   : > { %3150 = vmatpush.bf16.msrb.mxu2 %v3107_v25  ;;  %v3084_v44 = vmul.f32 %v3068_v54, %v2460_v18 }
 0x797   : > { %v3067_v6 = vadd.f32 1.0, %v3051_v4  ;;  %v3104_v40 = vpack.c.bf16 %v3086_v1, %v3085_v35 }
 0x799   : > { %v3083_v30 = vmul.f32 %v3067_v6, %v2459_v16 }
 0x79a   : > { %3151 = vmatpush.bf16.msrb.mxu2 %v6053_v15 }
 0x79b   : > { %v3103_v13 = vpack.c.bf16 %v3084_v44, %v3083_v30 }
 0x79e   : > { %3152 = vmatpush.bf16.msrb.mxu2 %v6058_v43 }
 0x7a2   : > { %3153 = vmatpush.bf16.msrb.mxu2 %v3104_v40 }
 0x7a6   : > { %3154 = vmatpush.bf16.msrb.mxu2 %v3103_v13 }
 0x7a9   : > { %3155 = vmatmul.bf16.vlgmr.msrb.gmra.mxu2 %v3378_v37 }
 0x7b9   : > { %3160 = vmatmul.bf16.gmra.mxu2 %v3379_v5 }
 0x82c   : > { %v3156_v49 = vpop.f32.mrf.mxu2 }
 0x82d   : > { %v3157_v48 = vadd.f32 %v3156_v49, %v3118_v62 }
 0x82f   : > { %v3166_v12 = vadd.f32 %v3157_v48, %v6060_v31 }
 0x831   : > { %3170 = vst [vmem:[%s440_s17] sm:$0xff] %v3166_v12 }
 0x834   : > { %v3158_v27 = vpop.f32.mrf.mxu2 }
 0x835   : > { %v3159_v36 = vadd.f32 %v3158_v27, %v3123_v19 }
 0x837   : > { %v3167_v10 = vadd.f32 %v3159_v36, %v6061_v32 }
 0x839   : > { %3171 = vst [vmem:[%s440_s17 + $0x8] sm:$0xff] %v3167_v10 }
 0x83c   : > { %v3161_v8 = vpop.f32.mrf.mxu2 }
 0x83d   : > { %v3162_v0 = vadd.f32 %v3161_v8, %v3128_v60 }
 0x83f   : > { %v3168_v21 = vadd.f32 %v3162_v0, %v6062_v26 }
 0x841   : > { %3172 = vst [vmem:[%s440_s17 + $0x10] sm:$0xff] %v3168_v21 }
 0x844   : > { %v3163_v14 = vpop.f32.mrf.mxu2 }
 0x845   : > { %v3164_v23 = vadd.f32 %v3163_v14, %v3133_v7 }
 0x847   : > { %v3169_v57 = vadd.f32 %v3164_v23, %v6063_v50 }
 0x849   : > { %3173 = vst [vmem:[%s440_s17 + $0x18] sm:$0xff] %v3169_v57 }
 0x84a PF: > { %s23_s25 = sadd.s32 1, %s3766_s25  }
 0x84b   : > { %p20_p4 = scmp.ge.s32.totalorder %s23_s25, 4  }
 0x84d   :  { %22 = sbr.rel (!%p20_p4) target bundleno = 1 (0x1), region = 102 }

</bundles_post_ra>
